<compile_context>
chip_gen: v7x
topology: tpu7x:2x2x1
jax: 0.10.0
libtpu: 0.0.40
codegen_flags: <defaults>
</compile_context>

<pallas_src>
import functools

import jax
import jax.numpy as jnp
from jax.experimental import pallas as pl
from jax.experimental.pallas import tpu as pltpu


def linear_add_kernel(x_ref, wt_ref, o_ref, *, tn):
    # x_ref:  (M, K)  f32 activations, fully resident (constant index_map)
    # wt_ref: (K, tn) bf16 pre-transposed weight tile (streamed per grid step)
    # o_ref:  (M, tn) f32 output tile
    j = pl.program_id(0)
    # Residual slice straight out of the resident activation block (N == K).
    res = x_ref[:, pl.ds(pl.multiple_of(j * tn, 128), tn)]
    acc = jnp.dot(
        x_ref[...].astype(wt_ref.dtype),  # bf16 MXU-native inputs
        wt_ref[...],
        preferred_element_type=jnp.float32,  # f32 accumulation
    )
    o_ref[...] = (acc + res).astype(o_ref.dtype)


def prepare_weight(w, dtype=jnp.bfloat16):
    """One-time weight prep: torch layout (N, K) -> (K, N), cast to bf16.

    Call this once at model-init / weight-load time so neither the transpose
    nor the cast sits on the per-call HBM path.
    """
    return jnp.asarray(w.T, dtype=dtype)


def linear_add(x, w_t, *, tn=512):
    """Computes x @ W.T + x where w_t = prepare_weight(W) is (K, N).

    x: (..., K) float32; w_t: (K, N) (bf16 recommended) with N == K.
    """
    orig_shape = x.shape
    K = x.shape[-1]
    K_w, N = w_t.shape
    assert K_w == K, f"w_t shape {w_t.shape} incompatible with x last dim {K}"
    assert N == K, "residual add requires in_features == out_features"
    assert N % tn == 0 and tn % 128 == 0, f"tn={tn} must divide N={N} and be lane-aligned"

    x2 = x.reshape(-1, K)
    M = x2.shape[0]

    grid = (N // tn,)

    cost = pl.CostEstimate(
        flops=2 * M * K * N,
        bytes_accessed=(
            w_t.dtype.itemsize * K * N
            + x2.dtype.itemsize * M * K
            + x2.dtype.itemsize * M * N
        ),
        transcendentals=0,
    )

    out = pl.pallas_call(
        functools.partial(linear_add_kernel, tn=tn),
        out_shape=jax.ShapeDtypeStruct((M, N), x.dtype),
        grid=grid,
        in_specs=[
            # full activations, resident across all grid steps
            pl.BlockSpec((M, K), lambda j: (0, 0)),
            # weight tile: full K, tn output features (default double-buffered)
            pl.BlockSpec((K, tn), lambda j: (0, j)),
        ],
        out_specs=pl.BlockSpec((M, tn), lambda j: (0, j)),
        compiler_params=pltpu.CompilerParams(
            dimension_semantics=("parallel",),
            # 2 x 4 MiB bf16 weight buffers + resident activations + output tiles;
            # comfortable on v5e/v6e (128 MiB) and v7x (64 MiB).
            vmem_limit_bytes=32 * 1024 * 1024,
        ),
        cost_estimate=cost,
    )(x2, w_t)

    return out.reshape(orig_shape)


if __name__ == "__main__":
    key = jax.random.PRNGKey(0)
    kx, kw = jax.random.split(key)

    # Module fixes hidden size at 4096 (Linear(4096, 4096, bias=False));
    # keep batch/seq small.
    batch, seq, hidden = 2, 8, 4096
    x = jax.random.normal(kx, (batch, seq, hidden), dtype=jnp.float32)
    # torch.nn.Linear-style fan-in uniform init, (out_features, in_features).
    w = jax.random.uniform(
        kw, (hidden, hidden), dtype=jnp.float32,
        minval=-1.0 / jnp.sqrt(hidden), maxval=1.0 / jnp.sqrt(hidden),
    )

    # One-time weight prep (transpose + bf16 cast) hoisted out of the call path.
    w_t = prepare_weight(w)

    y = linear_add(x, w_t)
    y = jax.block_until_ready(y)

    # Reference matching the kernel's numerics (bf16 operands, f32 accumulate,
    # f32 residual) -> tight tolerance.
    x2 = x.reshape(-1, hidden)
    y_ref_bf16 = (
        jnp.dot(x2.astype(jnp.bfloat16), w_t, preferred_element_type=jnp.float32) + x2
    ).reshape(x.shape)
    assert jnp.allclose(y, y_ref_bf16, atol=1e-3, rtol=1e-3)

    # Sanity check against the full-f32 module semantics (looser tolerance due
    # to bf16 weight/activation quantization).
    y_ref_f32 = jnp.einsum("bsk,nk->bsn", x, w) + x
    assert jnp.allclose(y, y_ref_f32, atol=3e-2, rtol=3e-2)

    print("KERNEL_OK")
</pallas_src>

<mosaic_0001>
module attributes {stable_mosaic.version = 11 : i64} {
  func.func @linear_add_kernel(%arg0: i32, %arg1: memref<16x4096xf32, #tpu.memory_space<vmem>>, %arg2: memref<4096x512xbf16, #tpu.memory_space<vmem>>, %arg3: memref<16x512xf32, #tpu.memory_space<vmem>>) attributes {dimension_semantics = [#tpu.dimension_semantics<parallel>], iteration_bounds = array<i64: 8>, scalar_prefetch = 0 : i64, scratch_operands = 0 : i64, tpu.core_type = #tpu.core_type<tc>, window_params = [{pipeline_mode = #tpu.pipeline_mode<synchronous>, transform_indices = @transform_0, window_bounds = array<i64: 16, 4096>}, {transform_indices = @transform_1, window_bounds = array<i64: 4096, 512>}, {transform_indices = @transform_2, window_bounds = array<i64: 16, 512>}]} {
    %c512_i32 = arith.constant 512 : i32
    %0 = arith.muli %arg0, %c512_i32 : i32
    %1 = tpu.assume_multiple %0, 128 : i32
    %c0 = arith.constant 0 : index
    %2 = arith.index_cast %1 : i32 to index
    %3 = vector.load %arg1[%c0, %2] : memref<16x4096xf32, #tpu.memory_space<vmem>>, vector<16x512xf32>
    %c0_0 = arith.constant 0 : index
    %c0_1 = arith.constant 0 : index
    %4 = vector.load %arg1[%c0_0, %c0_1] : memref<16x4096xf32, #tpu.memory_space<vmem>>, vector<16x4096xf32>
    %5 = arith.truncf %4 : vector<16x4096xf32> to vector<16x4096xbf16>
    %c0_2 = arith.constant 0 : index
    %c0_3 = arith.constant 0 : index
    %6 = vector.load %arg2[%c0_2, %c0_3] : memref<4096x512xbf16, #tpu.memory_space<vmem>>, vector<4096x512xbf16>
    %cst = arith.constant dense<0.000000e+00> : vector<16x512xf32>
    %7 = tpu.matmul %5, %6, %cst {dimension_numbers = #tpu.dot_dimension_numbers<[1], [0], [0], [1], [0, 0, 1, 1], [], []>} : vector<16x4096xbf16>, vector<4096x512xbf16>, vector<16x512xf32> -> vector<16x512xf32>
    %8 = arith.addf %7, %3 : vector<16x512xf32>
    %c0_4 = arith.constant 0 : index
    %c0_5 = arith.constant 0 : index
    %9 = vector.load %arg3[%c0_4, %c0_5] : memref<16x512xf32, #tpu.memory_space<vmem>>, vector<16x512xf32>
    tpu.vector_store %arg3[%c0_4, %c0_5], %8 {strides = array<i32>} : memref<16x512xf32, #tpu.memory_space<vmem>>, vector<16x512xf32>,
    return
  }
  func.func @transform_0(%arg0: i32) -> (i32, i32) {
    %c0_i32 = arith.constant 0 : i32
    %c0_i32_0 = arith.constant 0 : i32
    %c0_i32_1 = arith.constant 0 : i32
    return %c0_i32, %c0_i32_0 : i32, i32
  }
  func.func @transform_1(%arg0: i32) -> (i32, i32) {
    %c0_i32 = arith.constant 0 : i32
    %c0_i32_0 = arith.constant 0 : i32
    return %c0_i32, %arg0 : i32, i32
  }
  func.func @transform_2(%arg0: i32) -> (i32, i32) {
    %c0_i32 = arith.constant 0 : i32
    %c0_i32_0 = arith.constant 0 : i32
    return %c0_i32, %arg0 : i32, i32
  }
}

</mosaic_0001>

<bundles_post_ra>
// kernel: tpu_custom_call.1
= control target key start
LH: loop header
LB: loop body
LE: loop exit
PB: predicated region body
PF: predicated region fallthrough
CT: control target
= control target key end

     0   :  { %7 = vsyncpa [#allocation3], 0  ;;  %s12082_s0 = inlined_call_operand.hbm [shape: f32[16,4096], index: 0, kind: input, shape index: {}]   ;;  %s12083_s1 = inlined_call_operand.hbm [shape: bf16[4096,4096], index: 1, kind: input, shape index: {}]   ;;  %s12084_s2 = inlined_call_operand.hbm [shape: f32[16,4096], index: 2, kind: output, shape index: {}]  }
   0x1   :  { %8 = vsyncpa [#allocation6], 0 }
   0x2   :  { %10 = vsyncpa [#allocation6 + $0x1], 0 }
   0x3   :  { %11 = vsyncpa [#allocation4], 0 }
   0x4   :  { %13 = vsyncpa [#allocation4 + $0x1], 0  ;;  %s10844_s9 = smov 0   ;;  %s10846_s10 = smov 0  }
   0x5   :  { %s10848_s11 = smov 0   ;;  %s10850_s12 = smov 0  }
   0x6 LB: > { %s10865_s13 = sadd.s32 4294967295, %s10817_s12   ;;  %s7917_s14 = sadd.s32 4294967294, %s10817_s12   ;;  %s10817_s12 = sphi %s10850_s12, %s12107_s12   ;;  %s10813_s11 = sphi %s10848_s11, %s12106_s11   ;;  %s10809_s10 = sphi %s10846_s10, %s12105_s10   ;;  %s10805_s9 = sphi %s10844_s9, %s12104_s9  }
   0x7   : > { %s10869_s15 = sadd.s32 1, %s10817_s12   ;;  %s47_s16 = sadd.s32 1, %s10813_s11 }
   0x8   : > { %s44_s17 = ssub.s32 %s10817_s12, %s10869_s15  ;;  %p54_p0 = scmp.ne.s32.totalorder %s10813_s11, %s10809_s10 }
   0x9   : > { %p45_p1 = scmp.eq.s32.totalorder %s44_s17, 0  ;;  %p55_p2 = scmp.eq.s32.totalorder %s10817_s12, 0 }
   0xa   : > { %p60_p3 = scmp.ne.s32.totalorder %s10809_s10, %s10805_s9  ;;  %p12085_p4 = scmp.eq.s32.totalorder %s10865_s13, 0 }
   0xb   : > { %s10881_s18 = scalar_select %p45_p1, %s10813_s11, %s47_s16  }
   0xc   : > { %p10883_p5 = por %p55_p2, %p54_p0  ;;  %p10889_p6 = por %p12085_p4, %p60_p3 }
   0xd   : > { %p84_p7 = scmp.eq.s32.totalorder %s10865_s13, 7  ;;  %p90_p8 = scmp.eq.s32.totalorder %s7917_s14, 7 }
   0xe   : > { %s12089_s19 = scalar_select %p10883_p5, 1, 0 }
   0xf   : > { %s12090_s20 = scalar_select %p10889_p6, 1, 0 }
  0x10   : > { %p7918_p9 = scmp.ge.s32.totalorder %s10817_s12, 1  ;;  %p97_p10 = scmp.lt.s32.totalorder %s10817_s12, 9 }
  0x11   : > { %p10896_p11 = por %p84_p7, %p54_p0  ;;  %p10900_p12 = por %p90_p8, %p60_p3 }
  0x12   : > { %p10904_p13 = pnand %p7918_p9, %p97_p10  ;;  %s10819_s24 = smov [#allocation2]  }
  0x13   : > { %s12091_s21 = scalar_select %p10896_p11, 1, 0 }
  0x14   : > { %s12092_s22 = scalar_select %p10900_p12, 1, 0 }
  0x15   : > { %s12093_s23 = scalar_select %p10904_p13, 1, 0 }
  0x16   : > { %p9097_p1 = pneg %p10904_p13  ;;  %s109_s25 = sshll.u32 %s10819_s24, 4  ;;  %s110_s25 = int_to_ptr.vmem [resolvable:$true] %s109_s25 }
  0x17   : > { %s123_s27 = sand.u32 1, %s10813_s11   ;;  %s10689_s30 = scalar_lea.hbm %s12082_s0, 8192 }
  0x18   : > { %p10912_p2 = pnand %p9097_p1, %p12085_p4  ;;  %p10690_p3 = scmp.ne.s32.totalorder %s12082_s0, %s10689_s30 }
  0x19   : > { %p10696_p10 = scmp.lt.u32.totalorder %s10689_s30, %s12082_s0 }
  0x1a   : > { %p10691_p7 = pneg %p10912_p2 }
  0x1c   : > { %p10692_p8 = pnand %p10691_p7, %p10690_p3 }
  0x1e   : > { %p10693_p9 = pneg %p10692_p8 }
  0x20   : > { %p10698_p1 = pnand %p10696_p10, %p10693_p9 }
  0x22   : > { %10701 = shalt.err (!%p10698_p1)
}
  0x23   : > { %s10702_s7 = scalar_lea.vmem %s110_s25, 8192  ;;  %p10710_p11 = scmp.lt.s32.totalorder %s110_s25, %s110_s25 }
  0x24   : > { %p10703_p4 = scmp.ne.s32.totalorder %s110_s25, %s10702_s7  ;;  %p10711_p6 = scmp.lt.s32.totalorder %s10702_s7, %s10702_s7 }
  0x26   : > { %p10705_p0 = pnand %p10703_p4, %p10691_p7  ;;  %p10712_p13 = por %p10711_p6, %p10710_p11 }
  0x28   : > { %p10706_p12 = pneg %p10705_p0 }
  0x2a   : > { %p10713_p5 = pnand %p10712_p13, %p10706_p12 }
  0x2c   : > { %10716 = shalt.err (!%p10713_p5)
}
  0x2d   : > { %s10820_s8 = smov 4096   ;;  %s10821_s14 = smov 256  }
  0x2e   : > { %9100 = dma.hbm_to_vmem [thread:$0]  (!%p10912_p2), %s12082_s0, 8192, %s110_s25, [#allocation3], %s10820_s8, %s10820_s8, %s10821_s14  }
  0x2f   : > { %p12095_p3 = scmp.ne.s32.totalorder %s12089_s19, 0  ;;  %p12096_p4 = scmp.lt.s32.totalorder %s10817_s12, 8 }
  0x30   : > { %s7921_s28 = sshll.u32 %s123_s27, 13  ;;  %s8959_s29 = sshll.u32 %s10817_s12, 8 }
  0x31   : > { %p10939_p0 = pnand %p12096_p4, %p12095_p3  ;;  %s10947_s4 = scalar_lea.hbm %s12083_s1, %s8959_s29 }
  0x32   : > { %s127_s25 = scalar_lea.vmem [#allocation5], %s7921_s28  ;;  %s10951_s26 = scalar_lea.sflag [#allocation6], %s123_s27 }
  0x33   : > { %s134_s19 = sshll.u32 %s127_s25, 4  ;;  %s10717_s5 = scalar_lea.hbm %s10947_s4, 131072  ;;  %s10949_s19 = int_to_ptr.vmem [resolvable:$true] %s134_s19 }
  0x34   : > { %p10718_p5 = scmp.ne.s32.totalorder %s10947_s4, %s10717_s5  ;;  %p10719_p6 = pneg %p10939_p0 }
  0x35   : > { %s10722_s8 = scalar_lea.hbm %s12083_s1, 1048576  ;;  %p10723_p13 = scmp.lt.u32.totalorder %s10947_s4, %s12083_s1 }
  0x36   : > { %p10720_p11 = pnand %p10719_p6, %p10718_p5  ;;  %p10724_p2 = scmp.lt.u32.totalorder %s10722_s8, %s10717_s5 }
  0x37   : > { %p10726_p8 = scmp.lt.u32.totalorder %s10717_s5, %s10947_s4 }
  0x38   : > { %p10721_p12 = pneg %p10720_p11  ;;  %p10725_p7 = por %p10724_p2, %p10723_p13 }
  0x3a   : > { %p10727_p9 = por %p10726_p8, %p10725_p7 }
  0x3c   : > { %p10728_p10 = pnand %p10727_p9, %p10721_p12 }
  0x3e   : > { %10731 = shalt.err (!%p10728_p10)
}
  0x3f   : > { %s10732_s27 = scalar_lea.vmem %s10949_s19, 131072  ;;  %s10822_s28 = smov [#allocation5]  }
  0x40   : > { %p10733_p1 = scmp.ne.s32.totalorder %s10949_s19, %s10732_s27  ;;  %s10737_s29 = sshll.u32 %s10822_s28, 4  ;;  %s10738_s29 = int_to_ptr.vmem [resolvable:$false] %s10737_s29 }
  0x41   : > { %s10739_s30 = scalar_lea.vmem %s10738_s29, 262144  ;;  %p10740_p5 = scmp.lt.s32.totalorder %s10949_s19, %s10738_s29 }
  0x42   : > { %p10735_p3 = pnand %p10733_p1, %p10719_p6  ;;  %p10741_p11 = scmp.lt.s32.totalorder %s10739_s30, %s10732_s27 }
  0x44   : > { %p10736_p4 = pneg %p10735_p3  ;;  %p10742_p13 = por %p10741_p11, %p10740_p5 }
  0x46   : > { %p10743_p2 = pnand %p10742_p13, %p10736_p4 }
  0x48   : > { %10746 = shalt.err (!%p10743_p2)
}
  0x49   : > { %s10823_s3 = smov 2048   ;;  %s10824_s25 = smov 16  }
  0x4a   : > { %9104 = dma.hbm_to_vmem [thread:$0]  (!%p10939_p0), %s10947_s4, 131072, %s10949_s19, %s10951_s26, %s10823_s3, %s10821_s14, %s10824_s25  }
  0x4b   : > { %p12098_p6 = scmp.ne.s32.totalorder %s12093_s23, 0 }
  0x4c   : > { %p12099_p12 = scmp.eq.s32.totalorder (!%p12098_p6), %s10865_s13, 0 }
  0x4d   : > { %146 = sbr.rel (%p12098_p6) target bundleno = 1347 (0x543), region = 28 }
  0x54   : > { %10792 = dma.done.wait (%p12099_p12), [#allocation3], 8192   ;;  %p12100_p7 = pmov %p12099_p12 }
  0x55   : > { %s10987_s5 = sand.u32 1, %s10809_s10   ;;  %p12101_p0 = scmp.ne.s32.totalorder %s12090_s20, 0 }
  0x56   : > { %10794 = vsyncadd (%p12100_p7), [#allocation3], 4294959104  ;;  %s7926_s6 = sshll.u32 %s10987_s5, 13  ;;  %s153_s7 = scalar_lea.sflag [#allocation6], %s10987_s5 }
  0x57   : > { %s10991_s24 = scalar_lea.vmem [#allocation5], %s7926_s6 }
  0x58   : > { %10796 = dma.done.wait (%p12101_p0), %s153_s7, 131072  }
  0x59   : > { %10798 = vsyncadd (%p12101_p0), %s153_s7, 4294836224  ;;  %v9153_v0 = vld [vmem:[%s10991_s24 + $0x4] ss:$16 sps:$4 sm:$0xff]   ;;  %v9155_v1 = vld [vmem:[%s10991_s24 + $0xc] ss:$16 sps:$4 sm:$0xff]   ;;  %s7928_s20 = sshll.u32 %s10865_s13, 9 }
  0x5a   : > { %6432 = vmatprep.subr.bf16.mxu0 %v9153_v0  ;;  %v9157_v2 = vld [vmem:[%s10991_s24] ss:$16 sps:$4 sm:$0xff]   ;;  %v9158_v3 = vld [vmem:[%s10991_s24 + $0x8] ss:$16 sps:$4 sm:$0xff]   ;;  %7120 = vmatprep.subr.bf16.mxu1 %v9155_v1  ;;  %v9159_v4 = vld [vmem:[%s10991_s24 + $0x24] ss:$16 sps:$4 sm:$0xff]   ;;  %s12029_s17 = scalar_lea.hbm %s12084_s2, %s7928_s20 }
  0x5b   : > { %6433 = vmatpush1.bf16.msra.mxu0 %v9157_v2  ;;  %7121 = vmatpush1.bf16.msra.mxu1 %v9158_v3  ;;  %v9161_v5 = vld [vmem:[%s10991_s24 + $0x2c] ss:$16 sps:$4 sm:$0xff]   ;;  %v9163_v6 = vld [vmem:[%s10991_s24 + $0x20] ss:$16 sps:$4 sm:$0xff]   ;;  %v9164_v7 = vld [vmem:[%s10991_s24 + $0x28] ss:$16 sps:$4 sm:$0xff]  }
  0x5c   : > { %6434 = vmatprep.subr.bf16.mxu0 %v9159_v4  ;;  %7122 = vmatprep.subr.bf16.mxu1 %v9161_v5  ;;  %v9165_v8 = vld [vmem:[%s10991_s24 + $0x44] ss:$16 sps:$4 sm:$0xff]   ;;  %v9167_v9 = vld [vmem:[%s10991_s24 + $0x4c] ss:$16 sps:$4 sm:$0xff]   ;;  %v9169_v10 = vld [vmem:[%s10991_s24 + $0x40] ss:$16 sps:$4 sm:$0xff]  }
  0x5d   : > { %v9170_v11 = vld [vmem:[%s10991_s24 + $0x48] ss:$16 sps:$4 sm:$0xff]   ;;  %v9171_v12 = vld [vmem:[%s10991_s24 + $0x64] ss:$16 sps:$4 sm:$0xff]   ;;  %v9173_v13 = vld [vmem:[%s10991_s24 + $0x6c] ss:$16 sps:$4 sm:$0xff]  }
  0x5e   : > { %v9175_v14 = vld [vmem:[%s10991_s24 + $0x60] ss:$16 sps:$4 sm:$0xff]   ;;  %v9176_v15 = vld [vmem:[%s10991_s24 + $0x68] ss:$16 sps:$4 sm:$0xff]   ;;  %v9177_v16 = vld [vmem:[%s10991_s24 + $0x84] ss:$16 sps:$4 sm:$0xff]  }
  0x5f   : > { %6435 = vmatpush1.bf16.msra.mxu0 %v9163_v6  ;;  %7123 = vmatpush1.bf16.msra.mxu1 %v9164_v7  ;;  %v9179_v17 = vld [vmem:[%s10991_s24 + $0x8c] ss:$16 sps:$4 sm:$0xff]   ;;  %v9181_v18 = vld [vmem:[%s10991_s24 + $0x80] ss:$16 sps:$4 sm:$0xff]   ;;  %v9182_v19 = vld [vmem:[%s10991_s24 + $0x88] ss:$16 sps:$4 sm:$0xff]  }
  0x60   : > { %6436 = vmatprep.subr.bf16.mxu0 %v9165_v8  ;;  %7124 = vmatprep.subr.bf16.mxu1 %v9167_v9  ;;  %v9183_v20 = vld [vmem:[%s10991_s24 + $0xa4] ss:$16 sps:$4 sm:$0xff]   ;;  %v9185_v21 = vld [vmem:[%s10991_s24 + $0xac] ss:$16 sps:$4 sm:$0xff]   ;;  %v9187_v22 = vld [vmem:[%s10991_s24 + $0xa0] ss:$16 sps:$4 sm:$0xff]  }
  0x61   : > { %v9188_v23 = vld [vmem:[%s10991_s24 + $0xa8] ss:$16 sps:$4 sm:$0xff]   ;;  %v9189_v24 = vld [vmem:[%s10991_s24 + $0xc4] ss:$16 sps:$4 sm:$0xff]   ;;  %v9191_v25 = vld [vmem:[%s10991_s24 + $0xcc] ss:$16 sps:$4 sm:$0xff]  }
  0x62   : > { %v9193_v26 = vld [vmem:[%s10991_s24 + $0xc0] ss:$16 sps:$4 sm:$0xff]   ;;  %v9194_v27 = vld [vmem:[%s10991_s24 + $0xc8] ss:$16 sps:$4 sm:$0xff]   ;;  %v9195_v28 = vld [vmem:[%s10991_s24 + $0xe4] ss:$16 sps:$4 sm:$0xff]  }
  0x63   : > { %6437 = vmatpush1.bf16.msra.mxu0 %v9169_v10  ;;  %7125 = vmatpush1.bf16.msra.mxu1 %v9170_v11  ;;  %v9197_v29 = vld [vmem:[%s10991_s24 + $0xec] ss:$16 sps:$4 sm:$0xff]   ;;  %v9199_v30 = vld [vmem:[%s10991_s24 + $0xe0] ss:$16 sps:$4 sm:$0xff]   ;;  %v9200_v31 = vld [vmem:[%s10991_s24 + $0xe8] ss:$16 sps:$4 sm:$0xff]  }
  0x64   : > { %6438 = vmatprep.subr.bf16.mxu0 %v9171_v12  ;;  %7126 = vmatprep.subr.bf16.mxu1 %v9173_v13  ;;  %v9201_v32 = vld [vmem:[%s10991_s24 + $0x104] ss:$16 sps:$4 sm:$0xff]   ;;  %v9203_v33 = vld [vmem:[%s10991_s24 + $0x10c] ss:$16 sps:$4 sm:$0xff]   ;;  %v9205_v34 = vld [vmem:[%s10991_s24 + $0x100] ss:$16 sps:$4 sm:$0xff]  }
  0x65   : > { %v9206_v35 = vld [vmem:[%s10991_s24 + $0x108] ss:$16 sps:$4 sm:$0xff]   ;;  %v9207_v36 = vld [vmem:[%s10991_s24 + $0x124] ss:$16 sps:$4 sm:$0xff]   ;;  %v9209_v37 = vld [vmem:[%s10991_s24 + $0x12c] ss:$16 sps:$4 sm:$0xff]  }
  0x66   : > { %v9211_v38 = vld [vmem:[%s10991_s24 + $0x120] ss:$16 sps:$4 sm:$0xff]   ;;  %v9212_v39 = vld [vmem:[%s10991_s24 + $0x128] ss:$16 sps:$4 sm:$0xff]   ;;  %v9213_v40 = vld [vmem:[%s10991_s24 + $0x144] ss:$16 sps:$4 sm:$0xff]  }
  0x67   : > { %6439 = vmatpush1.bf16.msra.mxu0 %v9175_v14  ;;  %7127 = vmatpush1.bf16.msra.mxu1 %v9176_v15  ;;  %v9215_v41 = vld [vmem:[%s10991_s24 + $0x14c] ss:$16 sps:$4 sm:$0xff]   ;;  %v9217_v42 = vld [vmem:[%s10991_s24 + $0x140] ss:$16 sps:$4 sm:$0xff]   ;;  %v9218_v43 = vld [vmem:[%s10991_s24 + $0x148] ss:$16 sps:$4 sm:$0xff]  }
  0x68   : > { %6440 = vmatprep.subr.bf16.mxu0 %v9177_v16  ;;  %7128 = vmatprep.subr.bf16.mxu1 %v9179_v17  ;;  %v9219_v44 = vld [vmem:[%s10991_s24 + $0x164] ss:$16 sps:$4 sm:$0xff]   ;;  %v9221_v45 = vld [vmem:[%s10991_s24 + $0x16c] ss:$16 sps:$4 sm:$0xff]   ;;  %v9223_v48 = vld [vmem:[%s10991_s24 + $0x160] ss:$16 sps:$4 sm:$0xff]  }
  0x69   : > { %v193_v46 = vld [vmem:[#allocation2 + $0x8] sm:$0xff]  ;;  %v9225_v51 = vld [vmem:[%s10991_s24 + $0x184] ss:$16 sps:$4 sm:$0xff]   ;;  %v9229_v53 = vld [vmem:[%s10991_s24 + $0x180] ss:$16 sps:$4 sm:$0xff]   ;;  %s180_s23 = sshra.s32 %s7928_s20, 7 }
  0x6a   : > { %v225_v47 = vld [vmem:[#allocation2 + $0x108] sm:$0xff]  ;;  %v9231_v55 = vld [vmem:[%s10991_s24 + $0x1a4] ss:$16 sps:$4 sm:$0xff]   ;;  %v9235_v57 = vld [vmem:[%s10991_s24 + $0x1a0] ss:$16 sps:$4 sm:$0xff]   ;;  %s7929_s14 = sshll.u32 %s180_s23, 3 }
  0x6b   : > { %6441 = vmatpush1.bf16.msra.mxu0 %v9181_v18  ;;  %7129 = vmatpush1.bf16.msra.mxu1 %v9182_v19  ;;  %v9224_v49 = vld [vmem:[%s10991_s24 + $0x168] ss:$16 sps:$4 sm:$0xff]   ;;  %v257_v50 = vpack.c.bf16 %v225_v47, %v193_v46  ;;  %v9227_v52 = vld [vmem:[%s10991_s24 + $0x18c] ss:$16 sps:$4 sm:$0xff]   ;;  %v9237_v59 = vld [vmem:[%s10991_s24 + $0x1c4] ss:$16 sps:$4 sm:$0xff]  }
  0x6c   : > { %6442 = vmatprep.subr.bf16.mxu0 %v9183_v20  ;;  %7130 = vmatprep.subr.bf16.mxu1 %v9185_v21  ;;  %v9230_v54 = vld [vmem:[%s10991_s24 + $0x188] ss:$16 sps:$4 sm:$0xff]   ;;  %v9233_v56 = vld [vmem:[%s10991_s24 + $0x1ac] ss:$16 sps:$4 sm:$0xff]   ;;  %v9241_v61 = vld [vmem:[%s10991_s24 + $0x1c0] ss:$16 sps:$4 sm:$0xff]  }
  0x6d   : > { %6464 = vmatprep.mubr.bf16.mxu0 %v257_v50  ;;  %7152 = vmatprep.mubr.bf16.mxu1 %v257_v50  ;;  %v9236_v58 = vld [vmem:[%s10991_s24 + $0x1a8] ss:$16 sps:$4 sm:$0xff]   ;;  %v9239_v60 = vld [vmem:[%s10991_s24 + $0x1cc] ss:$16 sps:$4 sm:$0xff]   ;;  %v9243_v63 = vld [vmem:[%s10991_s24 + $0x1e4] ss:$16 sps:$4 sm:$0xff]  }
  0x6e   : > { %v9242_v62 = vld [vmem:[%s10991_s24 + $0x1c8] ss:$16 sps:$4 sm:$0xff]   ;;  %v9245_v0 = vld [vmem:[%s10991_s24 + $0x1ec] ss:$16 sps:$4 sm:$0xff]   ;;  %v9247_v1 = vld [vmem:[%s10991_s24 + $0x1e0] ss:$16 sps:$4 sm:$0xff]  }
  0x6f   : > { %6443 = vmatpush1.bf16.msra.mxu0 %v9187_v22  ;;  %7131 = vmatpush1.bf16.msra.mxu1 %v9188_v23  ;;  %v9248_v2 = vld [vmem:[%s10991_s24 + $0x1e8] ss:$16 sps:$4 sm:$0xff]   ;;  %v9251_v3 = vld [vmem:[%s10991_s24 + $0x204] ss:$16 sps:$4 sm:$0xff]   ;;  %v9254_v6 = vld [vmem:[%s10991_s24 + $0x20c] ss:$16 sps:$4 sm:$0xff]  }
  0x70   : > { %6444 = vmatprep.subr.bf16.mxu0 %v9189_v24  ;;  %7132 = vmatprep.subr.bf16.mxu1 %v9191_v25  ;;  %v192_v4 = vld [vmem:[#allocation2] sm:$0xff]  ;;  %v9252_v8 = vld [vmem:[%s10991_s24 + $0x208] ss:$16 sps:$4 sm:$0xff]   ;;  %v9260_v11 = vld [vmem:[%s10991_s24 + $0x22c] ss:$16 sps:$4 sm:$0xff]   ;;  %s7927_s4 = sshll.u32 %s10987_s5, 6 }
  0x71   : > { %v224_v5 = vld [vmem:[#allocation2 + $0x100] sm:$0xff]  ;;  %v9258_v13 = vld [vmem:[%s10991_s24 + $0x228] ss:$16 sps:$4 sm:$0xff]   ;;  %v9266_v15 = vld [vmem:[%s10991_s24 + $0x24c] ss:$16 sps:$4 sm:$0xff]   ;;  %s183_s19 = scalar_lea.vmem [#allocation2], %s7929_s14 }
  0x72   : > { %v9249_v7 = vld [vmem:[%s10991_s24 + $0x200] ss:$16 sps:$4 sm:$0xff]   ;;  %v256_v9 = vpack.c.bf16 %v224_v5, %v192_v4  ;;  %v9257_v10 = vld [vmem:[%s10991_s24 + $0x224] ss:$16 sps:$4 sm:$0xff]   ;;  %v9264_v17 = vld [vmem:[%s10991_s24 + $0x248] ss:$16 sps:$4 sm:$0xff]  }
  0x73   : > { %6445 = vmatpush1.bf16.msra.mxu0 %v9193_v26  ;;  %7133 = vmatpush1.bf16.msra.mxu1 %v9194_v27  ;;  %v9255_v12 = vld [vmem:[%s10991_s24 + $0x220] ss:$16 sps:$4 sm:$0xff]   ;;  %v9263_v14 = vld [vmem:[%s10991_s24 + $0x244] ss:$16 sps:$4 sm:$0xff]   ;;  %v9272_v19 = vld [vmem:[%s10991_s24 + $0x26c] ss:$16 sps:$4 sm:$0xff]  }
  0x74   : > { %6446 = vmatprep.subr.bf16.mxu0 %v9195_v28  ;;  %7134 = vmatprep.subr.bf16.mxu1 %v9197_v29  ;;  %v9261_v16 = vld [vmem:[%s10991_s24 + $0x240] ss:$16 sps:$4 sm:$0xff]   ;;  %v9269_v18 = vld [vmem:[%s10991_s24 + $0x264] ss:$16 sps:$4 sm:$0xff]   ;;  %v9270_v21 = vld [vmem:[%s10991_s24 + $0x268] ss:$16 sps:$4 sm:$0xff]  }
  0x75   : > { %v9267_v20 = vld [vmem:[%s10991_s24 + $0x260] ss:$16 sps:$4 sm:$0xff]   ;;  %v9275_v22 = vld [vmem:[%s10991_s24 + $0x284] ss:$16 sps:$4 sm:$0xff]   ;;  %v9278_v23 = vld [vmem:[%s10991_s24 + $0x28c] ss:$16 sps:$4 sm:$0xff]  }
  0x76   : > { %v9273_v24 = vld [vmem:[%s10991_s24 + $0x280] ss:$16 sps:$4 sm:$0xff]   ;;  %v9276_v25 = vld [vmem:[%s10991_s24 + $0x288] ss:$16 sps:$4 sm:$0xff]   ;;  %v9281_v26 = vld [vmem:[%s10991_s24 + $0x2a4] ss:$16 sps:$4 sm:$0xff]  }
  0x77   : > { %6447 = vmatpush1.bf16.msra.mxu0 %v9199_v30  ;;  %7135 = vmatpush1.bf16.msra.mxu1 %v9200_v31  ;;  %v9284_v27 = vld [vmem:[%s10991_s24 + $0x2ac] ss:$16 sps:$4 sm:$0xff]   ;;  %v9279_v28 = vld [vmem:[%s10991_s24 + $0x2a0] ss:$16 sps:$4 sm:$0xff]   ;;  %v9282_v29 = vld [vmem:[%s10991_s24 + $0x2a8] ss:$16 sps:$4 sm:$0xff]  }
  0x78   : > { %6448 = vmatprep.subr.bf16.mxu0 %v9201_v32  ;;  %7136 = vmatprep.subr.bf16.mxu1 %v9203_v33  ;;  %v9287_v30 = vld [vmem:[%s10991_s24 + $0x2c4] ss:$16 sps:$4 sm:$0xff]   ;;  %v9290_v31 = vld [vmem:[%s10991_s24 + $0x2cc] ss:$16 sps:$4 sm:$0xff]   ;;  %v9303_v47 = vld [vmem:[%s10991_s24 + $0x320] ss:$16 sps:$4 sm:$0xff]  }
  0x79   : > { %v195_v32 = vld [vmem:[#allocation2 + $0x18] sm:$0xff]  ;;  %v9341_v5 = vld [vmem:[%s10991_s24 + $0x3e4] ss:$16 sps:$4 sm:$0xff]   ;;  %s12023_s26 = scalar_lea.vmem [#allocation7], %s7927_s4  ;;  %s7817_s27 = scalar_lea.sflag [#allocation4], %s10987_s5 }
  0x7a   : > { %v227_v33 = vld [vmem:[#allocation2 + $0x118] sm:$0xff]  ;;  %s7830_s8 = sshll.u32 %s12023_s26, 4  ;;  %p12102_p9 = scmp.ne.s32.totalorder %s12091_s21, 0  ;;  %s12031_s8 = int_to_ptr.vmem [resolvable:$true] %s7830_s8 }
  0x7b   : > { %6449 = vmatpush1.bf16.msra.mxu0 %v9205_v34  ;;  %7137 = vmatpush1.bf16.msra.mxu1 %v9206_v35  ;;  %v9285_v34 = vld [vmem:[%s10991_s24 + $0x2c0] ss:$16 sps:$4 sm:$0xff]   ;;  %v9288_v35 = vld [vmem:[%s10991_s24 + $0x2c8] ss:$16 sps:$4 sm:$0xff]   ;;  %v9308_v46 = vld [vmem:[%s10991_s24 + $0x32c] ss:$16 sps:$4 sm:$0xff]  }
  0x7c   : > { %6450 = vmatprep.subr.bf16.mxu0 %v9207_v36  ;;  %7138 = vmatprep.subr.bf16.mxu1 %v9209_v37  ;;  %v259_v36 = vpack.c.bf16 %v227_v33, %v195_v32  ;;  %v9293_v37 = vld [vmem:[%s10991_s24 + $0x2e4] ss:$16 sps:$4 sm:$0xff]   ;;  %v9314_v50 = vld [vmem:[%s10991_s24 + $0x34c] ss:$16 sps:$4 sm:$0xff]   ;;  %v9336_v4 = vld [vmem:[%s10991_s24 + $0x3c8] ss:$16 sps:$4 sm:$0xff]  }
  0x7d   : > { %v9374_v32 = vld [vmem:[%s10991_s24 + $0x48c] ss:$16 sps:$4 sm:$0xff]   ;;  %v9369_v33 = vld [vmem:[%s10991_s24 + $0x480] ss:$16 sps:$4 sm:$0xff]   ;;  %s10747_s28 = scalar_lea.vmem %s12031_s8, 1024  ;;  %s10825_s29 = smov [#allocation7]  }
  0x7e   : > { %p10748_p8 = scmp.ne.s32.totalorder %s12031_s8, %s10747_s28  ;;  %s10751_s30 = sshll.u32 %s10825_s29, 4  ;;  %s10752_s30 = int_to_ptr.vmem [resolvable:$false] %s10751_s30 }
  0x7f   : > { %6451 = vmatpush1.bf16.msra.mxu0 %v9211_v38  ;;  %7139 = vmatpush1.bf16.msra.mxu1 %v9212_v39  ;;  %v9296_v38 = vld [vmem:[%s10991_s24 + $0x2ec] ss:$16 sps:$4 sm:$0xff]   ;;  %v9291_v39 = vld [vmem:[%s10991_s24 + $0x2e0] ss:$16 sps:$4 sm:$0xff]   ;;  %s10753_s3 = scalar_lea.vmem %s10752_s30, 2048  ;;  %p10754_p3 = scmp.lt.s32.totalorder %s12031_s8, %s10752_s30 }
  0x80   : > { %6452 = vmatprep.subr.bf16.mxu0 %v9213_v40  ;;  %7140 = vmatprep.subr.bf16.mxu1 %v9215_v41  ;;  %v9294_v40 = vld [vmem:[%s10991_s24 + $0x2e8] ss:$16 sps:$4 sm:$0xff]   ;;  %v9299_v41 = vld [vmem:[%s10991_s24 + $0x304] ss:$16 sps:$4 sm:$0xff]   ;;  %p10749_p10 = pnand %p10748_p8, %p12102_p9  ;;  %p10755_p4 = scmp.lt.s32.totalorder %s10753_s3, %s10747_s28 }
  0x82   : > { %p10750_p1 = pneg %p10749_p10  ;;  %p10756_p5 = por %p10755_p4, %p10754_p3 }
  0x83   : > { %6453 = vmatpush1.bf16.msra.mxu0 %v9217_v42  ;;  %7141 = vmatpush1.bf16.msra.mxu1 %v9218_v43  ;;  %v9302_v42 = vld [vmem:[%s10991_s24 + $0x30c] ss:$16 sps:$4 sm:$0xff]   ;;  %v9297_v43 = vld [vmem:[%s10991_s24 + $0x300] ss:$16 sps:$4 sm:$0xff]  }
  0x84   : > { %6454 = vmatprep.subr.bf16.mxu0 %v9219_v44  ;;  %7142 = vmatprep.subr.bf16.mxu1 %v9221_v45  ;;  %v9300_v44 = vld [vmem:[%s10991_s24 + $0x308] ss:$16 sps:$4 sm:$0xff]   ;;  %v9305_v45 = vld [vmem:[%s10991_s24 + $0x324] ss:$16 sps:$4 sm:$0xff]   ;;  %p10757_p11 = pnand %p10756_p5, %p10750_p1 }
  0x87   : > { %6455 = vmatpush1.bf16.msra.mxu0 %v9223_v48  ;;  %7143 = vmatpush1.bf16.msra.mxu1 %v9224_v49  ;;  %v9306_v48 = vld [vmem:[%s10991_s24 + $0x328] ss:$16 sps:$4 sm:$0xff]   ;;  %v9311_v49 = vld [vmem:[%s10991_s24 + $0x344] ss:$16 sps:$4 sm:$0xff]  }
  0x88   : > { %6456 = vmatprep.subr.bf16.mxu0 %v9225_v51  ;;  %7144 = vmatprep.subr.bf16.mxu1 %v9227_v52  ;;  %v9309_v51 = vld [vmem:[%s10991_s24 + $0x340] ss:$16 sps:$4 sm:$0xff]   ;;  %v9312_v52 = vld [vmem:[%s10991_s24 + $0x348] ss:$16 sps:$4 sm:$0xff]  }
  0x8b   : > { %6457 = vmatpush1.bf16.msra.mxu0 %v9229_v53  ;;  %7145 = vmatpush1.bf16.msra.mxu1 %v9230_v54  ;;  %v9317_v53 = vld [vmem:[%s10991_s24 + $0x364] ss:$16 sps:$4 sm:$0xff]   ;;  %v9320_v54 = vld [vmem:[%s10991_s24 + $0x36c] ss:$16 sps:$4 sm:$0xff]  }
  0x8c   : > { %6458 = vmatprep.subr.bf16.mxu0 %v9231_v55  ;;  %7146 = vmatprep.subr.bf16.mxu1 %v9233_v56  ;;  %v9315_v55 = vld [vmem:[%s10991_s24 + $0x360] ss:$16 sps:$4 sm:$0xff]   ;;  %v9318_v56 = vld [vmem:[%s10991_s24 + $0x368] ss:$16 sps:$4 sm:$0xff]  }
  0x8f   : > { %6459 = vmatpush1.bf16.msra.mxu0 %v9235_v57  ;;  %7147 = vmatpush1.bf16.msra.mxu1 %v9236_v58  ;;  %v9323_v57 = vld [vmem:[%s10991_s24 + $0x384] ss:$16 sps:$4 sm:$0xff]   ;;  %v9326_v58 = vld [vmem:[%s10991_s24 + $0x38c] ss:$16 sps:$4 sm:$0xff]  }
  0x90   : > { %6460 = vmatprep.subr.bf16.mxu0 %v9237_v59  ;;  %7148 = vmatprep.subr.bf16.mxu1 %v9239_v60  ;;  %v9321_v59 = vld [vmem:[%s10991_s24 + $0x380] ss:$16 sps:$4 sm:$0xff]   ;;  %v9324_v60 = vld [vmem:[%s10991_s24 + $0x388] ss:$16 sps:$4 sm:$0xff]  }
  0x93   : > { %6461 = vmatpush1.bf16.msra.mxu0 %v9241_v61  ;;  %7149 = vmatpush1.bf16.msra.mxu1 %v9242_v62  ;;  %v9329_v61 = vld [vmem:[%s10991_s24 + $0x3a4] ss:$16 sps:$4 sm:$0xff]   ;;  %v9332_v62 = vld [vmem:[%s10991_s24 + $0x3ac] ss:$16 sps:$4 sm:$0xff]  }
  0x94   : > { %6462 = vmatprep.subr.bf16.mxu0 %v9243_v63  ;;  %7150 = vmatprep.subr.bf16.mxu1 %v9245_v0  ;;  %v9327_v63 = vld [vmem:[%s10991_s24 + $0x3a0] ss:$16 sps:$4 sm:$0xff]   ;;  %v9330_v0 = vld [vmem:[%s10991_s24 + $0x3a8] ss:$16 sps:$4 sm:$0xff]  }
  0x97   : > { %6463 = vmatpush1.bf16.msra.mxu0 %v9247_v1  ;;  %7151 = vmatpush1.bf16.msra.mxu1 %v9248_v2  ;;  %v9335_v1 = vld [vmem:[%s10991_s24 + $0x3c4] ss:$16 sps:$4 sm:$0xff]   ;;  %v9338_v2 = vld [vmem:[%s10991_s24 + $0x3cc] ss:$16 sps:$4 sm:$0xff]  }
  0x98   : > { %6475 = vmatprep.subr.bf16.mxu0 %v9251_v3  ;;  %7163 = vmatprep.subr.bf16.mxu1 %v9254_v6  ;;  %v9333_v3 = vld [vmem:[%s10991_s24 + $0x3c0] ss:$16 sps:$4 sm:$0xff]   ;;  %v9344_v6 = vld [vmem:[%s10991_s24 + $0x3ec] ss:$16 sps:$4 sm:$0xff]  }
  0x9a   : > { %6465 = vmatmul.mubr.bf16.vlgmr.msra.gmra.mrb[0].mxu0 %v256_v9  ;;  %7153 = vmatmul.mubr.bf16.vlgmr.msra.gmra.mrb[0].mxu1 %v256_v9  ;;  %v9347_v9 = vld [vmem:[%s10991_s24 + $0x404] ss:$16 sps:$4 sm:$0xff]  }
  0x9b   : > { %6476 = vmatpush1.bf16.msra.mxu0 %v9249_v7  ;;  %7164 = vmatpush1.bf16.msra.mxu1 %v9252_v8  ;;  %v9339_v7 = vld [vmem:[%s10991_s24 + $0x3e0] ss:$16 sps:$4 sm:$0xff]   ;;  %v9342_v8 = vld [vmem:[%s10991_s24 + $0x3e8] ss:$16 sps:$4 sm:$0xff]  }
  0x9c   : > { %6477 = vmatprep.subr.bf16.mxu0 %v9257_v10  ;;  %7165 = vmatprep.subr.bf16.mxu1 %v9260_v11  ;;  %v194_v10 = vld [vmem:[#allocation2 + $0x10] sm:$0xff] }
  0x9d   : > { %6507 = vmatprep.mubr.bf16.mxu0 %v259_v36  ;;  %7195 = vmatprep.mubr.bf16.mxu1 %v259_v36  ;;  %v226_v11 = vld [vmem:[#allocation2 + $0x110] sm:$0xff]  ;;  %v9380_v36 = vld [vmem:[%s10991_s24 + $0x4ac] ss:$16 sps:$4 sm:$0xff]  }
  0x9f   : > { %6478 = vmatpush1.bf16.msra.mxu0 %v9255_v12  ;;  %7166 = vmatpush1.bf16.msra.mxu1 %v9258_v13  ;;  %v9350_v12 = vld [vmem:[%s10991_s24 + $0x40c] ss:$16 sps:$4 sm:$0xff]   ;;  %v9345_v13 = vld [vmem:[%s10991_s24 + $0x400] ss:$16 sps:$4 sm:$0xff]  }
  0xa0   : > { %6479 = vmatprep.subr.bf16.mxu0 %v9263_v14  ;;  %7167 = vmatprep.subr.bf16.mxu1 %v9266_v15  ;;  %v9348_v14 = vld [vmem:[%s10991_s24 + $0x408] ss:$16 sps:$4 sm:$0xff]   ;;  %v258_v15 = vpack.c.bf16 %v226_v11, %v194_v10  ;;  %v9437_v11 = vld [vmem:[%s10991_s24 + $0x5e4] ss:$16 sps:$4 sm:$0xff]  }
  0xa1   : > { %v9432_v10 = vld [vmem:[%s10991_s24 + $0x5c8] ss:$16 sps:$4 sm:$0xff]  }
  0xa3   : > { %6480 = vmatpush1.bf16.msra.mxu0 %v9261_v16  ;;  %7168 = vmatpush1.bf16.msra.mxu1 %v9264_v17  ;;  %v9353_v16 = vld [vmem:[%s10991_s24 + $0x424] ss:$16 sps:$4 sm:$0xff]   ;;  %v9356_v17 = vld [vmem:[%s10991_s24 + $0x42c] ss:$16 sps:$4 sm:$0xff]  }
  0xa4   : > { %6481 = vmatprep.subr.bf16.mxu0 %v9269_v18  ;;  %7169 = vmatprep.subr.bf16.mxu1 %v9272_v19  ;;  %v197_v18 = vld [vmem:[#allocation2 + $0x28] sm:$0xff] }
  0xa5   : > { %v229_v19 = vld [vmem:[#allocation2 + $0x128] sm:$0xff] }
  0xa7   : > { %6482 = vmatpush1.bf16.msra.mxu0 %v9267_v20  ;;  %7170 = vmatpush1.bf16.msra.mxu1 %v9270_v21  ;;  %v9351_v20 = vld [vmem:[%s10991_s24 + $0x420] ss:$16 sps:$4 sm:$0xff]   ;;  %v9354_v21 = vld [vmem:[%s10991_s24 + $0x428] ss:$16 sps:$4 sm:$0xff]  }
  0xa8   : > { %6483 = vmatprep.subr.bf16.mxu0 %v9275_v22  ;;  %7171 = vmatprep.subr.bf16.mxu1 %v9278_v23  ;;  %v261_v22 = vpack.c.bf16 %v229_v19, %v197_v18  ;;  %v9359_v23 = vld [vmem:[%s10991_s24 + $0x444] ss:$16 sps:$4 sm:$0xff]   ;;  %v9446_v18 = vld [vmem:[%s10991_s24 + $0x60c] ss:$16 sps:$4 sm:$0xff]   ;;  %v9441_v19 = vld [vmem:[%s10991_s24 + $0x600] ss:$16 sps:$4 sm:$0xff]  }
  0xab   : > { %6484 = vmatpush1.bf16.msra.mxu0 %v9273_v24  ;;  %7172 = vmatpush1.bf16.msra.mxu1 %v9276_v25  ;;  %v9362_v24 = vld [vmem:[%s10991_s24 + $0x44c] ss:$16 sps:$4 sm:$0xff]   ;;  %v9357_v25 = vld [vmem:[%s10991_s24 + $0x440] ss:$16 sps:$4 sm:$0xff]  }
  0xac   : > { %6485 = vmatprep.subr.bf16.mxu0 %v9281_v26  ;;  %7173 = vmatprep.subr.bf16.mxu1 %v9284_v27  ;;  %v9360_v26 = vld [vmem:[%s10991_s24 + $0x448] ss:$16 sps:$4 sm:$0xff]   ;;  %v9365_v27 = vld [vmem:[%s10991_s24 + $0x464] ss:$16 sps:$4 sm:$0xff]  }
  0xaf   : > { %6486 = vmatpush1.bf16.msra.mxu0 %v9279_v28  ;;  %7174 = vmatpush1.bf16.msra.mxu1 %v9282_v29  ;;  %v9368_v28 = vld [vmem:[%s10991_s24 + $0x46c] ss:$16 sps:$4 sm:$0xff]   ;;  %v9363_v29 = vld [vmem:[%s10991_s24 + $0x460] ss:$16 sps:$4 sm:$0xff]  }
  0xb0   : > { %6487 = vmatprep.subr.bf16.mxu0 %v9287_v30  ;;  %7175 = vmatprep.subr.bf16.mxu1 %v9290_v31  ;;  %v9366_v30 = vld [vmem:[%s10991_s24 + $0x468] ss:$16 sps:$4 sm:$0xff]   ;;  %v9371_v31 = vld [vmem:[%s10991_s24 + $0x484] ss:$16 sps:$4 sm:$0xff]  }
  0xb3   : > { %6488 = vmatpush1.bf16.msra.mxu0 %v9285_v34  ;;  %7176 = vmatpush1.bf16.msra.mxu1 %v9288_v35  ;;  %v9372_v34 = vld [vmem:[%s10991_s24 + $0x488] ss:$16 sps:$4 sm:$0xff]   ;;  %v9377_v35 = vld [vmem:[%s10991_s24 + $0x4a4] ss:$16 sps:$4 sm:$0xff]  }
  0xb4   : > { %6489 = vmatprep.subr.bf16.mxu0 %v9293_v37  ;;  %7177 = vmatprep.subr.bf16.mxu1 %v9296_v38  ;;  %v9375_v37 = vld [vmem:[%s10991_s24 + $0x4a0] ss:$16 sps:$4 sm:$0xff]   ;;  %v9378_v38 = vld [vmem:[%s10991_s24 + $0x4a8] ss:$16 sps:$4 sm:$0xff]  }
  0xb7   : > { %6490 = vmatpush1.bf16.msra.mxu0 %v9291_v39  ;;  %7178 = vmatpush1.bf16.msra.mxu1 %v9294_v40  ;;  %v9383_v39 = vld [vmem:[%s10991_s24 + $0x4c4] ss:$16 sps:$4 sm:$0xff]   ;;  %v9386_v40 = vld [vmem:[%s10991_s24 + $0x4cc] ss:$16 sps:$4 sm:$0xff]  }
  0xb8   : > { %6491 = vmatprep.subr.bf16.mxu0 %v9299_v41  ;;  %7179 = vmatprep.subr.bf16.mxu1 %v9302_v42  ;;  %v9381_v41 = vld [vmem:[%s10991_s24 + $0x4c0] ss:$16 sps:$4 sm:$0xff]   ;;  %v9384_v42 = vld [vmem:[%s10991_s24 + $0x4c8] ss:$16 sps:$4 sm:$0xff]  }
  0xbb   : > { %6492 = vmatpush1.bf16.msra.mxu0 %v9297_v43  ;;  %7180 = vmatpush1.bf16.msra.mxu1 %v9300_v44  ;;  %v9389_v43 = vld [vmem:[%s10991_s24 + $0x4e4] ss:$16 sps:$4 sm:$0xff]   ;;  %v9392_v44 = vld [vmem:[%s10991_s24 + $0x4ec] ss:$16 sps:$4 sm:$0xff]  }
  0xbc   : > { %6493 = vmatprep.subr.bf16.mxu0 %v9305_v45  ;;  %7181 = vmatprep.subr.bf16.mxu1 %v9308_v46  ;;  %v9387_v45 = vld [vmem:[%s10991_s24 + $0x4e0] ss:$16 sps:$4 sm:$0xff]   ;;  %v9390_v46 = vld [vmem:[%s10991_s24 + $0x4e8] ss:$16 sps:$4 sm:$0xff]  }
  0xbf   : > { %6494 = vmatpush1.bf16.msra.mxu0 %v9303_v47  ;;  %7182 = vmatpush1.bf16.msra.mxu1 %v9306_v48  ;;  %v9395_v47 = vld [vmem:[%s10991_s24 + $0x504] ss:$16 sps:$4 sm:$0xff]   ;;  %v9398_v48 = vld [vmem:[%s10991_s24 + $0x50c] ss:$16 sps:$4 sm:$0xff]  }
  0xc0   : > { %6495 = vmatprep.subr.bf16.mxu0 %v9311_v49  ;;  %7183 = vmatprep.subr.bf16.mxu1 %v9314_v50  ;;  %v9393_v49 = vld [vmem:[%s10991_s24 + $0x500] ss:$16 sps:$4 sm:$0xff]   ;;  %v9396_v50 = vld [vmem:[%s10991_s24 + $0x508] ss:$16 sps:$4 sm:$0xff]  }
  0xc3   : > { %6496 = vmatpush1.bf16.msra.mxu0 %v9309_v51  ;;  %7184 = vmatpush1.bf16.msra.mxu1 %v9312_v52  ;;  %v9401_v51 = vld [vmem:[%s10991_s24 + $0x524] ss:$16 sps:$4 sm:$0xff]   ;;  %v9404_v52 = vld [vmem:[%s10991_s24 + $0x52c] ss:$16 sps:$4 sm:$0xff]  }
  0xc4   : > { %6497 = vmatprep.subr.bf16.mxu0 %v9317_v53  ;;  %7185 = vmatprep.subr.bf16.mxu1 %v9320_v54  ;;  %v9399_v53 = vld [vmem:[%s10991_s24 + $0x520] ss:$16 sps:$4 sm:$0xff]   ;;  %v9402_v54 = vld [vmem:[%s10991_s24 + $0x528] ss:$16 sps:$4 sm:$0xff]  }
  0xc7   : > { %6498 = vmatpush1.bf16.msra.mxu0 %v9315_v55  ;;  %7186 = vmatpush1.bf16.msra.mxu1 %v9318_v56  ;;  %v9407_v55 = vld [vmem:[%s10991_s24 + $0x544] ss:$16 sps:$4 sm:$0xff]   ;;  %v9410_v56 = vld [vmem:[%s10991_s24 + $0x54c] ss:$16 sps:$4 sm:$0xff]  }
  0xc8   : > { %6499 = vmatprep.subr.bf16.mxu0 %v9323_v57  ;;  %7187 = vmatprep.subr.bf16.mxu1 %v9326_v58  ;;  %v9405_v57 = vld [vmem:[%s10991_s24 + $0x540] ss:$16 sps:$4 sm:$0xff]   ;;  %v9408_v58 = vld [vmem:[%s10991_s24 + $0x548] ss:$16 sps:$4 sm:$0xff]  }
  0xcb   : > { %6500 = vmatpush1.bf16.msra.mxu0 %v9321_v59  ;;  %7188 = vmatpush1.bf16.msra.mxu1 %v9324_v60  ;;  %v9413_v59 = vld [vmem:[%s10991_s24 + $0x564] ss:$16 sps:$4 sm:$0xff]   ;;  %v9416_v60 = vld [vmem:[%s10991_s24 + $0x56c] ss:$16 sps:$4 sm:$0xff]  }
  0xcc   : > { %6501 = vmatprep.subr.bf16.mxu0 %v9329_v61  ;;  %7189 = vmatprep.subr.bf16.mxu1 %v9332_v62  ;;  %v9411_v61 = vld [vmem:[%s10991_s24 + $0x560] ss:$16 sps:$4 sm:$0xff]   ;;  %v9414_v62 = vld [vmem:[%s10991_s24 + $0x568] ss:$16 sps:$4 sm:$0xff]  }
  0xcf   : > { %6502 = vmatpush1.bf16.msra.mxu0 %v9327_v63  ;;  %7190 = vmatpush1.bf16.msra.mxu1 %v9330_v0  ;;  %v9419_v63 = vld [vmem:[%s10991_s24 + $0x584] ss:$16 sps:$4 sm:$0xff]   ;;  %v9422_v0 = vld [vmem:[%s10991_s24 + $0x58c] ss:$16 sps:$4 sm:$0xff]  }
  0xd0   : > { %6503 = vmatprep.subr.bf16.mxu0 %v9335_v1  ;;  %7191 = vmatprep.subr.bf16.mxu1 %v9338_v2  ;;  %v9417_v1 = vld [vmem:[%s10991_s24 + $0x580] ss:$16 sps:$4 sm:$0xff]   ;;  %v9420_v2 = vld [vmem:[%s10991_s24 + $0x588] ss:$16 sps:$4 sm:$0xff]  }
  0xd3   : > { %6504 = vmatpush1.bf16.msra.mxu0 %v9333_v3  ;;  %7192 = vmatpush1.bf16.msra.mxu1 %v9336_v4  ;;  %v9425_v3 = vld [vmem:[%s10991_s24 + $0x5a4] ss:$16 sps:$4 sm:$0xff]   ;;  %v9428_v4 = vld [vmem:[%s10991_s24 + $0x5ac] ss:$16 sps:$4 sm:$0xff]  }
  0xd4   : > { %6505 = vmatprep.subr.bf16.mxu0 %v9341_v5  ;;  %7193 = vmatprep.subr.bf16.mxu1 %v9344_v6  ;;  %v9423_v5 = vld [vmem:[%s10991_s24 + $0x5a0] ss:$16 sps:$4 sm:$0xff]   ;;  %v9426_v6 = vld [vmem:[%s10991_s24 + $0x5a8] ss:$16 sps:$4 sm:$0xff]  }
  0xd7   : > { %6506 = vmatpush1.bf16.msra.mxu0 %v9339_v7  ;;  %7194 = vmatpush1.bf16.msra.mxu1 %v9342_v8  ;;  %v9431_v7 = vld [vmem:[%s10991_s24 + $0x5c4] ss:$16 sps:$4 sm:$0xff]   ;;  %v9434_v8 = vld [vmem:[%s10991_s24 + $0x5cc] ss:$16 sps:$4 sm:$0xff]  }
  0xd8   : > { %6518 = vmatprep.subr.bf16.mxu0 %v9347_v9  ;;  %7206 = vmatprep.subr.bf16.mxu1 %v9350_v12  ;;  %v9429_v9 = vld [vmem:[%s10991_s24 + $0x5c0] ss:$16 sps:$4 sm:$0xff]   ;;  %v9440_v12 = vld [vmem:[%s10991_s24 + $0x5ec] ss:$16 sps:$4 sm:$0xff]  }
  0xda   : > { %6508 = vmatmul.mubr.bf16.vlgmr.msra.gmra.mrb[0].mxu0 %v258_v15  ;;  %7196 = vmatmul.mubr.bf16.vlgmr.msra.gmra.mrb[0].mxu1 %v258_v15  ;;  %v9443_v15 = vld [vmem:[%s10991_s24 + $0x604] ss:$16 sps:$4 sm:$0xff]  }
  0xdb   : > { %6519 = vmatpush1.bf16.msra.mxu0 %v9345_v13  ;;  %7207 = vmatpush1.bf16.msra.mxu1 %v9348_v14  ;;  %v9435_v13 = vld [vmem:[%s10991_s24 + $0x5e0] ss:$16 sps:$4 sm:$0xff]   ;;  %v9438_v14 = vld [vmem:[%s10991_s24 + $0x5e8] ss:$16 sps:$4 sm:$0xff]  }
  0xdc   : > { %6520 = vmatprep.subr.bf16.mxu0 %v9353_v16  ;;  %7208 = vmatprep.subr.bf16.mxu1 %v9356_v17  ;;  %v196_v16 = vld [vmem:[#allocation2 + $0x20] sm:$0xff] }
  0xdd   : > { %6550 = vmatprep.mubr.bf16.mxu0 %v261_v22  ;;  %7238 = vmatprep.mubr.bf16.mxu1 %v261_v22  ;;  %v228_v17 = vld [vmem:[#allocation2 + $0x120] sm:$0xff]  ;;  %v199_v22 = vld [vmem:[#allocation2 + $0x38] sm:$0xff] }
  0xdf   : > { %6521 = vmatpush1.bf16.msra.mxu0 %v9351_v20  ;;  %7209 = vmatpush1.bf16.msra.mxu1 %v9354_v21  ;;  %v9444_v20 = vld [vmem:[%s10991_s24 + $0x608] ss:$16 sps:$4 sm:$0xff]   ;;  %v260_v21 = vpack.c.bf16 %v228_v17, %v196_v16  ;;  %v9533_v17 = vld [vmem:[%s10991_s24 + $0x7e4] ss:$16 sps:$4 sm:$0xff]  }
  0xe0   : > { %6522 = vmatprep.subr.bf16.mxu0 %v9359_v23  ;;  %7210 = vmatprep.subr.bf16.mxu1 %v9362_v24  ;;  %v231_v23 = vld [vmem:[#allocation2 + $0x138] sm:$0xff]  ;;  %v9449_v24 = vld [vmem:[%s10991_s24 + $0x624] ss:$16 sps:$4 sm:$0xff]  }
  0xe1   : > { %v9528_v16 = vld [vmem:[%s10991_s24 + $0x7c8] ss:$16 sps:$4 sm:$0xff]  }
  0xe3   : > { %6523 = vmatpush1.bf16.msra.mxu0 %v9357_v25  ;;  %7211 = vmatpush1.bf16.msra.mxu1 %v9360_v26  ;;  %v9452_v25 = vld [vmem:[%s10991_s24 + $0x62c] ss:$16 sps:$4 sm:$0xff]   ;;  %v263_v26 = vpack.c.bf16 %v231_v23, %v199_v22  ;;  %v198_v22 = vld [vmem:[#allocation2 + $0x30] sm:$0xff] }
  0xe4   : > { %6524 = vmatprep.subr.bf16.mxu0 %v9365_v27  ;;  %7212 = vmatprep.subr.bf16.mxu1 %v9368_v28  ;;  %v9447_v27 = vld [vmem:[%s10991_s24 + $0x620] ss:$16 sps:$4 sm:$0xff]   ;;  %v9450_v28 = vld [vmem:[%s10991_s24 + $0x628] ss:$16 sps:$4 sm:$0xff]  }
  0xe5   : > { %v230_v23 = vld [vmem:[#allocation2 + $0x130] sm:$0xff] }
  0xe7   : > { %6525 = vmatpush1.bf16.msra.mxu0 %v9363_v29  ;;  %7213 = vmatpush1.bf16.msra.mxu1 %v9366_v30  ;;  %v9455_v29 = vld [vmem:[%s10991_s24 + $0x644] ss:$16 sps:$4 sm:$0xff]   ;;  %v9458_v30 = vld [vmem:[%s10991_s24 + $0x64c] ss:$16 sps:$4 sm:$0xff]  }
  0xe8   : > { %6526 = vmatprep.subr.bf16.mxu0 %v9371_v31  ;;  %7214 = vmatprep.subr.bf16.mxu1 %v9374_v32  ;;  %v9453_v31 = vld [vmem:[%s10991_s24 + $0x640] ss:$16 sps:$4 sm:$0xff]   ;;  %v9456_v32 = vld [vmem:[%s10991_s24 + $0x648] ss:$16 sps:$4 sm:$0xff]  }
  0xeb   : > { %6527 = vmatpush1.bf16.msra.mxu0 %v9369_v33  ;;  %7215 = vmatpush1.bf16.msra.mxu1 %v9372_v34  ;;  %v9461_v33 = vld [vmem:[%s10991_s24 + $0x664] ss:$16 sps:$4 sm:$0xff]   ;;  %v9464_v34 = vld [vmem:[%s10991_s24 + $0x66c] ss:$16 sps:$4 sm:$0xff]  }
  0xec   : > { %6528 = vmatprep.subr.bf16.mxu0 %v9377_v35  ;;  %7216 = vmatprep.subr.bf16.mxu1 %v9380_v36  ;;  %v9459_v35 = vld [vmem:[%s10991_s24 + $0x660] ss:$16 sps:$4 sm:$0xff]   ;;  %v9462_v36 = vld [vmem:[%s10991_s24 + $0x668] ss:$16 sps:$4 sm:$0xff]  }
  0xef   : > { %6529 = vmatpush1.bf16.msra.mxu0 %v9375_v37  ;;  %7217 = vmatpush1.bf16.msra.mxu1 %v9378_v38  ;;  %v9467_v37 = vld [vmem:[%s10991_s24 + $0x684] ss:$16 sps:$4 sm:$0xff]   ;;  %v9470_v38 = vld [vmem:[%s10991_s24 + $0x68c] ss:$16 sps:$4 sm:$0xff]  }
  0xf0   : > { %6530 = vmatprep.subr.bf16.mxu0 %v9383_v39  ;;  %7218 = vmatprep.subr.bf16.mxu1 %v9386_v40  ;;  %v9465_v39 = vld [vmem:[%s10991_s24 + $0x680] ss:$16 sps:$4 sm:$0xff]   ;;  %v9468_v40 = vld [vmem:[%s10991_s24 + $0x688] ss:$16 sps:$4 sm:$0xff]  }
  0xf3   : > { %6531 = vmatpush1.bf16.msra.mxu0 %v9381_v41  ;;  %7219 = vmatpush1.bf16.msra.mxu1 %v9384_v42  ;;  %v9473_v41 = vld [vmem:[%s10991_s24 + $0x6a4] ss:$16 sps:$4 sm:$0xff]   ;;  %v9476_v42 = vld [vmem:[%s10991_s24 + $0x6ac] ss:$16 sps:$4 sm:$0xff]  }
  0xf4   : > { %6532 = vmatprep.subr.bf16.mxu0 %v9389_v43  ;;  %7220 = vmatprep.subr.bf16.mxu1 %v9392_v44  ;;  %v9471_v43 = vld [vmem:[%s10991_s24 + $0x6a0] ss:$16 sps:$4 sm:$0xff]   ;;  %v9474_v44 = vld [vmem:[%s10991_s24 + $0x6a8] ss:$16 sps:$4 sm:$0xff]  }
  0xf7   : > { %6533 = vmatpush1.bf16.msra.mxu0 %v9387_v45  ;;  %7221 = vmatpush1.bf16.msra.mxu1 %v9390_v46  ;;  %v9479_v45 = vld [vmem:[%s10991_s24 + $0x6c4] ss:$16 sps:$4 sm:$0xff]   ;;  %v9482_v46 = vld [vmem:[%s10991_s24 + $0x6cc] ss:$16 sps:$4 sm:$0xff]  }
  0xf8   : > { %6534 = vmatprep.subr.bf16.mxu0 %v9395_v47  ;;  %7222 = vmatprep.subr.bf16.mxu1 %v9398_v48  ;;  %v9477_v47 = vld [vmem:[%s10991_s24 + $0x6c0] ss:$16 sps:$4 sm:$0xff]   ;;  %v9480_v48 = vld [vmem:[%s10991_s24 + $0x6c8] ss:$16 sps:$4 sm:$0xff]  }
  0xfb   : > { %6535 = vmatpush1.bf16.msra.mxu0 %v9393_v49  ;;  %7223 = vmatpush1.bf16.msra.mxu1 %v9396_v50  ;;  %v9485_v49 = vld [vmem:[%s10991_s24 + $0x6e4] ss:$16 sps:$4 sm:$0xff]   ;;  %v9488_v50 = vld [vmem:[%s10991_s24 + $0x6ec] ss:$16 sps:$4 sm:$0xff]  }
  0xfc   : > { %6536 = vmatprep.subr.bf16.mxu0 %v9401_v51  ;;  %7224 = vmatprep.subr.bf16.mxu1 %v9404_v52  ;;  %v9483_v51 = vld [vmem:[%s10991_s24 + $0x6e0] ss:$16 sps:$4 sm:$0xff]   ;;  %v9486_v52 = vld [vmem:[%s10991_s24 + $0x6e8] ss:$16 sps:$4 sm:$0xff]  }
  0xff   : > { %6537 = vmatpush1.bf16.msra.mxu0 %v9399_v53  ;;  %7225 = vmatpush1.bf16.msra.mxu1 %v9402_v54  ;;  %v9491_v53 = vld [vmem:[%s10991_s24 + $0x704] ss:$16 sps:$4 sm:$0xff]   ;;  %v9494_v54 = vld [vmem:[%s10991_s24 + $0x70c] ss:$16 sps:$4 sm:$0xff]  }
 0x100   : > { %6538 = vmatprep.subr.bf16.mxu0 %v9407_v55  ;;  %7226 = vmatprep.subr.bf16.mxu1 %v9410_v56  ;;  %v9489_v55 = vld [vmem:[%s10991_s24 + $0x700] ss:$16 sps:$4 sm:$0xff]   ;;  %v9492_v56 = vld [vmem:[%s10991_s24 + $0x708] ss:$16 sps:$4 sm:$0xff]  }
 0x103   : > { %6539 = vmatpush1.bf16.msra.mxu0 %v9405_v57  ;;  %7227 = vmatpush1.bf16.msra.mxu1 %v9408_v58  ;;  %v9497_v57 = vld [vmem:[%s10991_s24 + $0x724] ss:$16 sps:$4 sm:$0xff]   ;;  %v9500_v58 = vld [vmem:[%s10991_s24 + $0x72c] ss:$16 sps:$4 sm:$0xff]  }
 0x104   : > { %6540 = vmatprep.subr.bf16.mxu0 %v9413_v59  ;;  %7228 = vmatprep.subr.bf16.mxu1 %v9416_v60  ;;  %v9495_v59 = vld [vmem:[%s10991_s24 + $0x720] ss:$16 sps:$4 sm:$0xff]   ;;  %v9498_v60 = vld [vmem:[%s10991_s24 + $0x728] ss:$16 sps:$4 sm:$0xff]  }
 0x107   : > { %6541 = vmatpush1.bf16.msra.mxu0 %v9411_v61  ;;  %7229 = vmatpush1.bf16.msra.mxu1 %v9414_v62  ;;  %v9503_v61 = vld [vmem:[%s10991_s24 + $0x744] ss:$16 sps:$4 sm:$0xff]   ;;  %v9506_v62 = vld [vmem:[%s10991_s24 + $0x74c] ss:$16 sps:$4 sm:$0xff]  }
 0x108   : > { %6542 = vmatprep.subr.bf16.mxu0 %v9419_v63  ;;  %7230 = vmatprep.subr.bf16.mxu1 %v9422_v0  ;;  %v9501_v63 = vld [vmem:[%s10991_s24 + $0x740] ss:$16 sps:$4 sm:$0xff]   ;;  %v9504_v0 = vld [vmem:[%s10991_s24 + $0x748] ss:$16 sps:$4 sm:$0xff]  }
 0x10b   : > { %6543 = vmatpush1.bf16.msra.mxu0 %v9417_v1  ;;  %7231 = vmatpush1.bf16.msra.mxu1 %v9420_v2  ;;  %v9509_v1 = vld [vmem:[%s10991_s24 + $0x764] ss:$16 sps:$4 sm:$0xff]   ;;  %v9512_v2 = vld [vmem:[%s10991_s24 + $0x76c] ss:$16 sps:$4 sm:$0xff]  }
 0x10c   : > { %6544 = vmatprep.subr.bf16.mxu0 %v9425_v3  ;;  %7232 = vmatprep.subr.bf16.mxu1 %v9428_v4  ;;  %v9507_v3 = vld [vmem:[%s10991_s24 + $0x760] ss:$16 sps:$4 sm:$0xff]   ;;  %v9510_v4 = vld [vmem:[%s10991_s24 + $0x768] ss:$16 sps:$4 sm:$0xff]  }
 0x10f   : > { %6545 = vmatpush1.bf16.msra.mxu0 %v9423_v5  ;;  %7233 = vmatpush1.bf16.msra.mxu1 %v9426_v6  ;;  %v9515_v5 = vld [vmem:[%s10991_s24 + $0x784] ss:$16 sps:$4 sm:$0xff]   ;;  %v9518_v6 = vld [vmem:[%s10991_s24 + $0x78c] ss:$16 sps:$4 sm:$0xff]  }
 0x110   : > { %6546 = vmatprep.subr.bf16.mxu0 %v9431_v7  ;;  %7234 = vmatprep.subr.bf16.mxu1 %v9434_v8  ;;  %v9513_v7 = vld [vmem:[%s10991_s24 + $0x780] ss:$16 sps:$4 sm:$0xff]   ;;  %v9516_v8 = vld [vmem:[%s10991_s24 + $0x788] ss:$16 sps:$4 sm:$0xff]  }
 0x113   : > { %6547 = vmatpush1.bf16.msra.mxu0 %v9429_v9  ;;  %7235 = vmatpush1.bf16.msra.mxu1 %v9432_v10  ;;  %v9521_v9 = vld [vmem:[%s10991_s24 + $0x7a4] ss:$16 sps:$4 sm:$0xff]   ;;  %v9524_v10 = vld [vmem:[%s10991_s24 + $0x7ac] ss:$16 sps:$4 sm:$0xff]  }
 0x114   : > { %6548 = vmatprep.subr.bf16.mxu0 %v9437_v11  ;;  %7236 = vmatprep.subr.bf16.mxu1 %v9440_v12  ;;  %v9519_v11 = vld [vmem:[%s10991_s24 + $0x7a0] ss:$16 sps:$4 sm:$0xff]   ;;  %v9522_v12 = vld [vmem:[%s10991_s24 + $0x7a8] ss:$16 sps:$4 sm:$0xff]  }
 0x117   : > { %6549 = vmatpush1.bf16.msra.mxu0 %v9435_v13  ;;  %7237 = vmatpush1.bf16.msra.mxu1 %v9438_v14  ;;  %v9527_v13 = vld [vmem:[%s10991_s24 + $0x7c4] ss:$16 sps:$4 sm:$0xff]   ;;  %v9530_v14 = vld [vmem:[%s10991_s24 + $0x7cc] ss:$16 sps:$4 sm:$0xff]  }
 0x118   : > { %6561 = vmatprep.subr.bf16.mxu0 %v9443_v15  ;;  %7249 = vmatprep.subr.bf16.mxu1 %v9446_v18  ;;  %v9525_v15 = vld [vmem:[%s10991_s24 + $0x7c0] ss:$16 sps:$4 sm:$0xff]   ;;  %v9536_v18 = vld [vmem:[%s10991_s24 + $0x7ec] ss:$16 sps:$4 sm:$0xff]  }
 0x11a   : > { %6551 = vmatmul.mubr.bf16.vlgmr.msra.gmra.mrb[0].mxu0 %v260_v21  ;;  %7239 = vmatmul.mubr.bf16.vlgmr.msra.gmra.mrb[0].mxu1 %v260_v21  ;;  %v9539_v21 = vld [vmem:[%s10991_s24 + $0x804] ss:$16 sps:$4 sm:$0xff]  }
 0x11b   : > { %6562 = vmatpush1.bf16.msra.mxu0 %v9441_v19  ;;  %7250 = vmatpush1.bf16.msra.mxu1 %v9444_v20  ;;  %v9531_v19 = vld [vmem:[%s10991_s24 + $0x7e0] ss:$16 sps:$4 sm:$0xff]   ;;  %v9534_v20 = vld [vmem:[%s10991_s24 + $0x7e8] ss:$16 sps:$4 sm:$0xff]  }
 0x11c   : > { %6563 = vmatprep.subr.bf16.mxu0 %v9449_v24  ;;  %7251 = vmatprep.subr.bf16.mxu1 %v9452_v25  ;;  %v9542_v24 = vld [vmem:[%s10991_s24 + $0x80c] ss:$16 sps:$4 sm:$0xff]   ;;  %v9537_v25 = vld [vmem:[%s10991_s24 + $0x800] ss:$16 sps:$4 sm:$0xff]  }
 0x11d   : > { %6593 = vmatprep.mubr.bf16.mxu0 %v263_v26  ;;  %7281 = vmatprep.mubr.bf16.mxu1 %v263_v26  ;;  %v9540_v26 = vld [vmem:[%s10991_s24 + $0x808] ss:$16 sps:$4 sm:$0xff]  }
 0x11f   : > { %6564 = vmatpush1.bf16.msra.mxu0 %v9447_v27  ;;  %7252 = vmatpush1.bf16.msra.mxu1 %v9450_v28  ;;  %v262_v27 = vpack.c.bf16 %v230_v23, %v198_v22  ;;  %v201_v28 = vld [vmem:[#allocation2 + $0x48] sm:$0xff]  ;;  %v9629_v23 = vld [vmem:[%s10991_s24 + $0x9e4] ss:$16 sps:$4 sm:$0xff]  }
 0x120   : > { %6565 = vmatprep.subr.bf16.mxu0 %v9455_v29  ;;  %7253 = vmatprep.subr.bf16.mxu1 %v9458_v30  ;;  %v233_v29 = vld [vmem:[#allocation2 + $0x148] sm:$0xff]  ;;  %v9545_v30 = vld [vmem:[%s10991_s24 + $0x824] ss:$16 sps:$4 sm:$0xff]  }
 0x121   : > { %v9624_v22 = vld [vmem:[%s10991_s24 + $0x9c8] ss:$16 sps:$4 sm:$0xff]  }
 0x123   : > { %6566 = vmatpush1.bf16.msra.mxu0 %v9453_v31  ;;  %7254 = vmatpush1.bf16.msra.mxu1 %v9456_v32  ;;  %v9548_v31 = vld [vmem:[%s10991_s24 + $0x82c] ss:$16 sps:$4 sm:$0xff]   ;;  %v265_v32 = vpack.c.bf16 %v233_v29, %v201_v28  ;;  %v200_v29 = vld [vmem:[#allocation2 + $0x40] sm:$0xff] }
 0x124   : > { %6567 = vmatprep.subr.bf16.mxu0 %v9461_v33  ;;  %7255 = vmatprep.subr.bf16.mxu1 %v9464_v34  ;;  %v9543_v33 = vld [vmem:[%s10991_s24 + $0x820] ss:$16 sps:$4 sm:$0xff]   ;;  %v9546_v34 = vld [vmem:[%s10991_s24 + $0x828] ss:$16 sps:$4 sm:$0xff]   ;;  %v9638_v28 = vld [vmem:[%s10991_s24 + $0xa0c] ss:$16 sps:$4 sm:$0xff]  }
 0x127   : > { %6568 = vmatpush1.bf16.msra.mxu0 %v9459_v35  ;;  %7256 = vmatpush1.bf16.msra.mxu1 %v9462_v36  ;;  %v9551_v35 = vld [vmem:[%s10991_s24 + $0x844] ss:$16 sps:$4 sm:$0xff]   ;;  %v9554_v36 = vld [vmem:[%s10991_s24 + $0x84c] ss:$16 sps:$4 sm:$0xff]  }
 0x128   : > { %6569 = vmatprep.subr.bf16.mxu0 %v9467_v37  ;;  %7257 = vmatprep.subr.bf16.mxu1 %v9470_v38  ;;  %v9549_v37 = vld [vmem:[%s10991_s24 + $0x840] ss:$16 sps:$4 sm:$0xff]   ;;  %v9552_v38 = vld [vmem:[%s10991_s24 + $0x848] ss:$16 sps:$4 sm:$0xff]  }
 0x12b   : > { %6570 = vmatpush1.bf16.msra.mxu0 %v9465_v39  ;;  %7258 = vmatpush1.bf16.msra.mxu1 %v9468_v40  ;;  %v9557_v39 = vld [vmem:[%s10991_s24 + $0x864] ss:$16 sps:$4 sm:$0xff]   ;;  %v9560_v40 = vld [vmem:[%s10991_s24 + $0x86c] ss:$16 sps:$4 sm:$0xff]  }
 0x12c   : > { %6571 = vmatprep.subr.bf16.mxu0 %v9473_v41  ;;  %7259 = vmatprep.subr.bf16.mxu1 %v9476_v42  ;;  %v9555_v41 = vld [vmem:[%s10991_s24 + $0x860] ss:$16 sps:$4 sm:$0xff]   ;;  %v9558_v42 = vld [vmem:[%s10991_s24 + $0x868] ss:$16 sps:$4 sm:$0xff]  }
 0x12f   : > { %6572 = vmatpush1.bf16.msra.mxu0 %v9471_v43  ;;  %7260 = vmatpush1.bf16.msra.mxu1 %v9474_v44  ;;  %v9563_v43 = vld [vmem:[%s10991_s24 + $0x884] ss:$16 sps:$4 sm:$0xff]   ;;  %v9566_v44 = vld [vmem:[%s10991_s24 + $0x88c] ss:$16 sps:$4 sm:$0xff]  }
 0x130   : > { %6573 = vmatprep.subr.bf16.mxu0 %v9479_v45  ;;  %7261 = vmatprep.subr.bf16.mxu1 %v9482_v46  ;;  %v9561_v45 = vld [vmem:[%s10991_s24 + $0x880] ss:$16 sps:$4 sm:$0xff]   ;;  %v9564_v46 = vld [vmem:[%s10991_s24 + $0x888] ss:$16 sps:$4 sm:$0xff]  }
 0x133   : > { %6574 = vmatpush1.bf16.msra.mxu0 %v9477_v47  ;;  %7262 = vmatpush1.bf16.msra.mxu1 %v9480_v48  ;;  %v9569_v47 = vld [vmem:[%s10991_s24 + $0x8a4] ss:$16 sps:$4 sm:$0xff]   ;;  %v9572_v48 = vld [vmem:[%s10991_s24 + $0x8ac] ss:$16 sps:$4 sm:$0xff]  }
 0x134   : > { %6575 = vmatprep.subr.bf16.mxu0 %v9485_v49  ;;  %7263 = vmatprep.subr.bf16.mxu1 %v9488_v50  ;;  %v9567_v49 = vld [vmem:[%s10991_s24 + $0x8a0] ss:$16 sps:$4 sm:$0xff]   ;;  %v9570_v50 = vld [vmem:[%s10991_s24 + $0x8a8] ss:$16 sps:$4 sm:$0xff]  }
 0x137   : > { %6576 = vmatpush1.bf16.msra.mxu0 %v9483_v51  ;;  %7264 = vmatpush1.bf16.msra.mxu1 %v9486_v52  ;;  %v9575_v51 = vld [vmem:[%s10991_s24 + $0x8c4] ss:$16 sps:$4 sm:$0xff]   ;;  %v9578_v52 = vld [vmem:[%s10991_s24 + $0x8cc] ss:$16 sps:$4 sm:$0xff]  }
 0x138   : > { %6577 = vmatprep.subr.bf16.mxu0 %v9491_v53  ;;  %7265 = vmatprep.subr.bf16.mxu1 %v9494_v54  ;;  %v9573_v53 = vld [vmem:[%s10991_s24 + $0x8c0] ss:$16 sps:$4 sm:$0xff]   ;;  %v9576_v54 = vld [vmem:[%s10991_s24 + $0x8c8] ss:$16 sps:$4 sm:$0xff]  }
 0x13b   : > { %6578 = vmatpush1.bf16.msra.mxu0 %v9489_v55  ;;  %7266 = vmatpush1.bf16.msra.mxu1 %v9492_v56  ;;  %v9581_v55 = vld [vmem:[%s10991_s24 + $0x8e4] ss:$16 sps:$4 sm:$0xff]   ;;  %v9584_v56 = vld [vmem:[%s10991_s24 + $0x8ec] ss:$16 sps:$4 sm:$0xff]  }
 0x13c   : > { %6579 = vmatprep.subr.bf16.mxu0 %v9497_v57  ;;  %7267 = vmatprep.subr.bf16.mxu1 %v9500_v58  ;;  %v9579_v57 = vld [vmem:[%s10991_s24 + $0x8e0] ss:$16 sps:$4 sm:$0xff]   ;;  %v9582_v58 = vld [vmem:[%s10991_s24 + $0x8e8] ss:$16 sps:$4 sm:$0xff]  }
 0x13f   : > { %6580 = vmatpush1.bf16.msra.mxu0 %v9495_v59  ;;  %7268 = vmatpush1.bf16.msra.mxu1 %v9498_v60  ;;  %v9587_v59 = vld [vmem:[%s10991_s24 + $0x904] ss:$16 sps:$4 sm:$0xff]   ;;  %v9590_v60 = vld [vmem:[%s10991_s24 + $0x90c] ss:$16 sps:$4 sm:$0xff]  }
 0x140   : > { %6581 = vmatprep.subr.bf16.mxu0 %v9503_v61  ;;  %7269 = vmatprep.subr.bf16.mxu1 %v9506_v62  ;;  %v9585_v61 = vld [vmem:[%s10991_s24 + $0x900] ss:$16 sps:$4 sm:$0xff]   ;;  %v9588_v62 = vld [vmem:[%s10991_s24 + $0x908] ss:$16 sps:$4 sm:$0xff]  }
 0x143   : > { %6582 = vmatpush1.bf16.msra.mxu0 %v9501_v63  ;;  %7270 = vmatpush1.bf16.msra.mxu1 %v9504_v0  ;;  %v9593_v63 = vld [vmem:[%s10991_s24 + $0x924] ss:$16 sps:$4 sm:$0xff]   ;;  %v9596_v0 = vld [vmem:[%s10991_s24 + $0x92c] ss:$16 sps:$4 sm:$0xff]  }
 0x144   : > { %6583 = vmatprep.subr.bf16.mxu0 %v9509_v1  ;;  %7271 = vmatprep.subr.bf16.mxu1 %v9512_v2  ;;  %v9591_v1 = vld [vmem:[%s10991_s24 + $0x920] ss:$16 sps:$4 sm:$0xff]   ;;  %v9594_v2 = vld [vmem:[%s10991_s24 + $0x928] ss:$16 sps:$4 sm:$0xff]  }
 0x147   : > { %6584 = vmatpush1.bf16.msra.mxu0 %v9507_v3  ;;  %7272 = vmatpush1.bf16.msra.mxu1 %v9510_v4  ;;  %v9599_v3 = vld [vmem:[%s10991_s24 + $0x944] ss:$16 sps:$4 sm:$0xff]   ;;  %v9602_v4 = vld [vmem:[%s10991_s24 + $0x94c] ss:$16 sps:$4 sm:$0xff]  }
 0x148   : > { %6585 = vmatprep.subr.bf16.mxu0 %v9515_v5  ;;  %7273 = vmatprep.subr.bf16.mxu1 %v9518_v6  ;;  %v9597_v5 = vld [vmem:[%s10991_s24 + $0x940] ss:$16 sps:$4 sm:$0xff]   ;;  %v9600_v6 = vld [vmem:[%s10991_s24 + $0x948] ss:$16 sps:$4 sm:$0xff]  }
 0x14b   : > { %6586 = vmatpush1.bf16.msra.mxu0 %v9513_v7  ;;  %7274 = vmatpush1.bf16.msra.mxu1 %v9516_v8  ;;  %v9605_v7 = vld [vmem:[%s10991_s24 + $0x964] ss:$16 sps:$4 sm:$0xff]   ;;  %v9608_v8 = vld [vmem:[%s10991_s24 + $0x96c] ss:$16 sps:$4 sm:$0xff]  }
 0x14c   : > { %6587 = vmatprep.subr.bf16.mxu0 %v9521_v9  ;;  %7275 = vmatprep.subr.bf16.mxu1 %v9524_v10  ;;  %v9603_v9 = vld [vmem:[%s10991_s24 + $0x960] ss:$16 sps:$4 sm:$0xff]   ;;  %v9606_v10 = vld [vmem:[%s10991_s24 + $0x968] ss:$16 sps:$4 sm:$0xff]  }
 0x14f   : > { %6588 = vmatpush1.bf16.msra.mxu0 %v9519_v11  ;;  %7276 = vmatpush1.bf16.msra.mxu1 %v9522_v12  ;;  %v9611_v11 = vld [vmem:[%s10991_s24 + $0x984] ss:$16 sps:$4 sm:$0xff]   ;;  %v9614_v12 = vld [vmem:[%s10991_s24 + $0x98c] ss:$16 sps:$4 sm:$0xff]  }
 0x150   : > { %6589 = vmatprep.subr.bf16.mxu0 %v9527_v13  ;;  %7277 = vmatprep.subr.bf16.mxu1 %v9530_v14  ;;  %v9609_v13 = vld [vmem:[%s10991_s24 + $0x980] ss:$16 sps:$4 sm:$0xff]   ;;  %v9612_v14 = vld [vmem:[%s10991_s24 + $0x988] ss:$16 sps:$4 sm:$0xff]  }
 0x153   : > { %6590 = vmatpush1.bf16.msra.mxu0 %v9525_v15  ;;  %7278 = vmatpush1.bf16.msra.mxu1 %v9528_v16  ;;  %v9617_v15 = vld [vmem:[%s10991_s24 + $0x9a4] ss:$16 sps:$4 sm:$0xff]   ;;  %v9620_v16 = vld [vmem:[%s10991_s24 + $0x9ac] ss:$16 sps:$4 sm:$0xff]  }
 0x154   : > { %6591 = vmatprep.subr.bf16.mxu0 %v9533_v17  ;;  %7279 = vmatprep.subr.bf16.mxu1 %v9536_v18  ;;  %v9615_v17 = vld [vmem:[%s10991_s24 + $0x9a0] ss:$16 sps:$4 sm:$0xff]   ;;  %v9618_v18 = vld [vmem:[%s10991_s24 + $0x9a8] ss:$16 sps:$4 sm:$0xff]  }
 0x157   : > { %6592 = vmatpush1.bf16.msra.mxu0 %v9531_v19  ;;  %7280 = vmatpush1.bf16.msra.mxu1 %v9534_v20  ;;  %v9623_v19 = vld [vmem:[%s10991_s24 + $0x9c4] ss:$16 sps:$4 sm:$0xff]   ;;  %v9626_v20 = vld [vmem:[%s10991_s24 + $0x9cc] ss:$16 sps:$4 sm:$0xff]  }
 0x158   : > { %6604 = vmatprep.subr.bf16.mxu0 %v9539_v21  ;;  %7292 = vmatprep.subr.bf16.mxu1 %v9542_v24  ;;  %v9621_v21 = vld [vmem:[%s10991_s24 + $0x9c0] ss:$16 sps:$4 sm:$0xff]   ;;  %v9632_v24 = vld [vmem:[%s10991_s24 + $0x9ec] ss:$16 sps:$4 sm:$0xff]  }
 0x15a   : > { %6594 = vmatmul.mubr.bf16.vlgmr.msra.gmra.mrb[0].mxu0 %v262_v27  ;;  %7282 = vmatmul.mubr.bf16.vlgmr.msra.gmra.mrb[0].mxu1 %v262_v27  ;;  %v9635_v27 = vld [vmem:[%s10991_s24 + $0xa04] ss:$16 sps:$4 sm:$0xff]  }
 0x15b   : > { %6605 = vmatpush1.bf16.msra.mxu0 %v9537_v25  ;;  %7293 = vmatpush1.bf16.msra.mxu1 %v9540_v26  ;;  %v9627_v25 = vld [vmem:[%s10991_s24 + $0x9e0] ss:$16 sps:$4 sm:$0xff]   ;;  %v9630_v26 = vld [vmem:[%s10991_s24 + $0x9e8] ss:$16 sps:$4 sm:$0xff]  }
 0x15c   : > { %6606 = vmatprep.subr.bf16.mxu0 %v9545_v30  ;;  %7294 = vmatprep.subr.bf16.mxu1 %v9548_v31  ;;  %v232_v30 = vld [vmem:[#allocation2 + $0x140] sm:$0xff]  ;;  %v203_v31 = vld [vmem:[#allocation2 + $0x58] sm:$0xff] }
 0x15d   : > { %6636 = vmatprep.mubr.bf16.mxu0 %v265_v32  ;;  %7324 = vmatprep.mubr.bf16.mxu1 %v265_v32  ;;  %v235_v32 = vld [vmem:[#allocation2 + $0x158] sm:$0xff] }
 0x15f   : > { %6607 = vmatpush1.bf16.msra.mxu0 %v9543_v33  ;;  %7295 = vmatpush1.bf16.msra.mxu1 %v9546_v34  ;;  %v264_v33 = vpack.c.bf16 %v232_v30, %v200_v29  ;;  %v9633_v34 = vld [vmem:[%s10991_s24 + $0xa00] ss:$16 sps:$4 sm:$0xff]   ;;  %v9725_v29 = vld [vmem:[%s10991_s24 + $0xbe4] ss:$16 sps:$4 sm:$0xff]   ;;  %v9728_v30 = vld [vmem:[%s10991_s24 + $0xbec] ss:$16 sps:$4 sm:$0xff]  }
 0x160   : > { %6608 = vmatprep.subr.bf16.mxu0 %v9551_v35  ;;  %7296 = vmatprep.subr.bf16.mxu1 %v9554_v36  ;;  %v9636_v35 = vld [vmem:[%s10991_s24 + $0xa08] ss:$16 sps:$4 sm:$0xff]   ;;  %v9641_v36 = vld [vmem:[%s10991_s24 + $0xa24] ss:$16 sps:$4 sm:$0xff]  }
 0x163   : > { %6609 = vmatpush1.bf16.msra.mxu0 %v9549_v37  ;;  %7297 = vmatpush1.bf16.msra.mxu1 %v9552_v38  ;;  %v9644_v37 = vld [vmem:[%s10991_s24 + $0xa2c] ss:$16 sps:$4 sm:$0xff]   ;;  %v267_v38 = vpack.c.bf16 %v235_v32, %v203_v31  ;;  %v9723_v31 = vld [vmem:[%s10991_s24 + $0xbe0] ss:$16 sps:$4 sm:$0xff]   ;;  %v9726_v32 = vld [vmem:[%s10991_s24 + $0xbe8] ss:$16 sps:$4 sm:$0xff]  }
 0x164   : > { %6610 = vmatprep.subr.bf16.mxu0 %v9557_v39  ;;  %7298 = vmatprep.subr.bf16.mxu1 %v9560_v40  ;;  %v9639_v39 = vld [vmem:[%s10991_s24 + $0xa20] ss:$16 sps:$4 sm:$0xff]   ;;  %v9642_v40 = vld [vmem:[%s10991_s24 + $0xa28] ss:$16 sps:$4 sm:$0xff]  }
 0x167   : > { %6611 = vmatpush1.bf16.msra.mxu0 %v9555_v41  ;;  %7299 = vmatpush1.bf16.msra.mxu1 %v9558_v42  ;;  %v9647_v41 = vld [vmem:[%s10991_s24 + $0xa44] ss:$16 sps:$4 sm:$0xff]   ;;  %v9650_v42 = vld [vmem:[%s10991_s24 + $0xa4c] ss:$16 sps:$4 sm:$0xff]  }
 0x168   : > { %6612 = vmatprep.subr.bf16.mxu0 %v9563_v43  ;;  %7300 = vmatprep.subr.bf16.mxu1 %v9566_v44  ;;  %v9645_v43 = vld [vmem:[%s10991_s24 + $0xa40] ss:$16 sps:$4 sm:$0xff]   ;;  %v9648_v44 = vld [vmem:[%s10991_s24 + $0xa48] ss:$16 sps:$4 sm:$0xff]  }
 0x16b   : > { %6613 = vmatpush1.bf16.msra.mxu0 %v9561_v45  ;;  %7301 = vmatpush1.bf16.msra.mxu1 %v9564_v46  ;;  %v9653_v45 = vld [vmem:[%s10991_s24 + $0xa64] ss:$16 sps:$4 sm:$0xff]   ;;  %v9656_v46 = vld [vmem:[%s10991_s24 + $0xa6c] ss:$16 sps:$4 sm:$0xff]  }
 0x16c   : > { %6614 = vmatprep.subr.bf16.mxu0 %v9569_v47  ;;  %7302 = vmatprep.subr.bf16.mxu1 %v9572_v48  ;;  %v9651_v47 = vld [vmem:[%s10991_s24 + $0xa60] ss:$16 sps:$4 sm:$0xff]   ;;  %v9654_v48 = vld [vmem:[%s10991_s24 + $0xa68] ss:$16 sps:$4 sm:$0xff]  }
 0x16f   : > { %6615 = vmatpush1.bf16.msra.mxu0 %v9567_v49  ;;  %7303 = vmatpush1.bf16.msra.mxu1 %v9570_v50  ;;  %v9659_v49 = vld [vmem:[%s10991_s24 + $0xa84] ss:$16 sps:$4 sm:$0xff]   ;;  %v9662_v50 = vld [vmem:[%s10991_s24 + $0xa8c] ss:$16 sps:$4 sm:$0xff]  }
 0x170   : > { %6616 = vmatprep.subr.bf16.mxu0 %v9575_v51  ;;  %7304 = vmatprep.subr.bf16.mxu1 %v9578_v52  ;;  %v9657_v51 = vld [vmem:[%s10991_s24 + $0xa80] ss:$16 sps:$4 sm:$0xff]   ;;  %v9660_v52 = vld [vmem:[%s10991_s24 + $0xa88] ss:$16 sps:$4 sm:$0xff]  }
 0x173   : > { %6617 = vmatpush1.bf16.msra.mxu0 %v9573_v53  ;;  %7305 = vmatpush1.bf16.msra.mxu1 %v9576_v54  ;;  %v9665_v53 = vld [vmem:[%s10991_s24 + $0xaa4] ss:$16 sps:$4 sm:$0xff]   ;;  %v9668_v54 = vld [vmem:[%s10991_s24 + $0xaac] ss:$16 sps:$4 sm:$0xff]  }
 0x174   : > { %6618 = vmatprep.subr.bf16.mxu0 %v9581_v55  ;;  %7306 = vmatprep.subr.bf16.mxu1 %v9584_v56  ;;  %v9663_v55 = vld [vmem:[%s10991_s24 + $0xaa0] ss:$16 sps:$4 sm:$0xff]   ;;  %v9666_v56 = vld [vmem:[%s10991_s24 + $0xaa8] ss:$16 sps:$4 sm:$0xff]  }
 0x177   : > { %6619 = vmatpush1.bf16.msra.mxu0 %v9579_v57  ;;  %7307 = vmatpush1.bf16.msra.mxu1 %v9582_v58  ;;  %v9671_v57 = vld [vmem:[%s10991_s24 + $0xac4] ss:$16 sps:$4 sm:$0xff]   ;;  %v9674_v58 = vld [vmem:[%s10991_s24 + $0xacc] ss:$16 sps:$4 sm:$0xff]  }
 0x178   : > { %6620 = vmatprep.subr.bf16.mxu0 %v9587_v59  ;;  %7308 = vmatprep.subr.bf16.mxu1 %v9590_v60  ;;  %v9669_v59 = vld [vmem:[%s10991_s24 + $0xac0] ss:$16 sps:$4 sm:$0xff]   ;;  %v9672_v60 = vld [vmem:[%s10991_s24 + $0xac8] ss:$16 sps:$4 sm:$0xff]  }
 0x17b   : > { %6621 = vmatpush1.bf16.msra.mxu0 %v9585_v61  ;;  %7309 = vmatpush1.bf16.msra.mxu1 %v9588_v62  ;;  %v9677_v61 = vld [vmem:[%s10991_s24 + $0xae4] ss:$16 sps:$4 sm:$0xff]   ;;  %v9680_v62 = vld [vmem:[%s10991_s24 + $0xaec] ss:$16 sps:$4 sm:$0xff]  }
 0x17c   : > { %6622 = vmatprep.subr.bf16.mxu0 %v9593_v63  ;;  %7310 = vmatprep.subr.bf16.mxu1 %v9596_v0  ;;  %v9675_v63 = vld [vmem:[%s10991_s24 + $0xae0] ss:$16 sps:$4 sm:$0xff]   ;;  %v9678_v0 = vld [vmem:[%s10991_s24 + $0xae8] ss:$16 sps:$4 sm:$0xff]  }
 0x17f   : > { %6623 = vmatpush1.bf16.msra.mxu0 %v9591_v1  ;;  %7311 = vmatpush1.bf16.msra.mxu1 %v9594_v2  ;;  %v9683_v1 = vld [vmem:[%s10991_s24 + $0xb04] ss:$16 sps:$4 sm:$0xff]   ;;  %v9686_v2 = vld [vmem:[%s10991_s24 + $0xb0c] ss:$16 sps:$4 sm:$0xff]  }
 0x180   : > { %6624 = vmatprep.subr.bf16.mxu0 %v9599_v3  ;;  %7312 = vmatprep.subr.bf16.mxu1 %v9602_v4  ;;  %v9681_v3 = vld [vmem:[%s10991_s24 + $0xb00] ss:$16 sps:$4 sm:$0xff]   ;;  %v9684_v4 = vld [vmem:[%s10991_s24 + $0xb08] ss:$16 sps:$4 sm:$0xff]  }
 0x183   : > { %6625 = vmatpush1.bf16.msra.mxu0 %v9597_v5  ;;  %7313 = vmatpush1.bf16.msra.mxu1 %v9600_v6  ;;  %v9689_v5 = vld [vmem:[%s10991_s24 + $0xb24] ss:$16 sps:$4 sm:$0xff]   ;;  %v9692_v6 = vld [vmem:[%s10991_s24 + $0xb2c] ss:$16 sps:$4 sm:$0xff]  }
 0x184   : > { %6626 = vmatprep.subr.bf16.mxu0 %v9605_v7  ;;  %7314 = vmatprep.subr.bf16.mxu1 %v9608_v8  ;;  %v9687_v7 = vld [vmem:[%s10991_s24 + $0xb20] ss:$16 sps:$4 sm:$0xff]   ;;  %v9690_v8 = vld [vmem:[%s10991_s24 + $0xb28] ss:$16 sps:$4 sm:$0xff]  }
 0x187   : > { %6627 = vmatpush1.bf16.msra.mxu0 %v9603_v9  ;;  %7315 = vmatpush1.bf16.msra.mxu1 %v9606_v10  ;;  %v9695_v9 = vld [vmem:[%s10991_s24 + $0xb44] ss:$16 sps:$4 sm:$0xff]   ;;  %v9698_v10 = vld [vmem:[%s10991_s24 + $0xb4c] ss:$16 sps:$4 sm:$0xff]  }
 0x188   : > { %6628 = vmatprep.subr.bf16.mxu0 %v9611_v11  ;;  %7316 = vmatprep.subr.bf16.mxu1 %v9614_v12  ;;  %v9693_v11 = vld [vmem:[%s10991_s24 + $0xb40] ss:$16 sps:$4 sm:$0xff]   ;;  %v9696_v12 = vld [vmem:[%s10991_s24 + $0xb48] ss:$16 sps:$4 sm:$0xff]  }
 0x18b   : > { %6629 = vmatpush1.bf16.msra.mxu0 %v9609_v13  ;;  %7317 = vmatpush1.bf16.msra.mxu1 %v9612_v14  ;;  %v9701_v13 = vld [vmem:[%s10991_s24 + $0xb64] ss:$16 sps:$4 sm:$0xff]   ;;  %v9704_v14 = vld [vmem:[%s10991_s24 + $0xb6c] ss:$16 sps:$4 sm:$0xff]  }
 0x18c   : > { %6630 = vmatprep.subr.bf16.mxu0 %v9617_v15  ;;  %7318 = vmatprep.subr.bf16.mxu1 %v9620_v16  ;;  %v9699_v15 = vld [vmem:[%s10991_s24 + $0xb60] ss:$16 sps:$4 sm:$0xff]   ;;  %v9702_v16 = vld [vmem:[%s10991_s24 + $0xb68] ss:$16 sps:$4 sm:$0xff]  }
 0x18f   : > { %6631 = vmatpush1.bf16.msra.mxu0 %v9615_v17  ;;  %7319 = vmatpush1.bf16.msra.mxu1 %v9618_v18  ;;  %v9707_v17 = vld [vmem:[%s10991_s24 + $0xb84] ss:$16 sps:$4 sm:$0xff]   ;;  %v9710_v18 = vld [vmem:[%s10991_s24 + $0xb8c] ss:$16 sps:$4 sm:$0xff]  }
 0x190   : > { %6632 = vmatprep.subr.bf16.mxu0 %v9623_v19  ;;  %7320 = vmatprep.subr.bf16.mxu1 %v9626_v20  ;;  %v9705_v19 = vld [vmem:[%s10991_s24 + $0xb80] ss:$16 sps:$4 sm:$0xff]   ;;  %v9708_v20 = vld [vmem:[%s10991_s24 + $0xb88] ss:$16 sps:$4 sm:$0xff]  }
 0x193   : > { %6633 = vmatpush1.bf16.msra.mxu0 %v9621_v21  ;;  %7321 = vmatpush1.bf16.msra.mxu1 %v9624_v22  ;;  %v9713_v21 = vld [vmem:[%s10991_s24 + $0xba4] ss:$16 sps:$4 sm:$0xff]   ;;  %v9716_v22 = vld [vmem:[%s10991_s24 + $0xbac] ss:$16 sps:$4 sm:$0xff]  }
 0x194   : > { %6634 = vmatprep.subr.bf16.mxu0 %v9629_v23  ;;  %7322 = vmatprep.subr.bf16.mxu1 %v9632_v24  ;;  %v9711_v23 = vld [vmem:[%s10991_s24 + $0xba0] ss:$16 sps:$4 sm:$0xff]   ;;  %v9714_v24 = vld [vmem:[%s10991_s24 + $0xba8] ss:$16 sps:$4 sm:$0xff]  }
 0x197   : > { %6635 = vmatpush1.bf16.msra.mxu0 %v9627_v25  ;;  %7323 = vmatpush1.bf16.msra.mxu1 %v9630_v26  ;;  %v9719_v25 = vld [vmem:[%s10991_s24 + $0xbc4] ss:$16 sps:$4 sm:$0xff]   ;;  %v9722_v26 = vld [vmem:[%s10991_s24 + $0xbcc] ss:$16 sps:$4 sm:$0xff]  }
 0x198   : > { %6647 = vmatprep.subr.bf16.mxu0 %v9635_v27  ;;  %7335 = vmatprep.subr.bf16.mxu1 %v9638_v28  ;;  %v9717_v27 = vld [vmem:[%s10991_s24 + $0xbc0] ss:$16 sps:$4 sm:$0xff]   ;;  %v9720_v28 = vld [vmem:[%s10991_s24 + $0xbc8] ss:$16 sps:$4 sm:$0xff]  }
 0x19a   : > { %6637 = vmatmul.mubr.bf16.vlgmr.msra.gmra.mrb[0].mxu0 %v264_v33  ;;  %7325 = vmatmul.mubr.bf16.vlgmr.msra.gmra.mrb[0].mxu1 %v264_v33  ;;  %v9731_v33 = vld [vmem:[%s10991_s24 + $0xc04] ss:$16 sps:$4 sm:$0xff]  }
 0x19b   : > { %6648 = vmatpush1.bf16.msra.mxu0 %v9633_v34  ;;  %7336 = vmatpush1.bf16.msra.mxu1 %v9636_v35  ;;  %v9734_v34 = vld [vmem:[%s10991_s24 + $0xc0c] ss:$16 sps:$4 sm:$0xff]   ;;  %v202_v35 = vld [vmem:[#allocation2 + $0x50] sm:$0xff] }
 0x19c   : > { %6649 = vmatprep.subr.bf16.mxu0 %v9641_v36  ;;  %7337 = vmatprep.subr.bf16.mxu1 %v9644_v37  ;;  %v234_v36 = vld [vmem:[#allocation2 + $0x150] sm:$0xff]  ;;  %v205_v37 = vld [vmem:[#allocation2 + $0x68] sm:$0xff] }
 0x19d   : > { %6679 = vmatprep.mubr.bf16.mxu0 %v267_v38  ;;  %7367 = vmatprep.mubr.bf16.mxu1 %v267_v38  ;;  %v237_v38 = vld [vmem:[#allocation2 + $0x168] sm:$0xff] }
 0x19f   : > { %6650 = vmatpush1.bf16.msra.mxu0 %v9639_v39  ;;  %7338 = vmatpush1.bf16.msra.mxu1 %v9642_v40  ;;  %v266_v39 = vpack.c.bf16 %v234_v36, %v202_v35  ;;  %v9729_v40 = vld [vmem:[%s10991_s24 + $0xc00] ss:$16 sps:$4 sm:$0xff]   ;;  %v9821_v35 = vld [vmem:[%s10991_s24 + $0xde4] ss:$16 sps:$4 sm:$0xff]   ;;  %v9824_v36 = vld [vmem:[%s10991_s24 + $0xdec] ss:$16 sps:$4 sm:$0xff]  }
 0x1a0   : > { %6651 = vmatprep.subr.bf16.mxu0 %v9647_v41  ;;  %7339 = vmatprep.subr.bf16.mxu1 %v9650_v42  ;;  %v9732_v41 = vld [vmem:[%s10991_s24 + $0xc08] ss:$16 sps:$4 sm:$0xff]   ;;  %v9737_v42 = vld [vmem:[%s10991_s24 + $0xc24] ss:$16 sps:$4 sm:$0xff]  }
 0x1a3   : > { %6652 = vmatpush1.bf16.msra.mxu0 %v9645_v43  ;;  %7340 = vmatpush1.bf16.msra.mxu1 %v9648_v44  ;;  %v9740_v43 = vld [vmem:[%s10991_s24 + $0xc2c] ss:$16 sps:$4 sm:$0xff]   ;;  %v269_v44 = vpack.c.bf16 %v237_v38, %v205_v37  ;;  %v9819_v37 = vld [vmem:[%s10991_s24 + $0xde0] ss:$16 sps:$4 sm:$0xff]   ;;  %v9822_v38 = vld [vmem:[%s10991_s24 + $0xde8] ss:$16 sps:$4 sm:$0xff]  }
 0x1a4   : > { %6653 = vmatprep.subr.bf16.mxu0 %v9653_v45  ;;  %7341 = vmatprep.subr.bf16.mxu1 %v9656_v46  ;;  %v9735_v45 = vld [vmem:[%s10991_s24 + $0xc20] ss:$16 sps:$4 sm:$0xff]   ;;  %v9738_v46 = vld [vmem:[%s10991_s24 + $0xc28] ss:$16 sps:$4 sm:$0xff]  }
 0x1a7   : > { %6654 = vmatpush1.bf16.msra.mxu0 %v9651_v47  ;;  %7342 = vmatpush1.bf16.msra.mxu1 %v9654_v48  ;;  %v9743_v47 = vld [vmem:[%s10991_s24 + $0xc44] ss:$16 sps:$4 sm:$0xff]   ;;  %v9746_v48 = vld [vmem:[%s10991_s24 + $0xc4c] ss:$16 sps:$4 sm:$0xff]  }
 0x1a8   : > { %6655 = vmatprep.subr.bf16.mxu0 %v9659_v49  ;;  %7343 = vmatprep.subr.bf16.mxu1 %v9662_v50  ;;  %v9741_v49 = vld [vmem:[%s10991_s24 + $0xc40] ss:$16 sps:$4 sm:$0xff]   ;;  %v9744_v50 = vld [vmem:[%s10991_s24 + $0xc48] ss:$16 sps:$4 sm:$0xff]  }
 0x1ab   : > { %6656 = vmatpush1.bf16.msra.mxu0 %v9657_v51  ;;  %7344 = vmatpush1.bf16.msra.mxu1 %v9660_v52  ;;  %v9749_v51 = vld [vmem:[%s10991_s24 + $0xc64] ss:$16 sps:$4 sm:$0xff]   ;;  %v9752_v52 = vld [vmem:[%s10991_s24 + $0xc6c] ss:$16 sps:$4 sm:$0xff]  }
 0x1ac   : > { %6657 = vmatprep.subr.bf16.mxu0 %v9665_v53  ;;  %7345 = vmatprep.subr.bf16.mxu1 %v9668_v54  ;;  %v9747_v53 = vld [vmem:[%s10991_s24 + $0xc60] ss:$16 sps:$4 sm:$0xff]   ;;  %v9750_v54 = vld [vmem:[%s10991_s24 + $0xc68] ss:$16 sps:$4 sm:$0xff]  }
 0x1af   : > { %6658 = vmatpush1.bf16.msra.mxu0 %v9663_v55  ;;  %7346 = vmatpush1.bf16.msra.mxu1 %v9666_v56  ;;  %v9755_v55 = vld [vmem:[%s10991_s24 + $0xc84] ss:$16 sps:$4 sm:$0xff]   ;;  %v9758_v56 = vld [vmem:[%s10991_s24 + $0xc8c] ss:$16 sps:$4 sm:$0xff]  }
 0x1b0   : > { %6659 = vmatprep.subr.bf16.mxu0 %v9671_v57  ;;  %7347 = vmatprep.subr.bf16.mxu1 %v9674_v58  ;;  %v9753_v57 = vld [vmem:[%s10991_s24 + $0xc80] ss:$16 sps:$4 sm:$0xff]   ;;  %v9756_v58 = vld [vmem:[%s10991_s24 + $0xc88] ss:$16 sps:$4 sm:$0xff]  }
 0x1b3   : > { %6660 = vmatpush1.bf16.msra.mxu0 %v9669_v59  ;;  %7348 = vmatpush1.bf16.msra.mxu1 %v9672_v60  ;;  %v9761_v59 = vld [vmem:[%s10991_s24 + $0xca4] ss:$16 sps:$4 sm:$0xff]   ;;  %v9764_v60 = vld [vmem:[%s10991_s24 + $0xcac] ss:$16 sps:$4 sm:$0xff]  }
 0x1b4   : > { %6661 = vmatprep.subr.bf16.mxu0 %v9677_v61  ;;  %7349 = vmatprep.subr.bf16.mxu1 %v9680_v62  ;;  %v9759_v61 = vld [vmem:[%s10991_s24 + $0xca0] ss:$16 sps:$4 sm:$0xff]   ;;  %v9762_v62 = vld [vmem:[%s10991_s24 + $0xca8] ss:$16 sps:$4 sm:$0xff]  }
 0x1b7   : > { %6662 = vmatpush1.bf16.msra.mxu0 %v9675_v63  ;;  %7350 = vmatpush1.bf16.msra.mxu1 %v9678_v0  ;;  %v9767_v63 = vld [vmem:[%s10991_s24 + $0xcc4] ss:$16 sps:$4 sm:$0xff]   ;;  %v9770_v0 = vld [vmem:[%s10991_s24 + $0xccc] ss:$16 sps:$4 sm:$0xff]  }
 0x1b8   : > { %6663 = vmatprep.subr.bf16.mxu0 %v9683_v1  ;;  %7351 = vmatprep.subr.bf16.mxu1 %v9686_v2  ;;  %v9765_v1 = vld [vmem:[%s10991_s24 + $0xcc0] ss:$16 sps:$4 sm:$0xff]   ;;  %v9768_v2 = vld [vmem:[%s10991_s24 + $0xcc8] ss:$16 sps:$4 sm:$0xff]  }
 0x1bb   : > { %6664 = vmatpush1.bf16.msra.mxu0 %v9681_v3  ;;  %7352 = vmatpush1.bf16.msra.mxu1 %v9684_v4  ;;  %v9773_v3 = vld [vmem:[%s10991_s24 + $0xce4] ss:$16 sps:$4 sm:$0xff]   ;;  %v9776_v4 = vld [vmem:[%s10991_s24 + $0xcec] ss:$16 sps:$4 sm:$0xff]  }
 0x1bc   : > { %6665 = vmatprep.subr.bf16.mxu0 %v9689_v5  ;;  %7353 = vmatprep.subr.bf16.mxu1 %v9692_v6  ;;  %v9771_v5 = vld [vmem:[%s10991_s24 + $0xce0] ss:$16 sps:$4 sm:$0xff]   ;;  %v9774_v6 = vld [vmem:[%s10991_s24 + $0xce8] ss:$16 sps:$4 sm:$0xff]  }
 0x1bf   : > { %6666 = vmatpush1.bf16.msra.mxu0 %v9687_v7  ;;  %7354 = vmatpush1.bf16.msra.mxu1 %v9690_v8  ;;  %v9779_v7 = vld [vmem:[%s10991_s24 + $0xd04] ss:$16 sps:$4 sm:$0xff]   ;;  %v9782_v8 = vld [vmem:[%s10991_s24 + $0xd0c] ss:$16 sps:$4 sm:$0xff]  }
 0x1c0   : > { %6667 = vmatprep.subr.bf16.mxu0 %v9695_v9  ;;  %7355 = vmatprep.subr.bf16.mxu1 %v9698_v10  ;;  %v9777_v9 = vld [vmem:[%s10991_s24 + $0xd00] ss:$16 sps:$4 sm:$0xff]   ;;  %v9780_v10 = vld [vmem:[%s10991_s24 + $0xd08] ss:$16 sps:$4 sm:$0xff]  }
 0x1c3   : > { %6668 = vmatpush1.bf16.msra.mxu0 %v9693_v11  ;;  %7356 = vmatpush1.bf16.msra.mxu1 %v9696_v12  ;;  %v9785_v11 = vld [vmem:[%s10991_s24 + $0xd24] ss:$16 sps:$4 sm:$0xff]   ;;  %v9788_v12 = vld [vmem:[%s10991_s24 + $0xd2c] ss:$16 sps:$4 sm:$0xff]  }
 0x1c4   : > { %6669 = vmatprep.subr.bf16.mxu0 %v9701_v13  ;;  %7357 = vmatprep.subr.bf16.mxu1 %v9704_v14  ;;  %v9783_v13 = vld [vmem:[%s10991_s24 + $0xd20] ss:$16 sps:$4 sm:$0xff]   ;;  %v9786_v14 = vld [vmem:[%s10991_s24 + $0xd28] ss:$16 sps:$4 sm:$0xff]  }
 0x1c7   : > { %6670 = vmatpush1.bf16.msra.mxu0 %v9699_v15  ;;  %7358 = vmatpush1.bf16.msra.mxu1 %v9702_v16  ;;  %v9791_v15 = vld [vmem:[%s10991_s24 + $0xd44] ss:$16 sps:$4 sm:$0xff]   ;;  %v9794_v16 = vld [vmem:[%s10991_s24 + $0xd4c] ss:$16 sps:$4 sm:$0xff]  }
 0x1c8   : > { %6671 = vmatprep.subr.bf16.mxu0 %v9707_v17  ;;  %7359 = vmatprep.subr.bf16.mxu1 %v9710_v18  ;;  %v9789_v17 = vld [vmem:[%s10991_s24 + $0xd40] ss:$16 sps:$4 sm:$0xff]   ;;  %v9792_v18 = vld [vmem:[%s10991_s24 + $0xd48] ss:$16 sps:$4 sm:$0xff]  }
 0x1cb   : > { %6672 = vmatpush1.bf16.msra.mxu0 %v9705_v19  ;;  %7360 = vmatpush1.bf16.msra.mxu1 %v9708_v20  ;;  %v9797_v19 = vld [vmem:[%s10991_s24 + $0xd64] ss:$16 sps:$4 sm:$0xff]   ;;  %v9800_v20 = vld [vmem:[%s10991_s24 + $0xd6c] ss:$16 sps:$4 sm:$0xff]  }
 0x1cc   : > { %6673 = vmatprep.subr.bf16.mxu0 %v9713_v21  ;;  %7361 = vmatprep.subr.bf16.mxu1 %v9716_v22  ;;  %v9795_v21 = vld [vmem:[%s10991_s24 + $0xd60] ss:$16 sps:$4 sm:$0xff]   ;;  %v9798_v22 = vld [vmem:[%s10991_s24 + $0xd68] ss:$16 sps:$4 sm:$0xff]  }
 0x1cf   : > { %6674 = vmatpush1.bf16.msra.mxu0 %v9711_v23  ;;  %7362 = vmatpush1.bf16.msra.mxu1 %v9714_v24  ;;  %v9803_v23 = vld [vmem:[%s10991_s24 + $0xd84] ss:$16 sps:$4 sm:$0xff]   ;;  %v9806_v24 = vld [vmem:[%s10991_s24 + $0xd8c] ss:$16 sps:$4 sm:$0xff]  }
 0x1d0   : > { %6675 = vmatprep.subr.bf16.mxu0 %v9719_v25  ;;  %7363 = vmatprep.subr.bf16.mxu1 %v9722_v26  ;;  %v9801_v25 = vld [vmem:[%s10991_s24 + $0xd80] ss:$16 sps:$4 sm:$0xff]   ;;  %v9804_v26 = vld [vmem:[%s10991_s24 + $0xd88] ss:$16 sps:$4 sm:$0xff]  }
 0x1d3   : > { %6676 = vmatpush1.bf16.msra.mxu0 %v9717_v27  ;;  %7364 = vmatpush1.bf16.msra.mxu1 %v9720_v28  ;;  %v9809_v27 = vld [vmem:[%s10991_s24 + $0xda4] ss:$16 sps:$4 sm:$0xff]   ;;  %v9812_v28 = vld [vmem:[%s10991_s24 + $0xdac] ss:$16 sps:$4 sm:$0xff]  }
 0x1d4   : > { %6677 = vmatprep.subr.bf16.mxu0 %v9725_v29  ;;  %7365 = vmatprep.subr.bf16.mxu1 %v9728_v30  ;;  %v9807_v29 = vld [vmem:[%s10991_s24 + $0xda0] ss:$16 sps:$4 sm:$0xff]   ;;  %v9810_v30 = vld [vmem:[%s10991_s24 + $0xda8] ss:$16 sps:$4 sm:$0xff]  }
 0x1d7   : > { %6678 = vmatpush1.bf16.msra.mxu0 %v9723_v31  ;;  %7366 = vmatpush1.bf16.msra.mxu1 %v9726_v32  ;;  %v9815_v31 = vld [vmem:[%s10991_s24 + $0xdc4] ss:$16 sps:$4 sm:$0xff]   ;;  %v9818_v32 = vld [vmem:[%s10991_s24 + $0xdcc] ss:$16 sps:$4 sm:$0xff]  }
 0x1d8   : > { %6690 = vmatprep.subr.bf16.mxu0 %v9731_v33  ;;  %7378 = vmatprep.subr.bf16.mxu1 %v9734_v34  ;;  %v9813_v33 = vld [vmem:[%s10991_s24 + $0xdc0] ss:$16 sps:$4 sm:$0xff]   ;;  %v9816_v34 = vld [vmem:[%s10991_s24 + $0xdc8] ss:$16 sps:$4 sm:$0xff]  }
 0x1da   : > { %6680 = vmatmul.mubr.bf16.vlgmr.msra.gmra.mrb[0].mxu0 %v266_v39  ;;  %7368 = vmatmul.mubr.bf16.vlgmr.msra.gmra.mrb[0].mxu1 %v266_v39  ;;  %v9827_v39 = vld [vmem:[%s10991_s24 + $0xe04] ss:$16 sps:$4 sm:$0xff]  }
 0x1db   : > { %6691 = vmatpush1.bf16.msra.mxu0 %v9729_v40  ;;  %7379 = vmatpush1.bf16.msra.mxu1 %v9732_v41  ;;  %v9830_v40 = vld [vmem:[%s10991_s24 + $0xe0c] ss:$16 sps:$4 sm:$0xff]   ;;  %v204_v41 = vld [vmem:[#allocation2 + $0x60] sm:$0xff] }
 0x1dc   : > { %6692 = vmatprep.subr.bf16.mxu0 %v9737_v42  ;;  %7380 = vmatprep.subr.bf16.mxu1 %v9740_v43  ;;  %v236_v42 = vld [vmem:[#allocation2 + $0x160] sm:$0xff]  ;;  %v207_v43 = vld [vmem:[#allocation2 + $0x78] sm:$0xff] }
 0x1dd   : > { %6722 = vmatprep.mubr.bf16.mxu0 %v269_v44  ;;  %7410 = vmatprep.mubr.bf16.mxu1 %v269_v44  ;;  %v239_v44 = vld [vmem:[#allocation2 + $0x178] sm:$0xff] }
 0x1df   : > { %6693 = vmatpush1.bf16.msra.mxu0 %v9735_v45  ;;  %7381 = vmatpush1.bf16.msra.mxu1 %v9738_v46  ;;  %v268_v45 = vpack.c.bf16 %v236_v42, %v204_v41  ;;  %v9825_v46 = vld [vmem:[%s10991_s24 + $0xe00] ss:$16 sps:$4 sm:$0xff]   ;;  %v9917_v41 = vld [vmem:[%s10991_s24 + $0xfe4] ss:$16 sps:$4 sm:$0xff]   ;;  %v9920_v42 = vld [vmem:[%s10991_s24 + $0xfec] ss:$16 sps:$4 sm:$0xff]  }
 0x1e0   : > { %6694 = vmatprep.subr.bf16.mxu0 %v9743_v47  ;;  %7382 = vmatprep.subr.bf16.mxu1 %v9746_v48  ;;  %v9828_v47 = vld [vmem:[%s10991_s24 + $0xe08] ss:$16 sps:$4 sm:$0xff]   ;;  %v9833_v48 = vld [vmem:[%s10991_s24 + $0xe24] ss:$16 sps:$4 sm:$0xff]  }
 0x1e3   : > { %6695 = vmatpush1.bf16.msra.mxu0 %v9741_v49  ;;  %7383 = vmatpush1.bf16.msra.mxu1 %v9744_v50  ;;  %v9836_v49 = vld [vmem:[%s10991_s24 + $0xe2c] ss:$16 sps:$4 sm:$0xff]   ;;  %v271_v50 = vpack.c.bf16 %v239_v44, %v207_v43  ;;  %v9915_v43 = vld [vmem:[%s10991_s24 + $0xfe0] ss:$16 sps:$4 sm:$0xff]   ;;  %v9918_v44 = vld [vmem:[%s10991_s24 + $0xfe8] ss:$16 sps:$4 sm:$0xff]  }
 0x1e4   : > { %6696 = vmatprep.subr.bf16.mxu0 %v9749_v51  ;;  %7384 = vmatprep.subr.bf16.mxu1 %v9752_v52  ;;  %v9831_v51 = vld [vmem:[%s10991_s24 + $0xe20] ss:$16 sps:$4 sm:$0xff]   ;;  %v9834_v52 = vld [vmem:[%s10991_s24 + $0xe28] ss:$16 sps:$4 sm:$0xff]  }
 0x1e7   : > { %6697 = vmatpush1.bf16.msra.mxu0 %v9747_v53  ;;  %7385 = vmatpush1.bf16.msra.mxu1 %v9750_v54  ;;  %v9839_v53 = vld [vmem:[%s10991_s24 + $0xe44] ss:$16 sps:$4 sm:$0xff]   ;;  %v9842_v54 = vld [vmem:[%s10991_s24 + $0xe4c] ss:$16 sps:$4 sm:$0xff]  }
 0x1e8   : > { %6698 = vmatprep.subr.bf16.mxu0 %v9755_v55  ;;  %7386 = vmatprep.subr.bf16.mxu1 %v9758_v56  ;;  %v9837_v55 = vld [vmem:[%s10991_s24 + $0xe40] ss:$16 sps:$4 sm:$0xff]   ;;  %v9840_v56 = vld [vmem:[%s10991_s24 + $0xe48] ss:$16 sps:$4 sm:$0xff]  }
 0x1eb   : > { %6699 = vmatpush1.bf16.msra.mxu0 %v9753_v57  ;;  %7387 = vmatpush1.bf16.msra.mxu1 %v9756_v58  ;;  %v9845_v57 = vld [vmem:[%s10991_s24 + $0xe64] ss:$16 sps:$4 sm:$0xff]   ;;  %v9848_v58 = vld [vmem:[%s10991_s24 + $0xe6c] ss:$16 sps:$4 sm:$0xff]  }
 0x1ec   : > { %6700 = vmatprep.subr.bf16.mxu0 %v9761_v59  ;;  %7388 = vmatprep.subr.bf16.mxu1 %v9764_v60  ;;  %v9843_v59 = vld [vmem:[%s10991_s24 + $0xe60] ss:$16 sps:$4 sm:$0xff]   ;;  %v9846_v60 = vld [vmem:[%s10991_s24 + $0xe68] ss:$16 sps:$4 sm:$0xff]  }
 0x1ef   : > { %6701 = vmatpush1.bf16.msra.mxu0 %v9759_v61  ;;  %7389 = vmatpush1.bf16.msra.mxu1 %v9762_v62  ;;  %v9851_v61 = vld [vmem:[%s10991_s24 + $0xe84] ss:$16 sps:$4 sm:$0xff]   ;;  %v9854_v62 = vld [vmem:[%s10991_s24 + $0xe8c] ss:$16 sps:$4 sm:$0xff]  }
 0x1f0   : > { %6702 = vmatprep.subr.bf16.mxu0 %v9767_v63  ;;  %7390 = vmatprep.subr.bf16.mxu1 %v9770_v0  ;;  %v9849_v63 = vld [vmem:[%s10991_s24 + $0xe80] ss:$16 sps:$4 sm:$0xff]   ;;  %v9852_v0 = vld [vmem:[%s10991_s24 + $0xe88] ss:$16 sps:$4 sm:$0xff]  }
 0x1f3   : > { %6703 = vmatpush1.bf16.msra.mxu0 %v9765_v1  ;;  %7391 = vmatpush1.bf16.msra.mxu1 %v9768_v2  ;;  %v9857_v1 = vld [vmem:[%s10991_s24 + $0xea4] ss:$16 sps:$4 sm:$0xff]   ;;  %v9860_v2 = vld [vmem:[%s10991_s24 + $0xeac] ss:$16 sps:$4 sm:$0xff]  }
 0x1f4   : > { %6704 = vmatprep.subr.bf16.mxu0 %v9773_v3  ;;  %7392 = vmatprep.subr.bf16.mxu1 %v9776_v4  ;;  %v9855_v3 = vld [vmem:[%s10991_s24 + $0xea0] ss:$16 sps:$4 sm:$0xff]   ;;  %v9858_v4 = vld [vmem:[%s10991_s24 + $0xea8] ss:$16 sps:$4 sm:$0xff]  }
 0x1f7   : > { %6705 = vmatpush1.bf16.msra.mxu0 %v9771_v5  ;;  %7393 = vmatpush1.bf16.msra.mxu1 %v9774_v6  ;;  %v9863_v5 = vld [vmem:[%s10991_s24 + $0xec4] ss:$16 sps:$4 sm:$0xff]   ;;  %v9866_v6 = vld [vmem:[%s10991_s24 + $0xecc] ss:$16 sps:$4 sm:$0xff]  }
 0x1f8   : > { %6706 = vmatprep.subr.bf16.mxu0 %v9779_v7  ;;  %7394 = vmatprep.subr.bf16.mxu1 %v9782_v8  ;;  %v9861_v7 = vld [vmem:[%s10991_s24 + $0xec0] ss:$16 sps:$4 sm:$0xff]   ;;  %v9864_v8 = vld [vmem:[%s10991_s24 + $0xec8] ss:$16 sps:$4 sm:$0xff]  }
 0x1fb   : > { %6707 = vmatpush1.bf16.msra.mxu0 %v9777_v9  ;;  %7395 = vmatpush1.bf16.msra.mxu1 %v9780_v10  ;;  %v9869_v9 = vld [vmem:[%s10991_s24 + $0xee4] ss:$16 sps:$4 sm:$0xff]   ;;  %v9872_v10 = vld [vmem:[%s10991_s24 + $0xeec] ss:$16 sps:$4 sm:$0xff]  }
 0x1fc   : > { %6708 = vmatprep.subr.bf16.mxu0 %v9785_v11  ;;  %7396 = vmatprep.subr.bf16.mxu1 %v9788_v12  ;;  %v9867_v11 = vld [vmem:[%s10991_s24 + $0xee0] ss:$16 sps:$4 sm:$0xff]   ;;  %v9870_v12 = vld [vmem:[%s10991_s24 + $0xee8] ss:$16 sps:$4 sm:$0xff]  }
 0x1ff   : > { %6709 = vmatpush1.bf16.msra.mxu0 %v9783_v13  ;;  %7397 = vmatpush1.bf16.msra.mxu1 %v9786_v14  ;;  %v9875_v13 = vld [vmem:[%s10991_s24 + $0xf04] ss:$16 sps:$4 sm:$0xff]   ;;  %v9878_v14 = vld [vmem:[%s10991_s24 + $0xf0c] ss:$16 sps:$4 sm:$0xff]  }
 0x200   : > { %6710 = vmatprep.subr.bf16.mxu0 %v9791_v15  ;;  %7398 = vmatprep.subr.bf16.mxu1 %v9794_v16  ;;  %v9873_v15 = vld [vmem:[%s10991_s24 + $0xf00] ss:$16 sps:$4 sm:$0xff]   ;;  %v9876_v16 = vld [vmem:[%s10991_s24 + $0xf08] ss:$16 sps:$4 sm:$0xff]  }
 0x203   : > { %6711 = vmatpush1.bf16.msra.mxu0 %v9789_v17  ;;  %7399 = vmatpush1.bf16.msra.mxu1 %v9792_v18  ;;  %v9881_v17 = vld [vmem:[%s10991_s24 + $0xf24] ss:$16 sps:$4 sm:$0xff]   ;;  %v9884_v18 = vld [vmem:[%s10991_s24 + $0xf2c] ss:$16 sps:$4 sm:$0xff]  }
 0x204   : > { %6712 = vmatprep.subr.bf16.mxu0 %v9797_v19  ;;  %7400 = vmatprep.subr.bf16.mxu1 %v9800_v20  ;;  %v9879_v19 = vld [vmem:[%s10991_s24 + $0xf20] ss:$16 sps:$4 sm:$0xff]   ;;  %v9882_v20 = vld [vmem:[%s10991_s24 + $0xf28] ss:$16 sps:$4 sm:$0xff]  }
 0x207   : > { %6713 = vmatpush1.bf16.msra.mxu0 %v9795_v21  ;;  %7401 = vmatpush1.bf16.msra.mxu1 %v9798_v22  ;;  %v9887_v21 = vld [vmem:[%s10991_s24 + $0xf44] ss:$16 sps:$4 sm:$0xff]   ;;  %v9890_v22 = vld [vmem:[%s10991_s24 + $0xf4c] ss:$16 sps:$4 sm:$0xff]  }
 0x208   : > { %6714 = vmatprep.subr.bf16.mxu0 %v9803_v23  ;;  %7402 = vmatprep.subr.bf16.mxu1 %v9806_v24  ;;  %v9885_v23 = vld [vmem:[%s10991_s24 + $0xf40] ss:$16 sps:$4 sm:$0xff]   ;;  %v9888_v24 = vld [vmem:[%s10991_s24 + $0xf48] ss:$16 sps:$4 sm:$0xff]  }
 0x20b   : > { %6715 = vmatpush1.bf16.msra.mxu0 %v9801_v25  ;;  %7403 = vmatpush1.bf16.msra.mxu1 %v9804_v26  ;;  %v9893_v25 = vld [vmem:[%s10991_s24 + $0xf64] ss:$16 sps:$4 sm:$0xff]   ;;  %v9896_v26 = vld [vmem:[%s10991_s24 + $0xf6c] ss:$16 sps:$4 sm:$0xff]  }
 0x20c   : > { %6716 = vmatprep.subr.bf16.mxu0 %v9809_v27  ;;  %7404 = vmatprep.subr.bf16.mxu1 %v9812_v28  ;;  %v9891_v27 = vld [vmem:[%s10991_s24 + $0xf60] ss:$16 sps:$4 sm:$0xff]   ;;  %v9894_v28 = vld [vmem:[%s10991_s24 + $0xf68] ss:$16 sps:$4 sm:$0xff]  }
 0x20f   : > { %6717 = vmatpush1.bf16.msra.mxu0 %v9807_v29  ;;  %7405 = vmatpush1.bf16.msra.mxu1 %v9810_v30  ;;  %v9899_v29 = vld [vmem:[%s10991_s24 + $0xf84] ss:$16 sps:$4 sm:$0xff]   ;;  %v9902_v30 = vld [vmem:[%s10991_s24 + $0xf8c] ss:$16 sps:$4 sm:$0xff]  }
 0x210   : > { %6718 = vmatprep.subr.bf16.mxu0 %v9815_v31  ;;  %7406 = vmatprep.subr.bf16.mxu1 %v9818_v32  ;;  %v9897_v31 = vld [vmem:[%s10991_s24 + $0xf80] ss:$16 sps:$4 sm:$0xff]   ;;  %v9900_v32 = vld [vmem:[%s10991_s24 + $0xf88] ss:$16 sps:$4 sm:$0xff]  }
 0x213   : > { %6719 = vmatpush1.bf16.msra.mxu0 %v9813_v33  ;;  %7407 = vmatpush1.bf16.msra.mxu1 %v9816_v34  ;;  %v9905_v33 = vld [vmem:[%s10991_s24 + $0xfa4] ss:$16 sps:$4 sm:$0xff]   ;;  %v9908_v34 = vld [vmem:[%s10991_s24 + $0xfac] ss:$16 sps:$4 sm:$0xff]  }
 0x214   : > { %6720 = vmatprep.subr.bf16.mxu0 %v9821_v35  ;;  %7408 = vmatprep.subr.bf16.mxu1 %v9824_v36  ;;  %v9903_v35 = vld [vmem:[%s10991_s24 + $0xfa0] ss:$16 sps:$4 sm:$0xff]   ;;  %v9906_v36 = vld [vmem:[%s10991_s24 + $0xfa8] ss:$16 sps:$4 sm:$0xff]  }
 0x217   : > { %6721 = vmatpush1.bf16.msra.mxu0 %v9819_v37  ;;  %7409 = vmatpush1.bf16.msra.mxu1 %v9822_v38  ;;  %v9911_v37 = vld [vmem:[%s10991_s24 + $0xfc4] ss:$16 sps:$4 sm:$0xff]   ;;  %v9914_v38 = vld [vmem:[%s10991_s24 + $0xfcc] ss:$16 sps:$4 sm:$0xff]  }
 0x218   : > { %6733 = vmatprep.subr.bf16.mxu0 %v9827_v39  ;;  %7421 = vmatprep.subr.bf16.mxu1 %v9830_v40  ;;  %v9909_v39 = vld [vmem:[%s10991_s24 + $0xfc0] ss:$16 sps:$4 sm:$0xff]   ;;  %v9912_v40 = vld [vmem:[%s10991_s24 + $0xfc8] ss:$16 sps:$4 sm:$0xff]  }
 0x21a   : > { %6723 = vmatmul.mubr.bf16.vlgmr.msra.gmra.mrb[0].mxu0 %v268_v45  ;;  %7411 = vmatmul.mubr.bf16.vlgmr.msra.gmra.mrb[0].mxu1 %v268_v45  ;;  %v9923_v45 = vld [vmem:[%s10991_s24 + $0x1004] ss:$16 sps:$4 sm:$0xff]  }
 0x21b   : > { %6734 = vmatpush1.bf16.msra.mxu0 %v9825_v46  ;;  %7422 = vmatpush1.bf16.msra.mxu1 %v9828_v47  ;;  %v9926_v46 = vld [vmem:[%s10991_s24 + $0x100c] ss:$16 sps:$4 sm:$0xff]   ;;  %v206_v47 = vld [vmem:[#allocation2 + $0x70] sm:$0xff] }
 0x21c   : > { %6735 = vmatprep.subr.bf16.mxu0 %v9833_v48  ;;  %7423 = vmatprep.subr.bf16.mxu1 %v9836_v49  ;;  %v238_v48 = vld [vmem:[#allocation2 + $0x170] sm:$0xff]  ;;  %v209_v49 = vld [vmem:[#allocation2 + $0x88] sm:$0xff] }
 0x21d   : > { %6765 = vmatprep.mubr.bf16.mxu0 %v271_v50  ;;  %7453 = vmatprep.mubr.bf16.mxu1 %v271_v50  ;;  %v241_v50 = vld [vmem:[#allocation2 + $0x188] sm:$0xff] }
 0x21f   : > { %6736 = vmatpush1.bf16.msra.mxu0 %v9831_v51  ;;  %7424 = vmatpush1.bf16.msra.mxu1 %v9834_v52  ;;  %v270_v51 = vpack.c.bf16 %v238_v48, %v206_v47  ;;  %v9921_v52 = vld [vmem:[%s10991_s24 + $0x1000] ss:$16 sps:$4 sm:$0xff]   ;;  %v10013_v47 = vld [vmem:[%s10991_s24 + $0x11e4] ss:$16 sps:$4 sm:$0xff]   ;;  %v10016_v48 = vld [vmem:[%s10991_s24 + $0x11ec] ss:$16 sps:$4 sm:$0xff]  }
 0x220   : > { %6737 = vmatprep.subr.bf16.mxu0 %v9839_v53  ;;  %7425 = vmatprep.subr.bf16.mxu1 %v9842_v54  ;;  %v9924_v53 = vld [vmem:[%s10991_s24 + $0x1008] ss:$16 sps:$4 sm:$0xff]   ;;  %v9929_v54 = vld [vmem:[%s10991_s24 + $0x1024] ss:$16 sps:$4 sm:$0xff]  }
 0x223   : > { %6738 = vmatpush1.bf16.msra.mxu0 %v9837_v55  ;;  %7426 = vmatpush1.bf16.msra.mxu1 %v9840_v56  ;;  %v9932_v55 = vld [vmem:[%s10991_s24 + $0x102c] ss:$16 sps:$4 sm:$0xff]   ;;  %v273_v56 = vpack.c.bf16 %v241_v50, %v209_v49  ;;  %v10011_v49 = vld [vmem:[%s10991_s24 + $0x11e0] ss:$16 sps:$4 sm:$0xff]   ;;  %v10014_v50 = vld [vmem:[%s10991_s24 + $0x11e8] ss:$16 sps:$4 sm:$0xff]  }
 0x224   : > { %6739 = vmatprep.subr.bf16.mxu0 %v9845_v57  ;;  %7427 = vmatprep.subr.bf16.mxu1 %v9848_v58  ;;  %v9927_v57 = vld [vmem:[%s10991_s24 + $0x1020] ss:$16 sps:$4 sm:$0xff]   ;;  %v9930_v58 = vld [vmem:[%s10991_s24 + $0x1028] ss:$16 sps:$4 sm:$0xff]  }
 0x227   : > { %6740 = vmatpush1.bf16.msra.mxu0 %v9843_v59  ;;  %7428 = vmatpush1.bf16.msra.mxu1 %v9846_v60  ;;  %v9935_v59 = vld [vmem:[%s10991_s24 + $0x1044] ss:$16 sps:$4 sm:$0xff]   ;;  %v9938_v60 = vld [vmem:[%s10991_s24 + $0x104c] ss:$16 sps:$4 sm:$0xff]  }
 0x228   : > { %6741 = vmatprep.subr.bf16.mxu0 %v9851_v61  ;;  %7429 = vmatprep.subr.bf16.mxu1 %v9854_v62  ;;  %v9933_v61 = vld [vmem:[%s10991_s24 + $0x1040] ss:$16 sps:$4 sm:$0xff]   ;;  %v9936_v62 = vld [vmem:[%s10991_s24 + $0x1048] ss:$16 sps:$4 sm:$0xff]  }
 0x22b   : > { %6742 = vmatpush1.bf16.msra.mxu0 %v9849_v63  ;;  %7430 = vmatpush1.bf16.msra.mxu1 %v9852_v0  ;;  %v9941_v63 = vld [vmem:[%s10991_s24 + $0x1064] ss:$16 sps:$4 sm:$0xff]   ;;  %v9944_v0 = vld [vmem:[%s10991_s24 + $0x106c] ss:$16 sps:$4 sm:$0xff]  }
 0x22c   : > { %6743 = vmatprep.subr.bf16.mxu0 %v9857_v1  ;;  %7431 = vmatprep.subr.bf16.mxu1 %v9860_v2  ;;  %v9939_v1 = vld [vmem:[%s10991_s24 + $0x1060] ss:$16 sps:$4 sm:$0xff]   ;;  %v9942_v2 = vld [vmem:[%s10991_s24 + $0x1068] ss:$16 sps:$4 sm:$0xff]  }
 0x22f   : > { %6744 = vmatpush1.bf16.msra.mxu0 %v9855_v3  ;;  %7432 = vmatpush1.bf16.msra.mxu1 %v9858_v4  ;;  %v9947_v3 = vld [vmem:[%s10991_s24 + $0x1084] ss:$16 sps:$4 sm:$0xff]   ;;  %v9950_v4 = vld [vmem:[%s10991_s24 + $0x108c] ss:$16 sps:$4 sm:$0xff]  }
 0x230   : > { %6745 = vmatprep.subr.bf16.mxu0 %v9863_v5  ;;  %7433 = vmatprep.subr.bf16.mxu1 %v9866_v6  ;;  %v9945_v5 = vld [vmem:[%s10991_s24 + $0x1080] ss:$16 sps:$4 sm:$0xff]   ;;  %v9948_v6 = vld [vmem:[%s10991_s24 + $0x1088] ss:$16 sps:$4 sm:$0xff]  }
 0x233   : > { %6746 = vmatpush1.bf16.msra.mxu0 %v9861_v7  ;;  %7434 = vmatpush1.bf16.msra.mxu1 %v9864_v8  ;;  %v9953_v7 = vld [vmem:[%s10991_s24 + $0x10a4] ss:$16 sps:$4 sm:$0xff]   ;;  %v9956_v8 = vld [vmem:[%s10991_s24 + $0x10ac] ss:$16 sps:$4 sm:$0xff]  }
 0x234   : > { %6747 = vmatprep.subr.bf16.mxu0 %v9869_v9  ;;  %7435 = vmatprep.subr.bf16.mxu1 %v9872_v10  ;;  %v9951_v9 = vld [vmem:[%s10991_s24 + $0x10a0] ss:$16 sps:$4 sm:$0xff]   ;;  %v9954_v10 = vld [vmem:[%s10991_s24 + $0x10a8] ss:$16 sps:$4 sm:$0xff]  }
 0x237   : > { %6748 = vmatpush1.bf16.msra.mxu0 %v9867_v11  ;;  %7436 = vmatpush1.bf16.msra.mxu1 %v9870_v12  ;;  %v9959_v11 = vld [vmem:[%s10991_s24 + $0x10c4] ss:$16 sps:$4 sm:$0xff]   ;;  %v9962_v12 = vld [vmem:[%s10991_s24 + $0x10cc] ss:$16 sps:$4 sm:$0xff]  }
 0x238   : > { %6749 = vmatprep.subr.bf16.mxu0 %v9875_v13  ;;  %7437 = vmatprep.subr.bf16.mxu1 %v9878_v14  ;;  %v9957_v13 = vld [vmem:[%s10991_s24 + $0x10c0] ss:$16 sps:$4 sm:$0xff]   ;;  %v9960_v14 = vld [vmem:[%s10991_s24 + $0x10c8] ss:$16 sps:$4 sm:$0xff]  }
 0x23b   : > { %6750 = vmatpush1.bf16.msra.mxu0 %v9873_v15  ;;  %7438 = vmatpush1.bf16.msra.mxu1 %v9876_v16  ;;  %v9965_v15 = vld [vmem:[%s10991_s24 + $0x10e4] ss:$16 sps:$4 sm:$0xff]   ;;  %v9968_v16 = vld [vmem:[%s10991_s24 + $0x10ec] ss:$16 sps:$4 sm:$0xff]  }
 0x23c   : > { %6751 = vmatprep.subr.bf16.mxu0 %v9881_v17  ;;  %7439 = vmatprep.subr.bf16.mxu1 %v9884_v18  ;;  %v9963_v17 = vld [vmem:[%s10991_s24 + $0x10e0] ss:$16 sps:$4 sm:$0xff]   ;;  %v9966_v18 = vld [vmem:[%s10991_s24 + $0x10e8] ss:$16 sps:$4 sm:$0xff]  }
 0x23f   : > { %6752 = vmatpush1.bf16.msra.mxu0 %v9879_v19  ;;  %7440 = vmatpush1.bf16.msra.mxu1 %v9882_v20  ;;  %v9971_v19 = vld [vmem:[%s10991_s24 + $0x1104] ss:$16 sps:$4 sm:$0xff]   ;;  %v9974_v20 = vld [vmem:[%s10991_s24 + $0x110c] ss:$16 sps:$4 sm:$0xff]  }
 0x240   : > { %6753 = vmatprep.subr.bf16.mxu0 %v9887_v21  ;;  %7441 = vmatprep.subr.bf16.mxu1 %v9890_v22  ;;  %v9969_v21 = vld [vmem:[%s10991_s24 + $0x1100] ss:$16 sps:$4 sm:$0xff]   ;;  %v9972_v22 = vld [vmem:[%s10991_s24 + $0x1108] ss:$16 sps:$4 sm:$0xff]  }
 0x243   : > { %6754 = vmatpush1.bf16.msra.mxu0 %v9885_v23  ;;  %7442 = vmatpush1.bf16.msra.mxu1 %v9888_v24  ;;  %v9977_v23 = vld [vmem:[%s10991_s24 + $0x1124] ss:$16 sps:$4 sm:$0xff]   ;;  %v9980_v24 = vld [vmem:[%s10991_s24 + $0x112c] ss:$16 sps:$4 sm:$0xff]  }
 0x244   : > { %6755 = vmatprep.subr.bf16.mxu0 %v9893_v25  ;;  %7443 = vmatprep.subr.bf16.mxu1 %v9896_v26  ;;  %v9975_v25 = vld [vmem:[%s10991_s24 + $0x1120] ss:$16 sps:$4 sm:$0xff]   ;;  %v9978_v26 = vld [vmem:[%s10991_s24 + $0x1128] ss:$16 sps:$4 sm:$0xff]  }
 0x247   : > { %6756 = vmatpush1.bf16.msra.mxu0 %v9891_v27  ;;  %7444 = vmatpush1.bf16.msra.mxu1 %v9894_v28  ;;  %v9983_v27 = vld [vmem:[%s10991_s24 + $0x1144] ss:$16 sps:$4 sm:$0xff]   ;;  %v9986_v28 = vld [vmem:[%s10991_s24 + $0x114c] ss:$16 sps:$4 sm:$0xff]  }
 0x248   : > { %6757 = vmatprep.subr.bf16.mxu0 %v9899_v29  ;;  %7445 = vmatprep.subr.bf16.mxu1 %v9902_v30  ;;  %v9981_v29 = vld [vmem:[%s10991_s24 + $0x1140] ss:$16 sps:$4 sm:$0xff]   ;;  %v9984_v30 = vld [vmem:[%s10991_s24 + $0x1148] ss:$16 sps:$4 sm:$0xff]  }
 0x24b   : > { %6758 = vmatpush1.bf16.msra.mxu0 %v9897_v31  ;;  %7446 = vmatpush1.bf16.msra.mxu1 %v9900_v32  ;;  %v9989_v31 = vld [vmem:[%s10991_s24 + $0x1164] ss:$16 sps:$4 sm:$0xff]   ;;  %v9992_v32 = vld [vmem:[%s10991_s24 + $0x116c] ss:$16 sps:$4 sm:$0xff]  }
 0x24c   : > { %6759 = vmatprep.subr.bf16.mxu0 %v9905_v33  ;;  %7447 = vmatprep.subr.bf16.mxu1 %v9908_v34  ;;  %v9987_v33 = vld [vmem:[%s10991_s24 + $0x1160] ss:$16 sps:$4 sm:$0xff]   ;;  %v9990_v34 = vld [vmem:[%s10991_s24 + $0x1168] ss:$16 sps:$4 sm:$0xff]  }
 0x24f   : > { %6760 = vmatpush1.bf16.msra.mxu0 %v9903_v35  ;;  %7448 = vmatpush1.bf16.msra.mxu1 %v9906_v36  ;;  %v9995_v35 = vld [vmem:[%s10991_s24 + $0x1184] ss:$16 sps:$4 sm:$0xff]   ;;  %v9998_v36 = vld [vmem:[%s10991_s24 + $0x118c] ss:$16 sps:$4 sm:$0xff]  }
 0x250   : > { %6761 = vmatprep.subr.bf16.mxu0 %v9911_v37  ;;  %7449 = vmatprep.subr.bf16.mxu1 %v9914_v38  ;;  %v9993_v37 = vld [vmem:[%s10991_s24 + $0x1180] ss:$16 sps:$4 sm:$0xff]   ;;  %v9996_v38 = vld [vmem:[%s10991_s24 + $0x1188] ss:$16 sps:$4 sm:$0xff]  }
 0x253   : > { %6762 = vmatpush1.bf16.msra.mxu0 %v9909_v39  ;;  %7450 = vmatpush1.bf16.msra.mxu1 %v9912_v40  ;;  %v10001_v39 = vld [vmem:[%s10991_s24 + $0x11a4] ss:$16 sps:$4 sm:$0xff]   ;;  %v10004_v40 = vld [vmem:[%s10991_s24 + $0x11ac] ss:$16 sps:$4 sm:$0xff]  }
 0x254   : > { %6763 = vmatprep.subr.bf16.mxu0 %v9917_v41  ;;  %7451 = vmatprep.subr.bf16.mxu1 %v9920_v42  ;;  %v9999_v41 = vld [vmem:[%s10991_s24 + $0x11a0] ss:$16 sps:$4 sm:$0xff]   ;;  %v10002_v42 = vld [vmem:[%s10991_s24 + $0x11a8] ss:$16 sps:$4 sm:$0xff]  }
 0x257   : > { %6764 = vmatpush1.bf16.msra.mxu0 %v9915_v43  ;;  %7452 = vmatpush1.bf16.msra.mxu1 %v9918_v44  ;;  %v10007_v43 = vld [vmem:[%s10991_s24 + $0x11c4] ss:$16 sps:$4 sm:$0xff]   ;;  %v10010_v44 = vld [vmem:[%s10991_s24 + $0x11cc] ss:$16 sps:$4 sm:$0xff]  }
 0x258   : > { %6776 = vmatprep.subr.bf16.mxu0 %v9923_v45  ;;  %7464 = vmatprep.subr.bf16.mxu1 %v9926_v46  ;;  %v10005_v45 = vld [vmem:[%s10991_s24 + $0x11c0] ss:$16 sps:$4 sm:$0xff]   ;;  %v10008_v46 = vld [vmem:[%s10991_s24 + $0x11c8] ss:$16 sps:$4 sm:$0xff]  }
 0x25a   : > { %6766 = vmatmul.mubr.bf16.vlgmr.msra.gmra.mrb[0].mxu0 %v270_v51  ;;  %7454 = vmatmul.mubr.bf16.vlgmr.msra.gmra.mrb[0].mxu1 %v270_v51  ;;  %v10019_v51 = vld [vmem:[%s10991_s24 + $0x1204] ss:$16 sps:$4 sm:$0xff]  }
 0x25b   : > { %6777 = vmatpush1.bf16.msra.mxu0 %v9921_v52  ;;  %7465 = vmatpush1.bf16.msra.mxu1 %v9924_v53  ;;  %v10022_v52 = vld [vmem:[%s10991_s24 + $0x120c] ss:$16 sps:$4 sm:$0xff]   ;;  %v208_v53 = vld [vmem:[#allocation2 + $0x80] sm:$0xff] }
 0x25c   : > { %6778 = vmatprep.subr.bf16.mxu0 %v9929_v54  ;;  %7466 = vmatprep.subr.bf16.mxu1 %v9932_v55  ;;  %v240_v54 = vld [vmem:[#allocation2 + $0x180] sm:$0xff]  ;;  %v211_v55 = vld [vmem:[#allocation2 + $0x98] sm:$0xff] }
 0x25d   : > { %6808 = vmatprep.mubr.bf16.mxu0 %v273_v56  ;;  %7496 = vmatprep.mubr.bf16.mxu1 %v273_v56  ;;  %v243_v56 = vld [vmem:[#allocation2 + $0x198] sm:$0xff] }
 0x25f   : > { %6779 = vmatpush1.bf16.msra.mxu0 %v9927_v57  ;;  %7467 = vmatpush1.bf16.msra.mxu1 %v9930_v58  ;;  %v272_v57 = vpack.c.bf16 %v240_v54, %v208_v53  ;;  %v10017_v58 = vld [vmem:[%s10991_s24 + $0x1200] ss:$16 sps:$4 sm:$0xff]   ;;  %v10109_v53 = vld [vmem:[%s10991_s24 + $0x13e4] ss:$16 sps:$4 sm:$0xff]   ;;  %v10112_v54 = vld [vmem:[%s10991_s24 + $0x13ec] ss:$16 sps:$4 sm:$0xff]  }
 0x260   : > { %6780 = vmatprep.subr.bf16.mxu0 %v9935_v59  ;;  %7468 = vmatprep.subr.bf16.mxu1 %v9938_v60  ;;  %v10020_v59 = vld [vmem:[%s10991_s24 + $0x1208] ss:$16 sps:$4 sm:$0xff]   ;;  %v10025_v60 = vld [vmem:[%s10991_s24 + $0x1224] ss:$16 sps:$4 sm:$0xff]  }
 0x263   : > { %6781 = vmatpush1.bf16.msra.mxu0 %v9933_v61  ;;  %7469 = vmatpush1.bf16.msra.mxu1 %v9936_v62  ;;  %v10028_v61 = vld [vmem:[%s10991_s24 + $0x122c] ss:$16 sps:$4 sm:$0xff]   ;;  %v275_v62 = vpack.c.bf16 %v243_v56, %v211_v55  ;;  %v10107_v55 = vld [vmem:[%s10991_s24 + $0x13e0] ss:$16 sps:$4 sm:$0xff]   ;;  %v10110_v56 = vld [vmem:[%s10991_s24 + $0x13e8] ss:$16 sps:$4 sm:$0xff]  }
 0x264   : > { %6782 = vmatprep.subr.bf16.mxu0 %v9941_v63  ;;  %7470 = vmatprep.subr.bf16.mxu1 %v9944_v0  ;;  %v10023_v63 = vld [vmem:[%s10991_s24 + $0x1220] ss:$16 sps:$4 sm:$0xff]   ;;  %v10026_v0 = vld [vmem:[%s10991_s24 + $0x1228] ss:$16 sps:$4 sm:$0xff]  }
 0x267   : > { %6783 = vmatpush1.bf16.msra.mxu0 %v9939_v1  ;;  %7471 = vmatpush1.bf16.msra.mxu1 %v9942_v2  ;;  %v10031_v1 = vld [vmem:[%s10991_s24 + $0x1244] ss:$16 sps:$4 sm:$0xff]   ;;  %v10034_v2 = vld [vmem:[%s10991_s24 + $0x124c] ss:$16 sps:$4 sm:$0xff]  }
 0x268   : > { %6784 = vmatprep.subr.bf16.mxu0 %v9947_v3  ;;  %7472 = vmatprep.subr.bf16.mxu1 %v9950_v4  ;;  %v10029_v3 = vld [vmem:[%s10991_s24 + $0x1240] ss:$16 sps:$4 sm:$0xff]   ;;  %v10032_v4 = vld [vmem:[%s10991_s24 + $0x1248] ss:$16 sps:$4 sm:$0xff]  }
 0x26b   : > { %6785 = vmatpush1.bf16.msra.mxu0 %v9945_v5  ;;  %7473 = vmatpush1.bf16.msra.mxu1 %v9948_v6  ;;  %v10037_v5 = vld [vmem:[%s10991_s24 + $0x1264] ss:$16 sps:$4 sm:$0xff]   ;;  %v10040_v6 = vld [vmem:[%s10991_s24 + $0x126c] ss:$16 sps:$4 sm:$0xff]  }
 0x26c   : > { %6786 = vmatprep.subr.bf16.mxu0 %v9953_v7  ;;  %7474 = vmatprep.subr.bf16.mxu1 %v9956_v8  ;;  %v10035_v7 = vld [vmem:[%s10991_s24 + $0x1260] ss:$16 sps:$4 sm:$0xff]   ;;  %v10038_v8 = vld [vmem:[%s10991_s24 + $0x1268] ss:$16 sps:$4 sm:$0xff]  }
 0x26f   : > { %6787 = vmatpush1.bf16.msra.mxu0 %v9951_v9  ;;  %7475 = vmatpush1.bf16.msra.mxu1 %v9954_v10  ;;  %v10043_v9 = vld [vmem:[%s10991_s24 + $0x1284] ss:$16 sps:$4 sm:$0xff]   ;;  %v10046_v10 = vld [vmem:[%s10991_s24 + $0x128c] ss:$16 sps:$4 sm:$0xff]  }
 0x270   : > { %6788 = vmatprep.subr.bf16.mxu0 %v9959_v11  ;;  %7476 = vmatprep.subr.bf16.mxu1 %v9962_v12  ;;  %v10041_v11 = vld [vmem:[%s10991_s24 + $0x1280] ss:$16 sps:$4 sm:$0xff]   ;;  %v10044_v12 = vld [vmem:[%s10991_s24 + $0x1288] ss:$16 sps:$4 sm:$0xff]  }
 0x273   : > { %6789 = vmatpush1.bf16.msra.mxu0 %v9957_v13  ;;  %7477 = vmatpush1.bf16.msra.mxu1 %v9960_v14  ;;  %v10049_v13 = vld [vmem:[%s10991_s24 + $0x12a4] ss:$16 sps:$4 sm:$0xff]   ;;  %v10052_v14 = vld [vmem:[%s10991_s24 + $0x12ac] ss:$16 sps:$4 sm:$0xff]  }
 0x274   : > { %6790 = vmatprep.subr.bf16.mxu0 %v9965_v15  ;;  %7478 = vmatprep.subr.bf16.mxu1 %v9968_v16  ;;  %v10047_v15 = vld [vmem:[%s10991_s24 + $0x12a0] ss:$16 sps:$4 sm:$0xff]   ;;  %v10050_v16 = vld [vmem:[%s10991_s24 + $0x12a8] ss:$16 sps:$4 sm:$0xff]  }
 0x277   : > { %6791 = vmatpush1.bf16.msra.mxu0 %v9963_v17  ;;  %7479 = vmatpush1.bf16.msra.mxu1 %v9966_v18  ;;  %v10055_v17 = vld [vmem:[%s10991_s24 + $0x12c4] ss:$16 sps:$4 sm:$0xff]   ;;  %v10058_v18 = vld [vmem:[%s10991_s24 + $0x12cc] ss:$16 sps:$4 sm:$0xff]  }
 0x278   : > { %6792 = vmatprep.subr.bf16.mxu0 %v9971_v19  ;;  %7480 = vmatprep.subr.bf16.mxu1 %v9974_v20  ;;  %v10053_v19 = vld [vmem:[%s10991_s24 + $0x12c0] ss:$16 sps:$4 sm:$0xff]   ;;  %v10056_v20 = vld [vmem:[%s10991_s24 + $0x12c8] ss:$16 sps:$4 sm:$0xff]  }
 0x27b   : > { %6793 = vmatpush1.bf16.msra.mxu0 %v9969_v21  ;;  %7481 = vmatpush1.bf16.msra.mxu1 %v9972_v22  ;;  %v10061_v21 = vld [vmem:[%s10991_s24 + $0x12e4] ss:$16 sps:$4 sm:$0xff]   ;;  %v10064_v22 = vld [vmem:[%s10991_s24 + $0x12ec] ss:$16 sps:$4 sm:$0xff]  }
 0x27c   : > { %6794 = vmatprep.subr.bf16.mxu0 %v9977_v23  ;;  %7482 = vmatprep.subr.bf16.mxu1 %v9980_v24  ;;  %v10059_v23 = vld [vmem:[%s10991_s24 + $0x12e0] ss:$16 sps:$4 sm:$0xff]   ;;  %v10062_v24 = vld [vmem:[%s10991_s24 + $0x12e8] ss:$16 sps:$4 sm:$0xff]  }
 0x27f   : > { %6795 = vmatpush1.bf16.msra.mxu0 %v9975_v25  ;;  %7483 = vmatpush1.bf16.msra.mxu1 %v9978_v26  ;;  %v10067_v25 = vld [vmem:[%s10991_s24 + $0x1304] ss:$16 sps:$4 sm:$0xff]   ;;  %v10070_v26 = vld [vmem:[%s10991_s24 + $0x130c] ss:$16 sps:$4 sm:$0xff]  }
 0x280   : > { %6796 = vmatprep.subr.bf16.mxu0 %v9983_v27  ;;  %7484 = vmatprep.subr.bf16.mxu1 %v9986_v28  ;;  %v10065_v27 = vld [vmem:[%s10991_s24 + $0x1300] ss:$16 sps:$4 sm:$0xff]   ;;  %v10068_v28 = vld [vmem:[%s10991_s24 + $0x1308] ss:$16 sps:$4 sm:$0xff]  }
 0x283   : > { %6797 = vmatpush1.bf16.msra.mxu0 %v9981_v29  ;;  %7485 = vmatpush1.bf16.msra.mxu1 %v9984_v30  ;;  %v10073_v29 = vld [vmem:[%s10991_s24 + $0x1324] ss:$16 sps:$4 sm:$0xff]   ;;  %v10076_v30 = vld [vmem:[%s10991_s24 + $0x132c] ss:$16 sps:$4 sm:$0xff]  }
 0x284   : > { %6798 = vmatprep.subr.bf16.mxu0 %v9989_v31  ;;  %7486 = vmatprep.subr.bf16.mxu1 %v9992_v32  ;;  %v10071_v31 = vld [vmem:[%s10991_s24 + $0x1320] ss:$16 sps:$4 sm:$0xff]   ;;  %v10074_v32 = vld [vmem:[%s10991_s24 + $0x1328] ss:$16 sps:$4 sm:$0xff]  }
 0x287   : > { %6799 = vmatpush1.bf16.msra.mxu0 %v9987_v33  ;;  %7487 = vmatpush1.bf16.msra.mxu1 %v9990_v34  ;;  %v10079_v33 = vld [vmem:[%s10991_s24 + $0x1344] ss:$16 sps:$4 sm:$0xff]   ;;  %v10082_v34 = vld [vmem:[%s10991_s24 + $0x134c] ss:$16 sps:$4 sm:$0xff]  }
 0x288   : > { %6800 = vmatprep.subr.bf16.mxu0 %v9995_v35  ;;  %7488 = vmatprep.subr.bf16.mxu1 %v9998_v36  ;;  %v10077_v35 = vld [vmem:[%s10991_s24 + $0x1340] ss:$16 sps:$4 sm:$0xff]   ;;  %v10080_v36 = vld [vmem:[%s10991_s24 + $0x1348] ss:$16 sps:$4 sm:$0xff]  }
 0x28b   : > { %6801 = vmatpush1.bf16.msra.mxu0 %v9993_v37  ;;  %7489 = vmatpush1.bf16.msra.mxu1 %v9996_v38  ;;  %v10085_v37 = vld [vmem:[%s10991_s24 + $0x1364] ss:$16 sps:$4 sm:$0xff]   ;;  %v10088_v38 = vld [vmem:[%s10991_s24 + $0x136c] ss:$16 sps:$4 sm:$0xff]  }
 0x28c   : > { %6802 = vmatprep.subr.bf16.mxu0 %v10001_v39  ;;  %7490 = vmatprep.subr.bf16.mxu1 %v10004_v40  ;;  %v10083_v39 = vld [vmem:[%s10991_s24 + $0x1360] ss:$16 sps:$4 sm:$0xff]   ;;  %v10086_v40 = vld [vmem:[%s10991_s24 + $0x1368] ss:$16 sps:$4 sm:$0xff]  }
 0x28f   : > { %6803 = vmatpush1.bf16.msra.mxu0 %v9999_v41  ;;  %7491 = vmatpush1.bf16.msra.mxu1 %v10002_v42  ;;  %v10091_v41 = vld [vmem:[%s10991_s24 + $0x1384] ss:$16 sps:$4 sm:$0xff]   ;;  %v10094_v42 = vld [vmem:[%s10991_s24 + $0x138c] ss:$16 sps:$4 sm:$0xff]  }
 0x290   : > { %6804 = vmatprep.subr.bf16.mxu0 %v10007_v43  ;;  %7492 = vmatprep.subr.bf16.mxu1 %v10010_v44  ;;  %v10089_v43 = vld [vmem:[%s10991_s24 + $0x1380] ss:$16 sps:$4 sm:$0xff]   ;;  %v10092_v44 = vld [vmem:[%s10991_s24 + $0x1388] ss:$16 sps:$4 sm:$0xff]  }
 0x293   : > { %6805 = vmatpush1.bf16.msra.mxu0 %v10005_v45  ;;  %7493 = vmatpush1.bf16.msra.mxu1 %v10008_v46  ;;  %v10097_v45 = vld [vmem:[%s10991_s24 + $0x13a4] ss:$16 sps:$4 sm:$0xff]   ;;  %v10100_v46 = vld [vmem:[%s10991_s24 + $0x13ac] ss:$16 sps:$4 sm:$0xff]  }
 0x294   : > { %6806 = vmatprep.subr.bf16.mxu0 %v10013_v47  ;;  %7494 = vmatprep.subr.bf16.mxu1 %v10016_v48  ;;  %v10095_v47 = vld [vmem:[%s10991_s24 + $0x13a0] ss:$16 sps:$4 sm:$0xff]   ;;  %v10098_v48 = vld [vmem:[%s10991_s24 + $0x13a8] ss:$16 sps:$4 sm:$0xff]  }
 0x297   : > { %6807 = vmatpush1.bf16.msra.mxu0 %v10011_v49  ;;  %7495 = vmatpush1.bf16.msra.mxu1 %v10014_v50  ;;  %v10103_v49 = vld [vmem:[%s10991_s24 + $0x13c4] ss:$16 sps:$4 sm:$0xff]   ;;  %v10106_v50 = vld [vmem:[%s10991_s24 + $0x13cc] ss:$16 sps:$4 sm:$0xff]  }
 0x298   : > { %6819 = vmatprep.subr.bf16.mxu0 %v10019_v51  ;;  %7507 = vmatprep.subr.bf16.mxu1 %v10022_v52  ;;  %v10101_v51 = vld [vmem:[%s10991_s24 + $0x13c0] ss:$16 sps:$4 sm:$0xff]   ;;  %v10104_v52 = vld [vmem:[%s10991_s24 + $0x13c8] ss:$16 sps:$4 sm:$0xff]  }
 0x29a   : > { %6809 = vmatmul.mubr.bf16.vlgmr.msra.gmra.mrb[0].mxu0 %v272_v57  ;;  %7497 = vmatmul.mubr.bf16.vlgmr.msra.gmra.mrb[0].mxu1 %v272_v57  ;;  %v210_v57 = vld [vmem:[#allocation2 + $0x90] sm:$0xff] }
 0x29b   : > { %6820 = vmatpush1.bf16.msra.mxu0 %v10017_v58  ;;  %7508 = vmatpush1.bf16.msra.mxu1 %v10020_v59  ;;  %v242_v58 = vld [vmem:[#allocation2 + $0x190] sm:$0xff] }
 0x29c   : > { %6821 = vmatprep.subr.bf16.mxu0 %v10025_v60  ;;  %7509 = vmatprep.subr.bf16.mxu1 %v10028_v61  ;;  %v10115_v59 = vld [vmem:[%s10991_s24 + $0x1404] ss:$16 sps:$4 sm:$0xff]   ;;  %v10118_v60 = vld [vmem:[%s10991_s24 + $0x140c] ss:$16 sps:$4 sm:$0xff]   ;;  %v274_v61 = vpack.c.bf16 %v242_v58, %v210_v57  ;;  %v10197_v57 = vld [vmem:[%s10991_s24 + $0x15c0] ss:$16 sps:$4 sm:$0xff]  }
 0x29d   : > { %6851 = vmatprep.mubr.bf16.mxu0 %v275_v62  ;;  %7539 = vmatprep.mubr.bf16.mxu1 %v275_v62  ;;  %v213_v62 = vld [vmem:[#allocation2 + $0xa8] sm:$0xff] }
 0x29e   : > { %v10200_v58 = vld [vmem:[%s10991_s24 + $0x15c8] ss:$16 sps:$4 sm:$0xff]  }
 0x29f   : > { %6822 = vmatpush1.bf16.msra.mxu0 %v10023_v63  ;;  %7510 = vmatpush1.bf16.msra.mxu1 %v10026_v0  ;;  %v245_v63 = vld [vmem:[#allocation2 + $0x1a8] sm:$0xff]  ;;  %v10113_v0 = vld [vmem:[%s10991_s24 + $0x1400] ss:$16 sps:$4 sm:$0xff]  }
 0x2a0   : > { %6823 = vmatprep.subr.bf16.mxu0 %v10031_v1  ;;  %7511 = vmatprep.subr.bf16.mxu1 %v10034_v2  ;;  %v10116_v1 = vld [vmem:[%s10991_s24 + $0x1408] ss:$16 sps:$4 sm:$0xff]   ;;  %v10121_v2 = vld [vmem:[%s10991_s24 + $0x1424] ss:$16 sps:$4 sm:$0xff]  }
 0x2a3   : > { %6824 = vmatpush1.bf16.msra.mxu0 %v10029_v3  ;;  %7512 = vmatpush1.bf16.msra.mxu1 %v10032_v4  ;;  %v10124_v3 = vld [vmem:[%s10991_s24 + $0x142c] ss:$16 sps:$4 sm:$0xff]   ;;  %v277_v4 = vpack.c.bf16 %v245_v63, %v213_v62  ;;  %v10206_v62 = vld [vmem:[%s10991_s24 + $0x15e8] ss:$16 sps:$4 sm:$0xff]   ;;  %v212_v63 = vld [vmem:[#allocation2 + $0xa0] sm:$0xff] }
 0x2a4   : > { %6825 = vmatprep.subr.bf16.mxu0 %v10037_v5  ;;  %7513 = vmatprep.subr.bf16.mxu1 %v10040_v6  ;;  %v10119_v5 = vld [vmem:[%s10991_s24 + $0x1420] ss:$16 sps:$4 sm:$0xff]   ;;  %v10122_v6 = vld [vmem:[%s10991_s24 + $0x1428] ss:$16 sps:$4 sm:$0xff]  }
 0x2a7   : > { %6826 = vmatpush1.bf16.msra.mxu0 %v10035_v7  ;;  %7514 = vmatpush1.bf16.msra.mxu1 %v10038_v8  ;;  %v10127_v7 = vld [vmem:[%s10991_s24 + $0x1444] ss:$16 sps:$4 sm:$0xff]   ;;  %v10130_v8 = vld [vmem:[%s10991_s24 + $0x144c] ss:$16 sps:$4 sm:$0xff]  }
 0x2a8   : > { %6827 = vmatprep.subr.bf16.mxu0 %v10043_v9  ;;  %7515 = vmatprep.subr.bf16.mxu1 %v10046_v10  ;;  %v10125_v9 = vld [vmem:[%s10991_s24 + $0x1440] ss:$16 sps:$4 sm:$0xff]   ;;  %v10128_v10 = vld [vmem:[%s10991_s24 + $0x1448] ss:$16 sps:$4 sm:$0xff]  }
 0x2ab   : > { %6828 = vmatpush1.bf16.msra.mxu0 %v10041_v11  ;;  %7516 = vmatpush1.bf16.msra.mxu1 %v10044_v12  ;;  %v10133_v11 = vld [vmem:[%s10991_s24 + $0x1464] ss:$16 sps:$4 sm:$0xff]   ;;  %v10136_v12 = vld [vmem:[%s10991_s24 + $0x146c] ss:$16 sps:$4 sm:$0xff]  }
 0x2ac   : > { %6829 = vmatprep.subr.bf16.mxu0 %v10049_v13  ;;  %7517 = vmatprep.subr.bf16.mxu1 %v10052_v14  ;;  %v10131_v13 = vld [vmem:[%s10991_s24 + $0x1460] ss:$16 sps:$4 sm:$0xff]   ;;  %v10134_v14 = vld [vmem:[%s10991_s24 + $0x1468] ss:$16 sps:$4 sm:$0xff]  }
 0x2af   : > { %6830 = vmatpush1.bf16.msra.mxu0 %v10047_v15  ;;  %7518 = vmatpush1.bf16.msra.mxu1 %v10050_v16  ;;  %v10139_v15 = vld [vmem:[%s10991_s24 + $0x1484] ss:$16 sps:$4 sm:$0xff]   ;;  %v10142_v16 = vld [vmem:[%s10991_s24 + $0x148c] ss:$16 sps:$4 sm:$0xff]  }
 0x2b0   : > { %6831 = vmatprep.subr.bf16.mxu0 %v10055_v17  ;;  %7519 = vmatprep.subr.bf16.mxu1 %v10058_v18  ;;  %v10137_v17 = vld [vmem:[%s10991_s24 + $0x1480] ss:$16 sps:$4 sm:$0xff]   ;;  %v10140_v18 = vld [vmem:[%s10991_s24 + $0x1488] ss:$16 sps:$4 sm:$0xff]  }
 0x2b3   : > { %6832 = vmatpush1.bf16.msra.mxu0 %v10053_v19  ;;  %7520 = vmatpush1.bf16.msra.mxu1 %v10056_v20  ;;  %v10145_v19 = vld [vmem:[%s10991_s24 + $0x14a4] ss:$16 sps:$4 sm:$0xff]   ;;  %v10148_v20 = vld [vmem:[%s10991_s24 + $0x14ac] ss:$16 sps:$4 sm:$0xff]  }
 0x2b4   : > { %6833 = vmatprep.subr.bf16.mxu0 %v10061_v21  ;;  %7521 = vmatprep.subr.bf16.mxu1 %v10064_v22  ;;  %v10143_v21 = vld [vmem:[%s10991_s24 + $0x14a0] ss:$16 sps:$4 sm:$0xff]   ;;  %v10146_v22 = vld [vmem:[%s10991_s24 + $0x14a8] ss:$16 sps:$4 sm:$0xff]  }
 0x2b7   : > { %6834 = vmatpush1.bf16.msra.mxu0 %v10059_v23  ;;  %7522 = vmatpush1.bf16.msra.mxu1 %v10062_v24  ;;  %v10151_v23 = vld [vmem:[%s10991_s24 + $0x14c4] ss:$16 sps:$4 sm:$0xff]   ;;  %v10154_v24 = vld [vmem:[%s10991_s24 + $0x14cc] ss:$16 sps:$4 sm:$0xff]  }
 0x2b8   : > { %6835 = vmatprep.subr.bf16.mxu0 %v10067_v25  ;;  %7523 = vmatprep.subr.bf16.mxu1 %v10070_v26  ;;  %v10149_v25 = vld [vmem:[%s10991_s24 + $0x14c0] ss:$16 sps:$4 sm:$0xff]   ;;  %v10152_v26 = vld [vmem:[%s10991_s24 + $0x14c8] ss:$16 sps:$4 sm:$0xff]  }
 0x2bb   : > { %6836 = vmatpush1.bf16.msra.mxu0 %v10065_v27  ;;  %7524 = vmatpush1.bf16.msra.mxu1 %v10068_v28  ;;  %v10157_v27 = vld [vmem:[%s10991_s24 + $0x14e4] ss:$16 sps:$4 sm:$0xff]   ;;  %v10160_v28 = vld [vmem:[%s10991_s24 + $0x14ec] ss:$16 sps:$4 sm:$0xff]  }
 0x2bc   : > { %6837 = vmatprep.subr.bf16.mxu0 %v10073_v29  ;;  %7525 = vmatprep.subr.bf16.mxu1 %v10076_v30  ;;  %v10155_v29 = vld [vmem:[%s10991_s24 + $0x14e0] ss:$16 sps:$4 sm:$0xff]   ;;  %v10158_v30 = vld [vmem:[%s10991_s24 + $0x14e8] ss:$16 sps:$4 sm:$0xff]  }
 0x2bf   : > { %6838 = vmatpush1.bf16.msra.mxu0 %v10071_v31  ;;  %7526 = vmatpush1.bf16.msra.mxu1 %v10074_v32  ;;  %v10163_v31 = vld [vmem:[%s10991_s24 + $0x1504] ss:$16 sps:$4 sm:$0xff]   ;;  %v10166_v32 = vld [vmem:[%s10991_s24 + $0x150c] ss:$16 sps:$4 sm:$0xff]  }
 0x2c0   : > { %6839 = vmatprep.subr.bf16.mxu0 %v10079_v33  ;;  %7527 = vmatprep.subr.bf16.mxu1 %v10082_v34  ;;  %v10161_v33 = vld [vmem:[%s10991_s24 + $0x1500] ss:$16 sps:$4 sm:$0xff]   ;;  %v10164_v34 = vld [vmem:[%s10991_s24 + $0x1508] ss:$16 sps:$4 sm:$0xff]  }
 0x2c3   : > { %6840 = vmatpush1.bf16.msra.mxu0 %v10077_v35  ;;  %7528 = vmatpush1.bf16.msra.mxu1 %v10080_v36  ;;  %v10169_v35 = vld [vmem:[%s10991_s24 + $0x1524] ss:$16 sps:$4 sm:$0xff]   ;;  %v10172_v36 = vld [vmem:[%s10991_s24 + $0x152c] ss:$16 sps:$4 sm:$0xff]  }
 0x2c4   : > { %6841 = vmatprep.subr.bf16.mxu0 %v10085_v37  ;;  %7529 = vmatprep.subr.bf16.mxu1 %v10088_v38  ;;  %v10167_v37 = vld [vmem:[%s10991_s24 + $0x1520] ss:$16 sps:$4 sm:$0xff]   ;;  %v10170_v38 = vld [vmem:[%s10991_s24 + $0x1528] ss:$16 sps:$4 sm:$0xff]  }
 0x2c7   : > { %6842 = vmatpush1.bf16.msra.mxu0 %v10083_v39  ;;  %7530 = vmatpush1.bf16.msra.mxu1 %v10086_v40  ;;  %v10175_v39 = vld [vmem:[%s10991_s24 + $0x1544] ss:$16 sps:$4 sm:$0xff]   ;;  %v10178_v40 = vld [vmem:[%s10991_s24 + $0x154c] ss:$16 sps:$4 sm:$0xff]  }
 0x2c8   : > { %6843 = vmatprep.subr.bf16.mxu0 %v10091_v41  ;;  %7531 = vmatprep.subr.bf16.mxu1 %v10094_v42  ;;  %v10173_v41 = vld [vmem:[%s10991_s24 + $0x1540] ss:$16 sps:$4 sm:$0xff]   ;;  %v10176_v42 = vld [vmem:[%s10991_s24 + $0x1548] ss:$16 sps:$4 sm:$0xff]  }
 0x2cb   : > { %6844 = vmatpush1.bf16.msra.mxu0 %v10089_v43  ;;  %7532 = vmatpush1.bf16.msra.mxu1 %v10092_v44  ;;  %v10181_v43 = vld [vmem:[%s10991_s24 + $0x1564] ss:$16 sps:$4 sm:$0xff]   ;;  %v10184_v44 = vld [vmem:[%s10991_s24 + $0x156c] ss:$16 sps:$4 sm:$0xff]  }
 0x2cc   : > { %6845 = vmatprep.subr.bf16.mxu0 %v10097_v45  ;;  %7533 = vmatprep.subr.bf16.mxu1 %v10100_v46  ;;  %v10179_v45 = vld [vmem:[%s10991_s24 + $0x1560] ss:$16 sps:$4 sm:$0xff]   ;;  %v10182_v46 = vld [vmem:[%s10991_s24 + $0x1568] ss:$16 sps:$4 sm:$0xff]  }
 0x2cf   : > { %6846 = vmatpush1.bf16.msra.mxu0 %v10095_v47  ;;  %7534 = vmatpush1.bf16.msra.mxu1 %v10098_v48  ;;  %v10187_v47 = vld [vmem:[%s10991_s24 + $0x1584] ss:$16 sps:$4 sm:$0xff]   ;;  %v10190_v48 = vld [vmem:[%s10991_s24 + $0x158c] ss:$16 sps:$4 sm:$0xff]  }
 0x2d0   : > { %6847 = vmatprep.subr.bf16.mxu0 %v10103_v49  ;;  %7535 = vmatprep.subr.bf16.mxu1 %v10106_v50  ;;  %v10185_v49 = vld [vmem:[%s10991_s24 + $0x1580] ss:$16 sps:$4 sm:$0xff]   ;;  %v10188_v50 = vld [vmem:[%s10991_s24 + $0x1588] ss:$16 sps:$4 sm:$0xff]  }
 0x2d3   : > { %6848 = vmatpush1.bf16.msra.mxu0 %v10101_v51  ;;  %7536 = vmatpush1.bf16.msra.mxu1 %v10104_v52  ;;  %v10193_v51 = vld [vmem:[%s10991_s24 + $0x15a4] ss:$16 sps:$4 sm:$0xff]   ;;  %v10196_v52 = vld [vmem:[%s10991_s24 + $0x15ac] ss:$16 sps:$4 sm:$0xff]  }
 0x2d4   : > { %6849 = vmatprep.subr.bf16.mxu0 %v10109_v53  ;;  %7537 = vmatprep.subr.bf16.mxu1 %v10112_v54  ;;  %v10191_v53 = vld [vmem:[%s10991_s24 + $0x15a0] ss:$16 sps:$4 sm:$0xff]   ;;  %v10194_v54 = vld [vmem:[%s10991_s24 + $0x15a8] ss:$16 sps:$4 sm:$0xff]  }
 0x2d7   : > { %6850 = vmatpush1.bf16.msra.mxu0 %v10107_v55  ;;  %7538 = vmatpush1.bf16.msra.mxu1 %v10110_v56  ;;  %v10199_v55 = vld [vmem:[%s10991_s24 + $0x15c4] ss:$16 sps:$4 sm:$0xff]   ;;  %v10202_v56 = vld [vmem:[%s10991_s24 + $0x15cc] ss:$16 sps:$4 sm:$0xff]  }
 0x2d8   : > { %6862 = vmatprep.subr.bf16.mxu0 %v10115_v59  ;;  %7550 = vmatprep.subr.bf16.mxu1 %v10118_v60  ;;  %v10205_v59 = vld [vmem:[%s10991_s24 + $0x15e4] ss:$16 sps:$4 sm:$0xff]   ;;  %v10208_v60 = vld [vmem:[%s10991_s24 + $0x15ec] ss:$16 sps:$4 sm:$0xff]  }
 0x2da   : > { %6852 = vmatmul.mubr.bf16.vlgmr.msra.gmra.mrb[0].mxu0 %v274_v61  ;;  %7540 = vmatmul.mubr.bf16.vlgmr.msra.gmra.mrb[0].mxu1 %v274_v61  ;;  %v10203_v61 = vld [vmem:[%s10991_s24 + $0x15e0] ss:$16 sps:$4 sm:$0xff]  }
 0x2db   : > { %6863 = vmatpush1.bf16.msra.mxu0 %v10113_v0  ;;  %7551 = vmatpush1.bf16.msra.mxu1 %v10116_v1  ;;  %v244_v0 = vld [vmem:[#allocation2 + $0x1a0] sm:$0xff] }
 0x2dc   : > { %6864 = vmatprep.subr.bf16.mxu0 %v10121_v2  ;;  %7552 = vmatprep.subr.bf16.mxu1 %v10124_v3  ;;  %v10211_v1 = vld [vmem:[%s10991_s24 + $0x1604] ss:$16 sps:$4 sm:$0xff]   ;;  %v10214_v2 = vld [vmem:[%s10991_s24 + $0x160c] ss:$16 sps:$4 sm:$0xff]   ;;  %v276_v3 = vpack.c.bf16 %v244_v0, %v212_v63  ;;  %v10293_v63 = vld [vmem:[%s10991_s24 + $0x17c0] ss:$16 sps:$4 sm:$0xff]  }
 0x2dd   : > { %6894 = vmatprep.mubr.bf16.mxu0 %v277_v4  ;;  %7582 = vmatprep.mubr.bf16.mxu1 %v277_v4  ;;  %v215_v4 = vld [vmem:[#allocation2 + $0xb8] sm:$0xff] }
 0x2de   : > { %v10296_v0 = vld [vmem:[%s10991_s24 + $0x17c8] ss:$16 sps:$4 sm:$0xff]  }
 0x2df   : > { %6865 = vmatpush1.bf16.msra.mxu0 %v10119_v5  ;;  %7553 = vmatpush1.bf16.msra.mxu1 %v10122_v6  ;;  %v247_v5 = vld [vmem:[#allocation2 + $0x1b8] sm:$0xff]  ;;  %v10209_v6 = vld [vmem:[%s10991_s24 + $0x1600] ss:$16 sps:$4 sm:$0xff]  }
 0x2e0   : > { %6866 = vmatprep.subr.bf16.mxu0 %v10127_v7  ;;  %7554 = vmatprep.subr.bf16.mxu1 %v10130_v8  ;;  %v10212_v7 = vld [vmem:[%s10991_s24 + $0x1608] ss:$16 sps:$4 sm:$0xff]   ;;  %v10217_v8 = vld [vmem:[%s10991_s24 + $0x1624] ss:$16 sps:$4 sm:$0xff]  }
 0x2e3   : > { %6867 = vmatpush1.bf16.msra.mxu0 %v10125_v9  ;;  %7555 = vmatpush1.bf16.msra.mxu1 %v10128_v10  ;;  %v10220_v9 = vld [vmem:[%s10991_s24 + $0x162c] ss:$16 sps:$4 sm:$0xff]   ;;  %v279_v10 = vpack.c.bf16 %v247_v5, %v215_v4  ;;  %v10302_v4 = vld [vmem:[%s10991_s24 + $0x17e8] ss:$16 sps:$4 sm:$0xff]   ;;  %v214_v5 = vld [vmem:[#allocation2 + $0xb0] sm:$0xff] }
 0x2e4   : > { %6868 = vmatprep.subr.bf16.mxu0 %v10133_v11  ;;  %7556 = vmatprep.subr.bf16.mxu1 %v10136_v12  ;;  %v10215_v11 = vld [vmem:[%s10991_s24 + $0x1620] ss:$16 sps:$4 sm:$0xff]   ;;  %v10218_v12 = vld [vmem:[%s10991_s24 + $0x1628] ss:$16 sps:$4 sm:$0xff]  }
 0x2e7   : > { %6869 = vmatpush1.bf16.msra.mxu0 %v10131_v13  ;;  %7557 = vmatpush1.bf16.msra.mxu1 %v10134_v14  ;;  %v10223_v13 = vld [vmem:[%s10991_s24 + $0x1644] ss:$16 sps:$4 sm:$0xff]   ;;  %v10226_v14 = vld [vmem:[%s10991_s24 + $0x164c] ss:$16 sps:$4 sm:$0xff]  }
 0x2e8   : > { %6870 = vmatprep.subr.bf16.mxu0 %v10139_v15  ;;  %7558 = vmatprep.subr.bf16.mxu1 %v10142_v16  ;;  %v10221_v15 = vld [vmem:[%s10991_s24 + $0x1640] ss:$16 sps:$4 sm:$0xff]   ;;  %v10224_v16 = vld [vmem:[%s10991_s24 + $0x1648] ss:$16 sps:$4 sm:$0xff]  }
 0x2eb   : > { %6871 = vmatpush1.bf16.msra.mxu0 %v10137_v17  ;;  %7559 = vmatpush1.bf16.msra.mxu1 %v10140_v18  ;;  %v10229_v17 = vld [vmem:[%s10991_s24 + $0x1664] ss:$16 sps:$4 sm:$0xff]   ;;  %v10232_v18 = vld [vmem:[%s10991_s24 + $0x166c] ss:$16 sps:$4 sm:$0xff]  }
 0x2ec   : > { %6872 = vmatprep.subr.bf16.mxu0 %v10145_v19  ;;  %7560 = vmatprep.subr.bf16.mxu1 %v10148_v20  ;;  %v10227_v19 = vld [vmem:[%s10991_s24 + $0x1660] ss:$16 sps:$4 sm:$0xff]   ;;  %v10230_v20 = vld [vmem:[%s10991_s24 + $0x1668] ss:$16 sps:$4 sm:$0xff]  }
 0x2ef   : > { %6873 = vmatpush1.bf16.msra.mxu0 %v10143_v21  ;;  %7561 = vmatpush1.bf16.msra.mxu1 %v10146_v22  ;;  %v10235_v21 = vld [vmem:[%s10991_s24 + $0x1684] ss:$16 sps:$4 sm:$0xff]   ;;  %v10238_v22 = vld [vmem:[%s10991_s24 + $0x168c] ss:$16 sps:$4 sm:$0xff]  }
 0x2f0   : > { %6874 = vmatprep.subr.bf16.mxu0 %v10151_v23  ;;  %7562 = vmatprep.subr.bf16.mxu1 %v10154_v24  ;;  %v10233_v23 = vld [vmem:[%s10991_s24 + $0x1680] ss:$16 sps:$4 sm:$0xff]   ;;  %v10236_v24 = vld [vmem:[%s10991_s24 + $0x1688] ss:$16 sps:$4 sm:$0xff]  }
 0x2f3   : > { %6875 = vmatpush1.bf16.msra.mxu0 %v10149_v25  ;;  %7563 = vmatpush1.bf16.msra.mxu1 %v10152_v26  ;;  %v10241_v25 = vld [vmem:[%s10991_s24 + $0x16a4] ss:$16 sps:$4 sm:$0xff]   ;;  %v10244_v26 = vld [vmem:[%s10991_s24 + $0x16ac] ss:$16 sps:$4 sm:$0xff]  }
 0x2f4   : > { %6876 = vmatprep.subr.bf16.mxu0 %v10157_v27  ;;  %7564 = vmatprep.subr.bf16.mxu1 %v10160_v28  ;;  %v10239_v27 = vld [vmem:[%s10991_s24 + $0x16a0] ss:$16 sps:$4 sm:$0xff]   ;;  %v10242_v28 = vld [vmem:[%s10991_s24 + $0x16a8] ss:$16 sps:$4 sm:$0xff]  }
 0x2f7   : > { %6877 = vmatpush1.bf16.msra.mxu0 %v10155_v29  ;;  %7565 = vmatpush1.bf16.msra.mxu1 %v10158_v30  ;;  %v10247_v29 = vld [vmem:[%s10991_s24 + $0x16c4] ss:$16 sps:$4 sm:$0xff]   ;;  %v10250_v30 = vld [vmem:[%s10991_s24 + $0x16cc] ss:$16 sps:$4 sm:$0xff]  }
 0x2f8   : > { %6878 = vmatprep.subr.bf16.mxu0 %v10163_v31  ;;  %7566 = vmatprep.subr.bf16.mxu1 %v10166_v32  ;;  %v10245_v31 = vld [vmem:[%s10991_s24 + $0x16c0] ss:$16 sps:$4 sm:$0xff]   ;;  %v10248_v32 = vld [vmem:[%s10991_s24 + $0x16c8] ss:$16 sps:$4 sm:$0xff]  }
 0x2fb   : > { %6879 = vmatpush1.bf16.msra.mxu0 %v10161_v33  ;;  %7567 = vmatpush1.bf16.msra.mxu1 %v10164_v34  ;;  %v10253_v33 = vld [vmem:[%s10991_s24 + $0x16e4] ss:$16 sps:$4 sm:$0xff]   ;;  %v10256_v34 = vld [vmem:[%s10991_s24 + $0x16ec] ss:$16 sps:$4 sm:$0xff]  }
 0x2fc   : > { %6880 = vmatprep.subr.bf16.mxu0 %v10169_v35  ;;  %7568 = vmatprep.subr.bf16.mxu1 %v10172_v36  ;;  %v10251_v35 = vld [vmem:[%s10991_s24 + $0x16e0] ss:$16 sps:$4 sm:$0xff]   ;;  %v10254_v36 = vld [vmem:[%s10991_s24 + $0x16e8] ss:$16 sps:$4 sm:$0xff]  }
 0x2ff   : > { %6881 = vmatpush1.bf16.msra.mxu0 %v10167_v37  ;;  %7569 = vmatpush1.bf16.msra.mxu1 %v10170_v38  ;;  %v10259_v37 = vld [vmem:[%s10991_s24 + $0x1704] ss:$16 sps:$4 sm:$0xff]   ;;  %v10262_v38 = vld [vmem:[%s10991_s24 + $0x170c] ss:$16 sps:$4 sm:$0xff]  }
 0x300   : > { %6882 = vmatprep.subr.bf16.mxu0 %v10175_v39  ;;  %7570 = vmatprep.subr.bf16.mxu1 %v10178_v40  ;;  %v10257_v39 = vld [vmem:[%s10991_s24 + $0x1700] ss:$16 sps:$4 sm:$0xff]   ;;  %v10260_v40 = vld [vmem:[%s10991_s24 + $0x1708] ss:$16 sps:$4 sm:$0xff]  }
 0x303   : > { %6883 = vmatpush1.bf16.msra.mxu0 %v10173_v41  ;;  %7571 = vmatpush1.bf16.msra.mxu1 %v10176_v42  ;;  %v10265_v41 = vld [vmem:[%s10991_s24 + $0x1724] ss:$16 sps:$4 sm:$0xff]   ;;  %v10268_v42 = vld [vmem:[%s10991_s24 + $0x172c] ss:$16 sps:$4 sm:$0xff]  }
 0x304   : > { %6884 = vmatprep.subr.bf16.mxu0 %v10181_v43  ;;  %7572 = vmatprep.subr.bf16.mxu1 %v10184_v44  ;;  %v10263_v43 = vld [vmem:[%s10991_s24 + $0x1720] ss:$16 sps:$4 sm:$0xff]   ;;  %v10266_v44 = vld [vmem:[%s10991_s24 + $0x1728] ss:$16 sps:$4 sm:$0xff]  }
 0x307   : > { %6885 = vmatpush1.bf16.msra.mxu0 %v10179_v45  ;;  %7573 = vmatpush1.bf16.msra.mxu1 %v10182_v46  ;;  %v10271_v45 = vld [vmem:[%s10991_s24 + $0x1744] ss:$16 sps:$4 sm:$0xff]   ;;  %v10274_v46 = vld [vmem:[%s10991_s24 + $0x174c] ss:$16 sps:$4 sm:$0xff]  }
 0x308   : > { %6886 = vmatprep.subr.bf16.mxu0 %v10187_v47  ;;  %7574 = vmatprep.subr.bf16.mxu1 %v10190_v48  ;;  %v10269_v47 = vld [vmem:[%s10991_s24 + $0x1740] ss:$16 sps:$4 sm:$0xff]   ;;  %v10272_v48 = vld [vmem:[%s10991_s24 + $0x1748] ss:$16 sps:$4 sm:$0xff]  }
 0x30b   : > { %6887 = vmatpush1.bf16.msra.mxu0 %v10185_v49  ;;  %7575 = vmatpush1.bf16.msra.mxu1 %v10188_v50  ;;  %v10277_v49 = vld [vmem:[%s10991_s24 + $0x1764] ss:$16 sps:$4 sm:$0xff]   ;;  %v10280_v50 = vld [vmem:[%s10991_s24 + $0x176c] ss:$16 sps:$4 sm:$0xff]  }
 0x30c   : > { %6888 = vmatprep.subr.bf16.mxu0 %v10193_v51  ;;  %7576 = vmatprep.subr.bf16.mxu1 %v10196_v52  ;;  %v10275_v51 = vld [vmem:[%s10991_s24 + $0x1760] ss:$16 sps:$4 sm:$0xff]   ;;  %v10278_v52 = vld [vmem:[%s10991_s24 + $0x1768] ss:$16 sps:$4 sm:$0xff]  }
 0x30f   : > { %6889 = vmatpush1.bf16.msra.mxu0 %v10191_v53  ;;  %7577 = vmatpush1.bf16.msra.mxu1 %v10194_v54  ;;  %v10283_v53 = vld [vmem:[%s10991_s24 + $0x1784] ss:$16 sps:$4 sm:$0xff]   ;;  %v10286_v54 = vld [vmem:[%s10991_s24 + $0x178c] ss:$16 sps:$4 sm:$0xff]  }
 0x310   : > { %6890 = vmatprep.subr.bf16.mxu0 %v10199_v55  ;;  %7578 = vmatprep.subr.bf16.mxu1 %v10202_v56  ;;  %v10281_v55 = vld [vmem:[%s10991_s24 + $0x1780] ss:$16 sps:$4 sm:$0xff]   ;;  %v10284_v56 = vld [vmem:[%s10991_s24 + $0x1788] ss:$16 sps:$4 sm:$0xff]  }
 0x313   : > { %6891 = vmatpush1.bf16.msra.mxu0 %v10197_v57  ;;  %7579 = vmatpush1.bf16.msra.mxu1 %v10200_v58  ;;  %v10289_v57 = vld [vmem:[%s10991_s24 + $0x17a4] ss:$16 sps:$4 sm:$0xff]   ;;  %v10292_v58 = vld [vmem:[%s10991_s24 + $0x17ac] ss:$16 sps:$4 sm:$0xff]  }
 0x314   : > { %6892 = vmatprep.subr.bf16.mxu0 %v10205_v59  ;;  %7580 = vmatprep.subr.bf16.mxu1 %v10208_v60  ;;  %v10287_v59 = vld [vmem:[%s10991_s24 + $0x17a0] ss:$16 sps:$4 sm:$0xff]   ;;  %v10290_v60 = vld [vmem:[%s10991_s24 + $0x17a8] ss:$16 sps:$4 sm:$0xff]  }
 0x317   : > { %6893 = vmatpush1.bf16.msra.mxu0 %v10203_v61  ;;  %7581 = vmatpush1.bf16.msra.mxu1 %v10206_v62  ;;  %v10295_v61 = vld [vmem:[%s10991_s24 + $0x17c4] ss:$16 sps:$4 sm:$0xff]   ;;  %v10298_v62 = vld [vmem:[%s10991_s24 + $0x17cc] ss:$16 sps:$4 sm:$0xff]  }
 0x318   : > { %6905 = vmatprep.subr.bf16.mxu0 %v10211_v1  ;;  %7593 = vmatprep.subr.bf16.mxu1 %v10214_v2  ;;  %v10301_v1 = vld [vmem:[%s10991_s24 + $0x17e4] ss:$16 sps:$4 sm:$0xff]   ;;  %v10304_v2 = vld [vmem:[%s10991_s24 + $0x17ec] ss:$16 sps:$4 sm:$0xff]  }
 0x31a   : > { %6895 = vmatmul.mubr.bf16.vlgmr.msra.gmra.mrb[0].mxu0 %v276_v3  ;;  %7583 = vmatmul.mubr.bf16.vlgmr.msra.gmra.mrb[0].mxu1 %v276_v3  ;;  %v10299_v3 = vld [vmem:[%s10991_s24 + $0x17e0] ss:$16 sps:$4 sm:$0xff]  }
 0x31b   : > { %6906 = vmatpush1.bf16.msra.mxu0 %v10209_v6  ;;  %7594 = vmatpush1.bf16.msra.mxu1 %v10212_v7  ;;  %v246_v6 = vld [vmem:[#allocation2 + $0x1b0] sm:$0xff] }
 0x31c   : > { %6907 = vmatprep.subr.bf16.mxu0 %v10217_v8  ;;  %7595 = vmatprep.subr.bf16.mxu1 %v10220_v9  ;;  %v10307_v7 = vld [vmem:[%s10991_s24 + $0x1804] ss:$16 sps:$4 sm:$0xff]   ;;  %v10310_v8 = vld [vmem:[%s10991_s24 + $0x180c] ss:$16 sps:$4 sm:$0xff]   ;;  %v278_v9 = vpack.c.bf16 %v246_v6, %v214_v5  ;;  %v10389_v5 = vld [vmem:[%s10991_s24 + $0x19c0] ss:$16 sps:$4 sm:$0xff]  }
 0x31d   : > { %6937 = vmatprep.mubr.bf16.mxu0 %v279_v10  ;;  %7625 = vmatprep.mubr.bf16.mxu1 %v279_v10  ;;  %v217_v10 = vld [vmem:[#allocation2 + $0xc8] sm:$0xff] }
 0x31e   : > { %v10392_v6 = vld [vmem:[%s10991_s24 + $0x19c8] ss:$16 sps:$4 sm:$0xff]  }
 0x31f   : > { %6908 = vmatpush1.bf16.msra.mxu0 %v10215_v11  ;;  %7596 = vmatpush1.bf16.msra.mxu1 %v10218_v12  ;;  %v249_v11 = vld [vmem:[#allocation2 + $0x1c8] sm:$0xff]  ;;  %v10305_v12 = vld [vmem:[%s10991_s24 + $0x1800] ss:$16 sps:$4 sm:$0xff]  }
 0x320   : > { %6909 = vmatprep.subr.bf16.mxu0 %v10223_v13  ;;  %7597 = vmatprep.subr.bf16.mxu1 %v10226_v14  ;;  %v10308_v13 = vld [vmem:[%s10991_s24 + $0x1808] ss:$16 sps:$4 sm:$0xff]   ;;  %v10313_v14 = vld [vmem:[%s10991_s24 + $0x1824] ss:$16 sps:$4 sm:$0xff]  }
 0x323   : > { %6910 = vmatpush1.bf16.msra.mxu0 %v10221_v15  ;;  %7598 = vmatpush1.bf16.msra.mxu1 %v10224_v16  ;;  %v10316_v15 = vld [vmem:[%s10991_s24 + $0x182c] ss:$16 sps:$4 sm:$0xff]   ;;  %v281_v16 = vpack.c.bf16 %v249_v11, %v217_v10  ;;  %v10398_v10 = vld [vmem:[%s10991_s24 + $0x19e8] ss:$16 sps:$4 sm:$0xff]   ;;  %v216_v11 = vld [vmem:[#allocation2 + $0xc0] sm:$0xff] }
 0x324   : > { %6911 = vmatprep.subr.bf16.mxu0 %v10229_v17  ;;  %7599 = vmatprep.subr.bf16.mxu1 %v10232_v18  ;;  %v10311_v17 = vld [vmem:[%s10991_s24 + $0x1820] ss:$16 sps:$4 sm:$0xff]   ;;  %v10314_v18 = vld [vmem:[%s10991_s24 + $0x1828] ss:$16 sps:$4 sm:$0xff]  }
 0x327   : > { %6912 = vmatpush1.bf16.msra.mxu0 %v10227_v19  ;;  %7600 = vmatpush1.bf16.msra.mxu1 %v10230_v20  ;;  %v10319_v19 = vld [vmem:[%s10991_s24 + $0x1844] ss:$16 sps:$4 sm:$0xff]   ;;  %v10322_v20 = vld [vmem:[%s10991_s24 + $0x184c] ss:$16 sps:$4 sm:$0xff]  }
 0x328   : > { %6913 = vmatprep.subr.bf16.mxu0 %v10235_v21  ;;  %7601 = vmatprep.subr.bf16.mxu1 %v10238_v22  ;;  %v10317_v21 = vld [vmem:[%s10991_s24 + $0x1840] ss:$16 sps:$4 sm:$0xff]   ;;  %v10320_v22 = vld [vmem:[%s10991_s24 + $0x1848] ss:$16 sps:$4 sm:$0xff]  }
 0x32b   : > { %6914 = vmatpush1.bf16.msra.mxu0 %v10233_v23  ;;  %7602 = vmatpush1.bf16.msra.mxu1 %v10236_v24  ;;  %v10325_v23 = vld [vmem:[%s10991_s24 + $0x1864] ss:$16 sps:$4 sm:$0xff]   ;;  %v10328_v24 = vld [vmem:[%s10991_s24 + $0x186c] ss:$16 sps:$4 sm:$0xff]  }
 0x32c   : > { %6915 = vmatprep.subr.bf16.mxu0 %v10241_v25  ;;  %7603 = vmatprep.subr.bf16.mxu1 %v10244_v26  ;;  %v10323_v25 = vld [vmem:[%s10991_s24 + $0x1860] ss:$16 sps:$4 sm:$0xff]   ;;  %v10326_v26 = vld [vmem:[%s10991_s24 + $0x1868] ss:$16 sps:$4 sm:$0xff]  }
 0x32f   : > { %6916 = vmatpush1.bf16.msra.mxu0 %v10239_v27  ;;  %7604 = vmatpush1.bf16.msra.mxu1 %v10242_v28  ;;  %v10331_v27 = vld [vmem:[%s10991_s24 + $0x1884] ss:$16 sps:$4 sm:$0xff]   ;;  %v10334_v28 = vld [vmem:[%s10991_s24 + $0x188c] ss:$16 sps:$4 sm:$0xff]  }
 0x330   : > { %6917 = vmatprep.subr.bf16.mxu0 %v10247_v29  ;;  %7605 = vmatprep.subr.bf16.mxu1 %v10250_v30  ;;  %v10329_v29 = vld [vmem:[%s10991_s24 + $0x1880] ss:$16 sps:$4 sm:$0xff]   ;;  %v10332_v30 = vld [vmem:[%s10991_s24 + $0x1888] ss:$16 sps:$4 sm:$0xff]  }
 0x333   : > { %6918 = vmatpush1.bf16.msra.mxu0 %v10245_v31  ;;  %7606 = vmatpush1.bf16.msra.mxu1 %v10248_v32  ;;  %v10337_v31 = vld [vmem:[%s10991_s24 + $0x18a4] ss:$16 sps:$4 sm:$0xff]   ;;  %v10340_v32 = vld [vmem:[%s10991_s24 + $0x18ac] ss:$16 sps:$4 sm:$0xff]  }
 0x334   : > { %6919 = vmatprep.subr.bf16.mxu0 %v10253_v33  ;;  %7607 = vmatprep.subr.bf16.mxu1 %v10256_v34  ;;  %v10335_v33 = vld [vmem:[%s10991_s24 + $0x18a0] ss:$16 sps:$4 sm:$0xff]   ;;  %v10338_v34 = vld [vmem:[%s10991_s24 + $0x18a8] ss:$16 sps:$4 sm:$0xff]  }
 0x337   : > { %6920 = vmatpush1.bf16.msra.mxu0 %v10251_v35  ;;  %7608 = vmatpush1.bf16.msra.mxu1 %v10254_v36  ;;  %v10343_v35 = vld [vmem:[%s10991_s24 + $0x18c4] ss:$16 sps:$4 sm:$0xff]   ;;  %v10346_v36 = vld [vmem:[%s10991_s24 + $0x18cc] ss:$16 sps:$4 sm:$0xff]  }
 0x338   : > { %6921 = vmatprep.subr.bf16.mxu0 %v10259_v37  ;;  %7609 = vmatprep.subr.bf16.mxu1 %v10262_v38  ;;  %v10341_v37 = vld [vmem:[%s10991_s24 + $0x18c0] ss:$16 sps:$4 sm:$0xff]   ;;  %v10344_v38 = vld [vmem:[%s10991_s24 + $0x18c8] ss:$16 sps:$4 sm:$0xff]  }
 0x33b   : > { %6922 = vmatpush1.bf16.msra.mxu0 %v10257_v39  ;;  %7610 = vmatpush1.bf16.msra.mxu1 %v10260_v40  ;;  %v10349_v39 = vld [vmem:[%s10991_s24 + $0x18e4] ss:$16 sps:$4 sm:$0xff]   ;;  %v10352_v40 = vld [vmem:[%s10991_s24 + $0x18ec] ss:$16 sps:$4 sm:$0xff]  }
 0x33c   : > { %6923 = vmatprep.subr.bf16.mxu0 %v10265_v41  ;;  %7611 = vmatprep.subr.bf16.mxu1 %v10268_v42  ;;  %v10347_v41 = vld [vmem:[%s10991_s24 + $0x18e0] ss:$16 sps:$4 sm:$0xff]   ;;  %v10350_v42 = vld [vmem:[%s10991_s24 + $0x18e8] ss:$16 sps:$4 sm:$0xff]  }
 0x33f   : > { %6924 = vmatpush1.bf16.msra.mxu0 %v10263_v43  ;;  %7612 = vmatpush1.bf16.msra.mxu1 %v10266_v44  ;;  %v10355_v43 = vld [vmem:[%s10991_s24 + $0x1904] ss:$16 sps:$4 sm:$0xff]   ;;  %v10358_v44 = vld [vmem:[%s10991_s24 + $0x190c] ss:$16 sps:$4 sm:$0xff]  }
 0x340   : > { %6925 = vmatprep.subr.bf16.mxu0 %v10271_v45  ;;  %7613 = vmatprep.subr.bf16.mxu1 %v10274_v46  ;;  %v10353_v45 = vld [vmem:[%s10991_s24 + $0x1900] ss:$16 sps:$4 sm:$0xff]   ;;  %v10356_v46 = vld [vmem:[%s10991_s24 + $0x1908] ss:$16 sps:$4 sm:$0xff]  }
 0x343   : > { %6926 = vmatpush1.bf16.msra.mxu0 %v10269_v47  ;;  %7614 = vmatpush1.bf16.msra.mxu1 %v10272_v48  ;;  %v10361_v47 = vld [vmem:[%s10991_s24 + $0x1924] ss:$16 sps:$4 sm:$0xff]   ;;  %v10364_v48 = vld [vmem:[%s10991_s24 + $0x192c] ss:$16 sps:$4 sm:$0xff]  }
 0x344   : > { %6927 = vmatprep.subr.bf16.mxu0 %v10277_v49  ;;  %7615 = vmatprep.subr.bf16.mxu1 %v10280_v50  ;;  %v10359_v49 = vld [vmem:[%s10991_s24 + $0x1920] ss:$16 sps:$4 sm:$0xff]   ;;  %v10362_v50 = vld [vmem:[%s10991_s24 + $0x1928] ss:$16 sps:$4 sm:$0xff]  }
 0x347   : > { %6928 = vmatpush1.bf16.msra.mxu0 %v10275_v51  ;;  %7616 = vmatpush1.bf16.msra.mxu1 %v10278_v52  ;;  %v10367_v51 = vld [vmem:[%s10991_s24 + $0x1944] ss:$16 sps:$4 sm:$0xff]   ;;  %v10370_v52 = vld [vmem:[%s10991_s24 + $0x194c] ss:$16 sps:$4 sm:$0xff]  }
 0x348   : > { %6929 = vmatprep.subr.bf16.mxu0 %v10283_v53  ;;  %7617 = vmatprep.subr.bf16.mxu1 %v10286_v54  ;;  %v10365_v53 = vld [vmem:[%s10991_s24 + $0x1940] ss:$16 sps:$4 sm:$0xff]   ;;  %v10368_v54 = vld [vmem:[%s10991_s24 + $0x1948] ss:$16 sps:$4 sm:$0xff]  }
 0x34b   : > { %6930 = vmatpush1.bf16.msra.mxu0 %v10281_v55  ;;  %7618 = vmatpush1.bf16.msra.mxu1 %v10284_v56  ;;  %v10373_v55 = vld [vmem:[%s10991_s24 + $0x1964] ss:$16 sps:$4 sm:$0xff]   ;;  %v10376_v56 = vld [vmem:[%s10991_s24 + $0x196c] ss:$16 sps:$4 sm:$0xff]  }
 0x34c   : > { %6931 = vmatprep.subr.bf16.mxu0 %v10289_v57  ;;  %7619 = vmatprep.subr.bf16.mxu1 %v10292_v58  ;;  %v10371_v57 = vld [vmem:[%s10991_s24 + $0x1960] ss:$16 sps:$4 sm:$0xff]   ;;  %v10374_v58 = vld [vmem:[%s10991_s24 + $0x1968] ss:$16 sps:$4 sm:$0xff]  }
 0x34f   : > { %6932 = vmatpush1.bf16.msra.mxu0 %v10287_v59  ;;  %7620 = vmatpush1.bf16.msra.mxu1 %v10290_v60  ;;  %v10379_v59 = vld [vmem:[%s10991_s24 + $0x1984] ss:$16 sps:$4 sm:$0xff]   ;;  %v10382_v60 = vld [vmem:[%s10991_s24 + $0x198c] ss:$16 sps:$4 sm:$0xff]  }
 0x350   : > { %6933 = vmatprep.subr.bf16.mxu0 %v10295_v61  ;;  %7621 = vmatprep.subr.bf16.mxu1 %v10298_v62  ;;  %v10377_v61 = vld [vmem:[%s10991_s24 + $0x1980] ss:$16 sps:$4 sm:$0xff]   ;;  %v10380_v62 = vld [vmem:[%s10991_s24 + $0x1988] ss:$16 sps:$4 sm:$0xff]  }
 0x353   : > { %6934 = vmatpush1.bf16.msra.mxu0 %v10293_v63  ;;  %7622 = vmatpush1.bf16.msra.mxu1 %v10296_v0  ;;  %v10385_v63 = vld [vmem:[%s10991_s24 + $0x19a4] ss:$16 sps:$4 sm:$0xff]   ;;  %v10388_v0 = vld [vmem:[%s10991_s24 + $0x19ac] ss:$16 sps:$4 sm:$0xff]  }
 0x354   : > { %6935 = vmatprep.subr.bf16.mxu0 %v10301_v1  ;;  %7623 = vmatprep.subr.bf16.mxu1 %v10304_v2  ;;  %v10383_v1 = vld [vmem:[%s10991_s24 + $0x19a0] ss:$16 sps:$4 sm:$0xff]   ;;  %v10386_v2 = vld [vmem:[%s10991_s24 + $0x19a8] ss:$16 sps:$4 sm:$0xff]  }
 0x357   : > { %6936 = vmatpush1.bf16.msra.mxu0 %v10299_v3  ;;  %7624 = vmatpush1.bf16.msra.mxu1 %v10302_v4  ;;  %v10391_v3 = vld [vmem:[%s10991_s24 + $0x19c4] ss:$16 sps:$4 sm:$0xff]   ;;  %v10394_v4 = vld [vmem:[%s10991_s24 + $0x19cc] ss:$16 sps:$4 sm:$0xff]  }
 0x358   : > { %6948 = vmatprep.subr.bf16.mxu0 %v10307_v7  ;;  %7636 = vmatprep.subr.bf16.mxu1 %v10310_v8  ;;  %v10397_v7 = vld [vmem:[%s10991_s24 + $0x19e4] ss:$16 sps:$4 sm:$0xff]   ;;  %v10400_v8 = vld [vmem:[%s10991_s24 + $0x19ec] ss:$16 sps:$4 sm:$0xff]  }
 0x35a   : > { %6938 = vmatmul.mubr.bf16.vlgmr.msra.gmra.mrb[0].mxu0 %v278_v9  ;;  %7626 = vmatmul.mubr.bf16.vlgmr.msra.gmra.mrb[0].mxu1 %v278_v9  ;;  %v10395_v9 = vld [vmem:[%s10991_s24 + $0x19e0] ss:$16 sps:$4 sm:$0xff]  }
 0x35b   : > { %6949 = vmatpush1.bf16.msra.mxu0 %v10305_v12  ;;  %7637 = vmatpush1.bf16.msra.mxu1 %v10308_v13  ;;  %v248_v12 = vld [vmem:[#allocation2 + $0x1c0] sm:$0xff] }
 0x35c   : > { %6950 = vmatprep.subr.bf16.mxu0 %v10313_v14  ;;  %7638 = vmatprep.subr.bf16.mxu1 %v10316_v15  ;;  %v10403_v13 = vld [vmem:[%s10991_s24 + $0x1a04] ss:$16 sps:$4 sm:$0xff]   ;;  %v10406_v14 = vld [vmem:[%s10991_s24 + $0x1a0c] ss:$16 sps:$4 sm:$0xff]   ;;  %v280_v15 = vpack.c.bf16 %v248_v12, %v216_v11  ;;  %v10485_v11 = vld [vmem:[%s10991_s24 + $0x1bc0] ss:$16 sps:$4 sm:$0xff]  }
 0x35d   : > { %6980 = vmatprep.mubr.bf16.mxu0 %v281_v16  ;;  %7668 = vmatprep.mubr.bf16.mxu1 %v281_v16  ;;  %v219_v16 = vld [vmem:[#allocation2 + $0xd8] sm:$0xff] }
 0x35e   : > { %v10488_v12 = vld [vmem:[%s10991_s24 + $0x1bc8] ss:$16 sps:$4 sm:$0xff]  }
 0x35f   : > { %6951 = vmatpush1.bf16.msra.mxu0 %v10311_v17  ;;  %7639 = vmatpush1.bf16.msra.mxu1 %v10314_v18  ;;  %v251_v17 = vld [vmem:[#allocation2 + $0x1d8] sm:$0xff]  ;;  %v10401_v18 = vld [vmem:[%s10991_s24 + $0x1a00] ss:$16 sps:$4 sm:$0xff]  }
 0x360   : > { %6952 = vmatprep.subr.bf16.mxu0 %v10319_v19  ;;  %7640 = vmatprep.subr.bf16.mxu1 %v10322_v20  ;;  %v10404_v19 = vld [vmem:[%s10991_s24 + $0x1a08] ss:$16 sps:$4 sm:$0xff]   ;;  %v10409_v20 = vld [vmem:[%s10991_s24 + $0x1a24] ss:$16 sps:$4 sm:$0xff]  }
 0x363   : > { %6953 = vmatpush1.bf16.msra.mxu0 %v10317_v21  ;;  %7641 = vmatpush1.bf16.msra.mxu1 %v10320_v22  ;;  %v10412_v21 = vld [vmem:[%s10991_s24 + $0x1a2c] ss:$16 sps:$4 sm:$0xff]   ;;  %v283_v22 = vpack.c.bf16 %v251_v17, %v219_v16  ;;  %v10494_v16 = vld [vmem:[%s10991_s24 + $0x1be8] ss:$16 sps:$4 sm:$0xff]   ;;  %v218_v17 = vld [vmem:[#allocation2 + $0xd0] sm:$0xff] }
 0x364   : > { %6954 = vmatprep.subr.bf16.mxu0 %v10325_v23  ;;  %7642 = vmatprep.subr.bf16.mxu1 %v10328_v24  ;;  %v10407_v23 = vld [vmem:[%s10991_s24 + $0x1a20] ss:$16 sps:$4 sm:$0xff]   ;;  %v10410_v24 = vld [vmem:[%s10991_s24 + $0x1a28] ss:$16 sps:$4 sm:$0xff]  }
 0x367   : > { %6955 = vmatpush1.bf16.msra.mxu0 %v10323_v25  ;;  %7643 = vmatpush1.bf16.msra.mxu1 %v10326_v26  ;;  %v10415_v25 = vld [vmem:[%s10991_s24 + $0x1a44] ss:$16 sps:$4 sm:$0xff]   ;;  %v10418_v26 = vld [vmem:[%s10991_s24 + $0x1a4c] ss:$16 sps:$4 sm:$0xff]  }
 0x368   : > { %6956 = vmatprep.subr.bf16.mxu0 %v10331_v27  ;;  %7644 = vmatprep.subr.bf16.mxu1 %v10334_v28  ;;  %v10413_v27 = vld [vmem:[%s10991_s24 + $0x1a40] ss:$16 sps:$4 sm:$0xff]   ;;  %v10416_v28 = vld [vmem:[%s10991_s24 + $0x1a48] ss:$16 sps:$4 sm:$0xff]  }
 0x36b   : > { %6957 = vmatpush1.bf16.msra.mxu0 %v10329_v29  ;;  %7645 = vmatpush1.bf16.msra.mxu1 %v10332_v30  ;;  %v10421_v29 = vld [vmem:[%s10991_s24 + $0x1a64] ss:$16 sps:$4 sm:$0xff]   ;;  %v10424_v30 = vld [vmem:[%s10991_s24 + $0x1a6c] ss:$16 sps:$4 sm:$0xff]  }
 0x36c   : > { %6958 = vmatprep.subr.bf16.mxu0 %v10337_v31  ;;  %7646 = vmatprep.subr.bf16.mxu1 %v10340_v32  ;;  %v10419_v31 = vld [vmem:[%s10991_s24 + $0x1a60] ss:$16 sps:$4 sm:$0xff]   ;;  %v10422_v32 = vld [vmem:[%s10991_s24 + $0x1a68] ss:$16 sps:$4 sm:$0xff]  }
 0x36f   : > { %6959 = vmatpush1.bf16.msra.mxu0 %v10335_v33  ;;  %7647 = vmatpush1.bf16.msra.mxu1 %v10338_v34  ;;  %v10427_v33 = vld [vmem:[%s10991_s24 + $0x1a84] ss:$16 sps:$4 sm:$0xff]   ;;  %v10430_v34 = vld [vmem:[%s10991_s24 + $0x1a8c] ss:$16 sps:$4 sm:$0xff]  }
 0x370   : > { %6960 = vmatprep.subr.bf16.mxu0 %v10343_v35  ;;  %7648 = vmatprep.subr.bf16.mxu1 %v10346_v36  ;;  %v10425_v35 = vld [vmem:[%s10991_s24 + $0x1a80] ss:$16 sps:$4 sm:$0xff]   ;;  %v10428_v36 = vld [vmem:[%s10991_s24 + $0x1a88] ss:$16 sps:$4 sm:$0xff]  }
 0x373   : > { %6961 = vmatpush1.bf16.msra.mxu0 %v10341_v37  ;;  %7649 = vmatpush1.bf16.msra.mxu1 %v10344_v38  ;;  %v10433_v37 = vld [vmem:[%s10991_s24 + $0x1aa4] ss:$16 sps:$4 sm:$0xff]   ;;  %v10436_v38 = vld [vmem:[%s10991_s24 + $0x1aac] ss:$16 sps:$4 sm:$0xff]  }
 0x374   : > { %6962 = vmatprep.subr.bf16.mxu0 %v10349_v39  ;;  %7650 = vmatprep.subr.bf16.mxu1 %v10352_v40  ;;  %v10431_v39 = vld [vmem:[%s10991_s24 + $0x1aa0] ss:$16 sps:$4 sm:$0xff]   ;;  %v10434_v40 = vld [vmem:[%s10991_s24 + $0x1aa8] ss:$16 sps:$4 sm:$0xff]  }
 0x377   : > { %6963 = vmatpush1.bf16.msra.mxu0 %v10347_v41  ;;  %7651 = vmatpush1.bf16.msra.mxu1 %v10350_v42  ;;  %v10439_v41 = vld [vmem:[%s10991_s24 + $0x1ac4] ss:$16 sps:$4 sm:$0xff]   ;;  %v10442_v42 = vld [vmem:[%s10991_s24 + $0x1acc] ss:$16 sps:$4 sm:$0xff]  }
 0x378   : > { %6964 = vmatprep.subr.bf16.mxu0 %v10355_v43  ;;  %7652 = vmatprep.subr.bf16.mxu1 %v10358_v44  ;;  %v10437_v43 = vld [vmem:[%s10991_s24 + $0x1ac0] ss:$16 sps:$4 sm:$0xff]   ;;  %v10440_v44 = vld [vmem:[%s10991_s24 + $0x1ac8] ss:$16 sps:$4 sm:$0xff]  }
 0x37b   : > { %6965 = vmatpush1.bf16.msra.mxu0 %v10353_v45  ;;  %7653 = vmatpush1.bf16.msra.mxu1 %v10356_v46  ;;  %v10445_v45 = vld [vmem:[%s10991_s24 + $0x1ae4] ss:$16 sps:$4 sm:$0xff]   ;;  %v10448_v46 = vld [vmem:[%s10991_s24 + $0x1aec] ss:$16 sps:$4 sm:$0xff]  }
 0x37c   : > { %6966 = vmatprep.subr.bf16.mxu0 %v10361_v47  ;;  %7654 = vmatprep.subr.bf16.mxu1 %v10364_v48  ;;  %v10443_v47 = vld [vmem:[%s10991_s24 + $0x1ae0] ss:$16 sps:$4 sm:$0xff]   ;;  %v10446_v48 = vld [vmem:[%s10991_s24 + $0x1ae8] ss:$16 sps:$4 sm:$0xff]  }
 0x37f   : > { %6967 = vmatpush1.bf16.msra.mxu0 %v10359_v49  ;;  %7655 = vmatpush1.bf16.msra.mxu1 %v10362_v50  ;;  %v10451_v49 = vld [vmem:[%s10991_s24 + $0x1b04] ss:$16 sps:$4 sm:$0xff]   ;;  %v10454_v50 = vld [vmem:[%s10991_s24 + $0x1b0c] ss:$16 sps:$4 sm:$0xff]  }
 0x380   : > { %6968 = vmatprep.subr.bf16.mxu0 %v10367_v51  ;;  %7656 = vmatprep.subr.bf16.mxu1 %v10370_v52  ;;  %v10449_v51 = vld [vmem:[%s10991_s24 + $0x1b00] ss:$16 sps:$4 sm:$0xff]   ;;  %v10452_v52 = vld [vmem:[%s10991_s24 + $0x1b08] ss:$16 sps:$4 sm:$0xff]  }
 0x383   : > { %6969 = vmatpush1.bf16.msra.mxu0 %v10365_v53  ;;  %7657 = vmatpush1.bf16.msra.mxu1 %v10368_v54  ;;  %v10457_v53 = vld [vmem:[%s10991_s24 + $0x1b24] ss:$16 sps:$4 sm:$0xff]   ;;  %v10460_v54 = vld [vmem:[%s10991_s24 + $0x1b2c] ss:$16 sps:$4 sm:$0xff]  }
 0x384   : > { %6970 = vmatprep.subr.bf16.mxu0 %v10373_v55  ;;  %7658 = vmatprep.subr.bf16.mxu1 %v10376_v56  ;;  %v10455_v55 = vld [vmem:[%s10991_s24 + $0x1b20] ss:$16 sps:$4 sm:$0xff]   ;;  %v10458_v56 = vld [vmem:[%s10991_s24 + $0x1b28] ss:$16 sps:$4 sm:$0xff]  }
 0x387   : > { %6971 = vmatpush1.bf16.msra.mxu0 %v10371_v57  ;;  %7659 = vmatpush1.bf16.msra.mxu1 %v10374_v58  ;;  %v10463_v57 = vld [vmem:[%s10991_s24 + $0x1b44] ss:$16 sps:$4 sm:$0xff]   ;;  %v10466_v58 = vld [vmem:[%s10991_s24 + $0x1b4c] ss:$16 sps:$4 sm:$0xff]  }
 0x388   : > { %6972 = vmatprep.subr.bf16.mxu0 %v10379_v59  ;;  %7660 = vmatprep.subr.bf16.mxu1 %v10382_v60  ;;  %v10461_v59 = vld [vmem:[%s10991_s24 + $0x1b40] ss:$16 sps:$4 sm:$0xff]   ;;  %v10464_v60 = vld [vmem:[%s10991_s24 + $0x1b48] ss:$16 sps:$4 sm:$0xff]  }
 0x38b   : > { %6973 = vmatpush1.bf16.msra.mxu0 %v10377_v61  ;;  %7661 = vmatpush1.bf16.msra.mxu1 %v10380_v62  ;;  %v10469_v61 = vld [vmem:[%s10991_s24 + $0x1b64] ss:$16 sps:$4 sm:$0xff]   ;;  %v10472_v62 = vld [vmem:[%s10991_s24 + $0x1b6c] ss:$16 sps:$4 sm:$0xff]  }
 0x38c   : > { %6974 = vmatprep.subr.bf16.mxu0 %v10385_v63  ;;  %7662 = vmatprep.subr.bf16.mxu1 %v10388_v0  ;;  %v10467_v63 = vld [vmem:[%s10991_s24 + $0x1b60] ss:$16 sps:$4 sm:$0xff]   ;;  %v10470_v0 = vld [vmem:[%s10991_s24 + $0x1b68] ss:$16 sps:$4 sm:$0xff]  }
 0x38f   : > { %6975 = vmatpush1.bf16.msra.mxu0 %v10383_v1  ;;  %7663 = vmatpush1.bf16.msra.mxu1 %v10386_v2  ;;  %v10475_v1 = vld [vmem:[%s10991_s24 + $0x1b84] ss:$16 sps:$4 sm:$0xff]   ;;  %v10478_v2 = vld [vmem:[%s10991_s24 + $0x1b8c] ss:$16 sps:$4 sm:$0xff]  }
 0x390   : > { %6976 = vmatprep.subr.bf16.mxu0 %v10391_v3  ;;  %7664 = vmatprep.subr.bf16.mxu1 %v10394_v4  ;;  %v10473_v3 = vld [vmem:[%s10991_s24 + $0x1b80] ss:$16 sps:$4 sm:$0xff]   ;;  %v10476_v4 = vld [vmem:[%s10991_s24 + $0x1b88] ss:$16 sps:$4 sm:$0xff]  }
 0x393   : > { %6977 = vmatpush1.bf16.msra.mxu0 %v10389_v5  ;;  %7665 = vmatpush1.bf16.msra.mxu1 %v10392_v6  ;;  %v10481_v5 = vld [vmem:[%s10991_s24 + $0x1ba4] ss:$16 sps:$4 sm:$0xff]   ;;  %v10484_v6 = vld [vmem:[%s10991_s24 + $0x1bac] ss:$16 sps:$4 sm:$0xff]  }
 0x394   : > { %6978 = vmatprep.subr.bf16.mxu0 %v10397_v7  ;;  %7666 = vmatprep.subr.bf16.mxu1 %v10400_v8  ;;  %v10479_v7 = vld [vmem:[%s10991_s24 + $0x1ba0] ss:$16 sps:$4 sm:$0xff]   ;;  %v10482_v8 = vld [vmem:[%s10991_s24 + $0x1ba8] ss:$16 sps:$4 sm:$0xff]  }
 0x397   : > { %6979 = vmatpush1.bf16.msra.mxu0 %v10395_v9  ;;  %7667 = vmatpush1.bf16.msra.mxu1 %v10398_v10  ;;  %v10487_v9 = vld [vmem:[%s10991_s24 + $0x1bc4] ss:$16 sps:$4 sm:$0xff]   ;;  %v10490_v10 = vld [vmem:[%s10991_s24 + $0x1bcc] ss:$16 sps:$4 sm:$0xff]  }
 0x398   : > { %6991 = vmatprep.subr.bf16.mxu0 %v10403_v13  ;;  %7679 = vmatprep.subr.bf16.mxu1 %v10406_v14  ;;  %v10493_v13 = vld [vmem:[%s10991_s24 + $0x1be4] ss:$16 sps:$4 sm:$0xff]   ;;  %v10496_v14 = vld [vmem:[%s10991_s24 + $0x1bec] ss:$16 sps:$4 sm:$0xff]  }
 0x39a   : > { %6981 = vmatmul.mubr.bf16.vlgmr.msra.gmra.mrb[0].mxu0 %v280_v15  ;;  %7669 = vmatmul.mubr.bf16.vlgmr.msra.gmra.mrb[0].mxu1 %v280_v15  ;;  %v10491_v15 = vld [vmem:[%s10991_s24 + $0x1be0] ss:$16 sps:$4 sm:$0xff]  }
 0x39b   : > { %6992 = vmatpush1.bf16.msra.mxu0 %v10401_v18  ;;  %7680 = vmatpush1.bf16.msra.mxu1 %v10404_v19  ;;  %v250_v18 = vld [vmem:[#allocation2 + $0x1d0] sm:$0xff] }
 0x39c   : > { %6993 = vmatprep.subr.bf16.mxu0 %v10409_v20  ;;  %7681 = vmatprep.subr.bf16.mxu1 %v10412_v21  ;;  %v10499_v19 = vld [vmem:[%s10991_s24 + $0x1c04] ss:$16 sps:$4 sm:$0xff]   ;;  %v10502_v20 = vld [vmem:[%s10991_s24 + $0x1c0c] ss:$16 sps:$4 sm:$0xff]   ;;  %v282_v21 = vpack.c.bf16 %v250_v18, %v218_v17  ;;  %v10581_v17 = vld [vmem:[%s10991_s24 + $0x1dc0] ss:$16 sps:$4 sm:$0xff]  }
 0x39d   : > { %7023 = vmatprep.mubr.bf16.mxu0 %v283_v22  ;;  %7711 = vmatprep.mubr.bf16.mxu1 %v283_v22  ;;  %v221_v22 = vld [vmem:[#allocation2 + $0xe8] sm:$0xff] }
 0x39e   : > { %v10584_v18 = vld [vmem:[%s10991_s24 + $0x1dc8] ss:$16 sps:$4 sm:$0xff]  }
 0x39f   : > { %6994 = vmatpush1.bf16.msra.mxu0 %v10407_v23  ;;  %7682 = vmatpush1.bf16.msra.mxu1 %v10410_v24  ;;  %v253_v23 = vld [vmem:[#allocation2 + $0x1e8] sm:$0xff]  ;;  %v10497_v24 = vld [vmem:[%s10991_s24 + $0x1c00] ss:$16 sps:$4 sm:$0xff]  }
 0x3a0   : > { %6995 = vmatprep.subr.bf16.mxu0 %v10415_v25  ;;  %7683 = vmatprep.subr.bf16.mxu1 %v10418_v26  ;;  %v10500_v25 = vld [vmem:[%s10991_s24 + $0x1c08] ss:$16 sps:$4 sm:$0xff]   ;;  %v10505_v26 = vld [vmem:[%s10991_s24 + $0x1c24] ss:$16 sps:$4 sm:$0xff]  }
 0x3a3   : > { %6996 = vmatpush1.bf16.msra.mxu0 %v10413_v27  ;;  %7684 = vmatpush1.bf16.msra.mxu1 %v10416_v28  ;;  %v10508_v27 = vld [vmem:[%s10991_s24 + $0x1c2c] ss:$16 sps:$4 sm:$0xff]   ;;  %v285_v28 = vpack.c.bf16 %v253_v23, %v221_v22  ;;  %v10590_v22 = vld [vmem:[%s10991_s24 + $0x1de8] ss:$16 sps:$4 sm:$0xff]   ;;  %v220_v23 = vld [vmem:[#allocation2 + $0xe0] sm:$0xff] }
 0x3a4   : > { %6997 = vmatprep.subr.bf16.mxu0 %v10421_v29  ;;  %7685 = vmatprep.subr.bf16.mxu1 %v10424_v30  ;;  %v10503_v29 = vld [vmem:[%s10991_s24 + $0x1c20] ss:$16 sps:$4 sm:$0xff]   ;;  %v10506_v30 = vld [vmem:[%s10991_s24 + $0x1c28] ss:$16 sps:$4 sm:$0xff]  }
 0x3a7   : > { %6998 = vmatpush1.bf16.msra.mxu0 %v10419_v31  ;;  %7686 = vmatpush1.bf16.msra.mxu1 %v10422_v32  ;;  %v10511_v31 = vld [vmem:[%s10991_s24 + $0x1c44] ss:$16 sps:$4 sm:$0xff]   ;;  %v10514_v32 = vld [vmem:[%s10991_s24 + $0x1c4c] ss:$16 sps:$4 sm:$0xff]  }
 0x3a8   : > { %6999 = vmatprep.subr.bf16.mxu0 %v10427_v33  ;;  %7687 = vmatprep.subr.bf16.mxu1 %v10430_v34  ;;  %v10509_v33 = vld [vmem:[%s10991_s24 + $0x1c40] ss:$16 sps:$4 sm:$0xff]   ;;  %v10512_v34 = vld [vmem:[%s10991_s24 + $0x1c48] ss:$16 sps:$4 sm:$0xff]  }
 0x3ab   : > { %7000 = vmatpush1.bf16.msra.mxu0 %v10425_v35  ;;  %7688 = vmatpush1.bf16.msra.mxu1 %v10428_v36  ;;  %v10517_v35 = vld [vmem:[%s10991_s24 + $0x1c64] ss:$16 sps:$4 sm:$0xff]   ;;  %v10520_v36 = vld [vmem:[%s10991_s24 + $0x1c6c] ss:$16 sps:$4 sm:$0xff]  }
 0x3ac   : > { %7001 = vmatprep.subr.bf16.mxu0 %v10433_v37  ;;  %7689 = vmatprep.subr.bf16.mxu1 %v10436_v38  ;;  %v10515_v37 = vld [vmem:[%s10991_s24 + $0x1c60] ss:$16 sps:$4 sm:$0xff]   ;;  %v10518_v38 = vld [vmem:[%s10991_s24 + $0x1c68] ss:$16 sps:$4 sm:$0xff]  }
 0x3af   : > { %7002 = vmatpush1.bf16.msra.mxu0 %v10431_v39  ;;  %7690 = vmatpush1.bf16.msra.mxu1 %v10434_v40  ;;  %v10523_v39 = vld [vmem:[%s10991_s24 + $0x1c84] ss:$16 sps:$4 sm:$0xff]   ;;  %v10526_v40 = vld [vmem:[%s10991_s24 + $0x1c8c] ss:$16 sps:$4 sm:$0xff]  }
 0x3b0   : > { %7003 = vmatprep.subr.bf16.mxu0 %v10439_v41  ;;  %7691 = vmatprep.subr.bf16.mxu1 %v10442_v42  ;;  %v10521_v41 = vld [vmem:[%s10991_s24 + $0x1c80] ss:$16 sps:$4 sm:$0xff]   ;;  %v10524_v42 = vld [vmem:[%s10991_s24 + $0x1c88] ss:$16 sps:$4 sm:$0xff]  }
 0x3b3   : > { %7004 = vmatpush1.bf16.msra.mxu0 %v10437_v43  ;;  %7692 = vmatpush1.bf16.msra.mxu1 %v10440_v44  ;;  %v10529_v43 = vld [vmem:[%s10991_s24 + $0x1ca4] ss:$16 sps:$4 sm:$0xff]   ;;  %v10532_v44 = vld [vmem:[%s10991_s24 + $0x1cac] ss:$16 sps:$4 sm:$0xff]  }
 0x3b4   : > { %7005 = vmatprep.subr.bf16.mxu0 %v10445_v45  ;;  %7693 = vmatprep.subr.bf16.mxu1 %v10448_v46  ;;  %v10527_v45 = vld [vmem:[%s10991_s24 + $0x1ca0] ss:$16 sps:$4 sm:$0xff]   ;;  %v10530_v46 = vld [vmem:[%s10991_s24 + $0x1ca8] ss:$16 sps:$4 sm:$0xff]  }
 0x3b7   : > { %7006 = vmatpush1.bf16.msra.mxu0 %v10443_v47  ;;  %7694 = vmatpush1.bf16.msra.mxu1 %v10446_v48  ;;  %v10535_v47 = vld [vmem:[%s10991_s24 + $0x1cc4] ss:$16 sps:$4 sm:$0xff]   ;;  %v10538_v48 = vld [vmem:[%s10991_s24 + $0x1ccc] ss:$16 sps:$4 sm:$0xff]  }
 0x3b8   : > { %7007 = vmatprep.subr.bf16.mxu0 %v10451_v49  ;;  %7695 = vmatprep.subr.bf16.mxu1 %v10454_v50  ;;  %v10533_v49 = vld [vmem:[%s10991_s24 + $0x1cc0] ss:$16 sps:$4 sm:$0xff]   ;;  %v10536_v50 = vld [vmem:[%s10991_s24 + $0x1cc8] ss:$16 sps:$4 sm:$0xff]  }
 0x3bb   : > { %7008 = vmatpush1.bf16.msra.mxu0 %v10449_v51  ;;  %7696 = vmatpush1.bf16.msra.mxu1 %v10452_v52  ;;  %v10541_v51 = vld [vmem:[%s10991_s24 + $0x1ce4] ss:$16 sps:$4 sm:$0xff]   ;;  %v10544_v52 = vld [vmem:[%s10991_s24 + $0x1cec] ss:$16 sps:$4 sm:$0xff]  }
 0x3bc   : > { %7009 = vmatprep.subr.bf16.mxu0 %v10457_v53  ;;  %7697 = vmatprep.subr.bf16.mxu1 %v10460_v54  ;;  %v10539_v53 = vld [vmem:[%s10991_s24 + $0x1ce0] ss:$16 sps:$4 sm:$0xff]   ;;  %v10542_v54 = vld [vmem:[%s10991_s24 + $0x1ce8] ss:$16 sps:$4 sm:$0xff]  }
 0x3bf   : > { %7010 = vmatpush1.bf16.msra.mxu0 %v10455_v55  ;;  %7698 = vmatpush1.bf16.msra.mxu1 %v10458_v56  ;;  %v10547_v55 = vld [vmem:[%s10991_s24 + $0x1d04] ss:$16 sps:$4 sm:$0xff]   ;;  %v10550_v56 = vld [vmem:[%s10991_s24 + $0x1d0c] ss:$16 sps:$4 sm:$0xff]  }
 0x3c0   : > { %7011 = vmatprep.subr.bf16.mxu0 %v10463_v57  ;;  %7699 = vmatprep.subr.bf16.mxu1 %v10466_v58  ;;  %v10545_v57 = vld [vmem:[%s10991_s24 + $0x1d00] ss:$16 sps:$4 sm:$0xff]   ;;  %v10548_v58 = vld [vmem:[%s10991_s24 + $0x1d08] ss:$16 sps:$4 sm:$0xff]  }
 0x3c3   : > { %7012 = vmatpush1.bf16.msra.mxu0 %v10461_v59  ;;  %7700 = vmatpush1.bf16.msra.mxu1 %v10464_v60  ;;  %v10553_v59 = vld [vmem:[%s10991_s24 + $0x1d24] ss:$16 sps:$4 sm:$0xff]   ;;  %v10556_v60 = vld [vmem:[%s10991_s24 + $0x1d2c] ss:$16 sps:$4 sm:$0xff]  }
 0x3c4   : > { %7013 = vmatprep.subr.bf16.mxu0 %v10469_v61  ;;  %7701 = vmatprep.subr.bf16.mxu1 %v10472_v62  ;;  %v10551_v61 = vld [vmem:[%s10991_s24 + $0x1d20] ss:$16 sps:$4 sm:$0xff]   ;;  %v10554_v62 = vld [vmem:[%s10991_s24 + $0x1d28] ss:$16 sps:$4 sm:$0xff]  }
 0x3c7   : > { %7014 = vmatpush1.bf16.msra.mxu0 %v10467_v63  ;;  %7702 = vmatpush1.bf16.msra.mxu1 %v10470_v0  ;;  %v10559_v63 = vld [vmem:[%s10991_s24 + $0x1d44] ss:$16 sps:$4 sm:$0xff]   ;;  %v10562_v0 = vld [vmem:[%s10991_s24 + $0x1d4c] ss:$16 sps:$4 sm:$0xff]  }
 0x3c8   : > { %7015 = vmatprep.subr.bf16.mxu0 %v10475_v1  ;;  %7703 = vmatprep.subr.bf16.mxu1 %v10478_v2  ;;  %v10557_v1 = vld [vmem:[%s10991_s24 + $0x1d40] ss:$16 sps:$4 sm:$0xff]   ;;  %v10560_v2 = vld [vmem:[%s10991_s24 + $0x1d48] ss:$16 sps:$4 sm:$0xff]  }
 0x3cb   : > { %7016 = vmatpush1.bf16.msra.mxu0 %v10473_v3  ;;  %7704 = vmatpush1.bf16.msra.mxu1 %v10476_v4  ;;  %v10565_v3 = vld [vmem:[%s10991_s24 + $0x1d64] ss:$16 sps:$4 sm:$0xff]   ;;  %v10568_v4 = vld [vmem:[%s10991_s24 + $0x1d6c] ss:$16 sps:$4 sm:$0xff]  }
 0x3cc   : > { %7017 = vmatprep.subr.bf16.mxu0 %v10481_v5  ;;  %7705 = vmatprep.subr.bf16.mxu1 %v10484_v6  ;;  %v10563_v5 = vld [vmem:[%s10991_s24 + $0x1d60] ss:$16 sps:$4 sm:$0xff]   ;;  %v10566_v6 = vld [vmem:[%s10991_s24 + $0x1d68] ss:$16 sps:$4 sm:$0xff]  }
 0x3cf   : > { %7018 = vmatpush1.bf16.msra.mxu0 %v10479_v7  ;;  %7706 = vmatpush1.bf16.msra.mxu1 %v10482_v8  ;;  %v10571_v7 = vld [vmem:[%s10991_s24 + $0x1d84] ss:$16 sps:$4 sm:$0xff]   ;;  %v10574_v8 = vld [vmem:[%s10991_s24 + $0x1d8c] ss:$16 sps:$4 sm:$0xff]  }
 0x3d0   : > { %7019 = vmatprep.subr.bf16.mxu0 %v10487_v9  ;;  %7707 = vmatprep.subr.bf16.mxu1 %v10490_v10  ;;  %v10569_v9 = vld [vmem:[%s10991_s24 + $0x1d80] ss:$16 sps:$4 sm:$0xff]   ;;  %v10572_v10 = vld [vmem:[%s10991_s24 + $0x1d88] ss:$16 sps:$4 sm:$0xff]  }
 0x3d3   : > { %7020 = vmatpush1.bf16.msra.mxu0 %v10485_v11  ;;  %7708 = vmatpush1.bf16.msra.mxu1 %v10488_v12  ;;  %v10577_v11 = vld [vmem:[%s10991_s24 + $0x1da4] ss:$16 sps:$4 sm:$0xff]   ;;  %v10580_v12 = vld [vmem:[%s10991_s24 + $0x1dac] ss:$16 sps:$4 sm:$0xff]  }
 0x3d4   : > { %7021 = vmatprep.subr.bf16.mxu0 %v10493_v13  ;;  %7709 = vmatprep.subr.bf16.mxu1 %v10496_v14  ;;  %v10575_v13 = vld [vmem:[%s10991_s24 + $0x1da0] ss:$16 sps:$4 sm:$0xff]   ;;  %v10578_v14 = vld [vmem:[%s10991_s24 + $0x1da8] ss:$16 sps:$4 sm:$0xff]  }
 0x3d7   : > { %7022 = vmatpush1.bf16.msra.mxu0 %v10491_v15  ;;  %7710 = vmatpush1.bf16.msra.mxu1 %v10494_v16  ;;  %v10583_v15 = vld [vmem:[%s10991_s24 + $0x1dc4] ss:$16 sps:$4 sm:$0xff]   ;;  %v10586_v16 = vld [vmem:[%s10991_s24 + $0x1dcc] ss:$16 sps:$4 sm:$0xff]  }
 0x3d8   : > { %7034 = vmatprep.subr.bf16.mxu0 %v10499_v19  ;;  %7722 = vmatprep.subr.bf16.mxu1 %v10502_v20  ;;  %v10589_v19 = vld [vmem:[%s10991_s24 + $0x1de4] ss:$16 sps:$4 sm:$0xff]   ;;  %v10592_v20 = vld [vmem:[%s10991_s24 + $0x1dec] ss:$16 sps:$4 sm:$0xff]  }
 0x3da   : > { %7024 = vmatmul.mubr.bf16.vlgmr.msra.gmra.mrb[0].mxu0 %v282_v21  ;;  %7712 = vmatmul.mubr.bf16.vlgmr.msra.gmra.mrb[0].mxu1 %v282_v21  ;;  %v10587_v21 = vld [vmem:[%s10991_s24 + $0x1de0] ss:$16 sps:$4 sm:$0xff]  }
 0x3db   : > { %7035 = vmatpush1.bf16.msra.mxu0 %v10497_v24  ;;  %7723 = vmatpush1.bf16.msra.mxu1 %v10500_v25  ;;  %v252_v24 = vld [vmem:[#allocation2 + $0x1e0] sm:$0xff] }
 0x3dc   : > { %7036 = vmatprep.subr.bf16.mxu0 %v10505_v26  ;;  %7724 = vmatprep.subr.bf16.mxu1 %v10508_v27  ;;  %v10595_v25 = vld [vmem:[%s10991_s24 + $0x1e04] ss:$16 sps:$4 sm:$0xff]   ;;  %v10598_v26 = vld [vmem:[%s10991_s24 + $0x1e0c] ss:$16 sps:$4 sm:$0xff]   ;;  %v284_v27 = vpack.c.bf16 %v252_v24, %v220_v23  ;;  %v10677_v23 = vld [vmem:[%s10991_s24 + $0x1fc0] ss:$16 sps:$4 sm:$0xff]  }
 0x3dd   : > { %7066 = vmatprep.mubr.bf16.mxu0 %v285_v28  ;;  %7754 = vmatprep.mubr.bf16.mxu1 %v285_v28  ;;  %v223_v28 = vld [vmem:[#allocation2 + $0xf8] sm:$0xff] }
 0x3de   : > { %v10680_v24 = vld [vmem:[%s10991_s24 + $0x1fc8] ss:$16 sps:$4 sm:$0xff]  }
 0x3df   : > { %7037 = vmatpush1.bf16.msra.mxu0 %v10503_v29  ;;  %7725 = vmatpush1.bf16.msra.mxu1 %v10506_v30  ;;  %v255_v29 = vld [vmem:[#allocation2 + $0x1f8] sm:$0xff]  ;;  %v10593_v30 = vld [vmem:[%s10991_s24 + $0x1e00] ss:$16 sps:$4 sm:$0xff]  }
 0x3e0   : > { %7038 = vmatprep.subr.bf16.mxu0 %v10511_v31  ;;  %7726 = vmatprep.subr.bf16.mxu1 %v10514_v32  ;;  %v10596_v31 = vld [vmem:[%s10991_s24 + $0x1e08] ss:$16 sps:$4 sm:$0xff]   ;;  %v10601_v32 = vld [vmem:[%s10991_s24 + $0x1e24] ss:$16 sps:$4 sm:$0xff]  }
 0x3e3   : > { %7039 = vmatpush1.bf16.msra.mxu0 %v10509_v33  ;;  %7727 = vmatpush1.bf16.msra.mxu1 %v10512_v34  ;;  %v10604_v33 = vld [vmem:[%s10991_s24 + $0x1e2c] ss:$16 sps:$4 sm:$0xff]   ;;  %v287_v34 = vpack.c.bf16 %v255_v29, %v223_v28  ;;  %v10686_v28 = vld [vmem:[%s10991_s24 + $0x1fe8] ss:$16 sps:$4 sm:$0xff]   ;;  %v222_v29 = vld [vmem:[#allocation2 + $0xf0] sm:$0xff] }
 0x3e4   : > { %7040 = vmatprep.subr.bf16.mxu0 %v10517_v35  ;;  %7728 = vmatprep.subr.bf16.mxu1 %v10520_v36  ;;  %v10599_v35 = vld [vmem:[%s10991_s24 + $0x1e20] ss:$16 sps:$4 sm:$0xff]   ;;  %v10602_v36 = vld [vmem:[%s10991_s24 + $0x1e28] ss:$16 sps:$4 sm:$0xff]  }
 0x3e7   : > { %7041 = vmatpush1.bf16.msra.mxu0 %v10515_v37  ;;  %7729 = vmatpush1.bf16.msra.mxu1 %v10518_v38  ;;  %v10607_v37 = vld [vmem:[%s10991_s24 + $0x1e44] ss:$16 sps:$4 sm:$0xff]   ;;  %v10610_v38 = vld [vmem:[%s10991_s24 + $0x1e4c] ss:$16 sps:$4 sm:$0xff]  }
 0x3e8   : > { %7042 = vmatprep.subr.bf16.mxu0 %v10523_v39  ;;  %7730 = vmatprep.subr.bf16.mxu1 %v10526_v40  ;;  %v10605_v39 = vld [vmem:[%s10991_s24 + $0x1e40] ss:$16 sps:$4 sm:$0xff]   ;;  %v10608_v40 = vld [vmem:[%s10991_s24 + $0x1e48] ss:$16 sps:$4 sm:$0xff]  }
 0x3eb   : > { %7043 = vmatpush1.bf16.msra.mxu0 %v10521_v41  ;;  %7731 = vmatpush1.bf16.msra.mxu1 %v10524_v42  ;;  %v10613_v41 = vld [vmem:[%s10991_s24 + $0x1e64] ss:$16 sps:$4 sm:$0xff]   ;;  %v10616_v42 = vld [vmem:[%s10991_s24 + $0x1e6c] ss:$16 sps:$4 sm:$0xff]  }
 0x3ec   : > { %7044 = vmatprep.subr.bf16.mxu0 %v10529_v43  ;;  %7732 = vmatprep.subr.bf16.mxu1 %v10532_v44  ;;  %v10611_v43 = vld [vmem:[%s10991_s24 + $0x1e60] ss:$16 sps:$4 sm:$0xff]   ;;  %v10614_v44 = vld [vmem:[%s10991_s24 + $0x1e68] ss:$16 sps:$4 sm:$0xff]  }
 0x3ef   : > { %7045 = vmatpush1.bf16.msra.mxu0 %v10527_v45  ;;  %7733 = vmatpush1.bf16.msra.mxu1 %v10530_v46  ;;  %v10619_v45 = vld [vmem:[%s10991_s24 + $0x1e84] ss:$16 sps:$4 sm:$0xff]   ;;  %v10622_v46 = vld [vmem:[%s10991_s24 + $0x1e8c] ss:$16 sps:$4 sm:$0xff]  }
 0x3f0   : > { %7046 = vmatprep.subr.bf16.mxu0 %v10535_v47  ;;  %7734 = vmatprep.subr.bf16.mxu1 %v10538_v48  ;;  %v10617_v47 = vld [vmem:[%s10991_s24 + $0x1e80] ss:$16 sps:$4 sm:$0xff]   ;;  %v10620_v48 = vld [vmem:[%s10991_s24 + $0x1e88] ss:$16 sps:$4 sm:$0xff]  }
 0x3f3   : > { %7047 = vmatpush1.bf16.msra.mxu0 %v10533_v49  ;;  %7735 = vmatpush1.bf16.msra.mxu1 %v10536_v50  ;;  %v10625_v49 = vld [vmem:[%s10991_s24 + $0x1ea4] ss:$16 sps:$4 sm:$0xff]   ;;  %v10628_v50 = vld [vmem:[%s10991_s24 + $0x1eac] ss:$16 sps:$4 sm:$0xff]  }
 0x3f4   : > { %7048 = vmatprep.subr.bf16.mxu0 %v10541_v51  ;;  %7736 = vmatprep.subr.bf16.mxu1 %v10544_v52  ;;  %v10623_v51 = vld [vmem:[%s10991_s24 + $0x1ea0] ss:$16 sps:$4 sm:$0xff]   ;;  %v10626_v52 = vld [vmem:[%s10991_s24 + $0x1ea8] ss:$16 sps:$4 sm:$0xff]  }
 0x3f7   : > { %7049 = vmatpush1.bf16.msra.mxu0 %v10539_v53  ;;  %7737 = vmatpush1.bf16.msra.mxu1 %v10542_v54  ;;  %v10631_v53 = vld [vmem:[%s10991_s24 + $0x1ec4] ss:$16 sps:$4 sm:$0xff]   ;;  %v10634_v54 = vld [vmem:[%s10991_s24 + $0x1ecc] ss:$16 sps:$4 sm:$0xff]  }
 0x3f8   : > { %7050 = vmatprep.subr.bf16.mxu0 %v10547_v55  ;;  %7738 = vmatprep.subr.bf16.mxu1 %v10550_v56  ;;  %v10629_v55 = vld [vmem:[%s10991_s24 + $0x1ec0] ss:$16 sps:$4 sm:$0xff]   ;;  %v10632_v56 = vld [vmem:[%s10991_s24 + $0x1ec8] ss:$16 sps:$4 sm:$0xff]  }
 0x3fb   : > { %7051 = vmatpush1.bf16.msra.mxu0 %v10545_v57  ;;  %7739 = vmatpush1.bf16.msra.mxu1 %v10548_v58  ;;  %v10637_v57 = vld [vmem:[%s10991_s24 + $0x1ee4] ss:$16 sps:$4 sm:$0xff]   ;;  %v10640_v58 = vld [vmem:[%s10991_s24 + $0x1eec] ss:$16 sps:$4 sm:$0xff]  }
 0x3fc   : > { %7052 = vmatprep.subr.bf16.mxu0 %v10553_v59  ;;  %7740 = vmatprep.subr.bf16.mxu1 %v10556_v60  ;;  %v10635_v59 = vld [vmem:[%s10991_s24 + $0x1ee0] ss:$16 sps:$4 sm:$0xff]   ;;  %v10638_v60 = vld [vmem:[%s10991_s24 + $0x1ee8] ss:$16 sps:$4 sm:$0xff]  }
 0x3ff   : > { %7053 = vmatpush1.bf16.msra.mxu0 %v10551_v61  ;;  %7741 = vmatpush1.bf16.msra.mxu1 %v10554_v62  ;;  %v10643_v61 = vld [vmem:[%s10991_s24 + $0x1f04] ss:$16 sps:$4 sm:$0xff]   ;;  %v10646_v62 = vld [vmem:[%s10991_s24 + $0x1f0c] ss:$16 sps:$4 sm:$0xff]  }
 0x400   : > { %7054 = vmatprep.subr.bf16.mxu0 %v10559_v63  ;;  %7742 = vmatprep.subr.bf16.mxu1 %v10562_v0  ;;  %v10641_v63 = vld [vmem:[%s10991_s24 + $0x1f00] ss:$16 sps:$4 sm:$0xff]   ;;  %v10644_v0 = vld [vmem:[%s10991_s24 + $0x1f08] ss:$16 sps:$4 sm:$0xff]  }
 0x403   : > { %7055 = vmatpush1.bf16.msra.mxu0 %v10557_v1  ;;  %7743 = vmatpush1.bf16.msra.mxu1 %v10560_v2  ;;  %v10649_v1 = vld [vmem:[%s10991_s24 + $0x1f24] ss:$16 sps:$4 sm:$0xff]   ;;  %v10652_v2 = vld [vmem:[%s10991_s24 + $0x1f2c] ss:$16 sps:$4 sm:$0xff]  }
 0x404   : > { %7056 = vmatprep.subr.bf16.mxu0 %v10565_v3  ;;  %7744 = vmatprep.subr.bf16.mxu1 %v10568_v4  ;;  %v10647_v3 = vld [vmem:[%s10991_s24 + $0x1f20] ss:$16 sps:$4 sm:$0xff]   ;;  %v10650_v4 = vld [vmem:[%s10991_s24 + $0x1f28] ss:$16 sps:$4 sm:$0xff]  }
 0x407   : > { %7057 = vmatpush1.bf16.msra.mxu0 %v10563_v5  ;;  %7745 = vmatpush1.bf16.msra.mxu1 %v10566_v6  ;;  %v10655_v5 = vld [vmem:[%s10991_s24 + $0x1f44] ss:$16 sps:$4 sm:$0xff]   ;;  %v10658_v6 = vld [vmem:[%s10991_s24 + $0x1f4c] ss:$16 sps:$4 sm:$0xff]  }
 0x408   : > { %7058 = vmatprep.subr.bf16.mxu0 %v10571_v7  ;;  %7746 = vmatprep.subr.bf16.mxu1 %v10574_v8  ;;  %v10653_v7 = vld [vmem:[%s10991_s24 + $0x1f40] ss:$16 sps:$4 sm:$0xff]   ;;  %v10656_v8 = vld [vmem:[%s10991_s24 + $0x1f48] ss:$16 sps:$4 sm:$0xff]  }
 0x40b   : > { %7059 = vmatpush1.bf16.msra.mxu0 %v10569_v9  ;;  %7747 = vmatpush1.bf16.msra.mxu1 %v10572_v10  ;;  %v10661_v9 = vld [vmem:[%s10991_s24 + $0x1f64] ss:$16 sps:$4 sm:$0xff]   ;;  %v10664_v10 = vld [vmem:[%s10991_s24 + $0x1f6c] ss:$16 sps:$4 sm:$0xff]  }
 0x40c   : > { %7060 = vmatprep.subr.bf16.mxu0 %v10577_v11  ;;  %7748 = vmatprep.subr.bf16.mxu1 %v10580_v12  ;;  %v10659_v11 = vld [vmem:[%s10991_s24 + $0x1f60] ss:$16 sps:$4 sm:$0xff]   ;;  %v10662_v12 = vld [vmem:[%s10991_s24 + $0x1f68] ss:$16 sps:$4 sm:$0xff]  }
 0x40f   : > { %7061 = vmatpush1.bf16.msra.mxu0 %v10575_v13  ;;  %7749 = vmatpush1.bf16.msra.mxu1 %v10578_v14  ;;  %v10667_v13 = vld [vmem:[%s10991_s24 + $0x1f84] ss:$16 sps:$4 sm:$0xff]   ;;  %v10670_v14 = vld [vmem:[%s10991_s24 + $0x1f8c] ss:$16 sps:$4 sm:$0xff]  }
 0x410   : > { %7062 = vmatprep.subr.bf16.mxu0 %v10583_v15  ;;  %7750 = vmatprep.subr.bf16.mxu1 %v10586_v16  ;;  %v10665_v15 = vld [vmem:[%s10991_s24 + $0x1f80] ss:$16 sps:$4 sm:$0xff]   ;;  %v10668_v16 = vld [vmem:[%s10991_s24 + $0x1f88] ss:$16 sps:$4 sm:$0xff]  }
 0x413   : > { %7063 = vmatpush1.bf16.msra.mxu0 %v10581_v17  ;;  %7751 = vmatpush1.bf16.msra.mxu1 %v10584_v18  ;;  %v10673_v17 = vld [vmem:[%s10991_s24 + $0x1fa4] ss:$16 sps:$4 sm:$0xff]   ;;  %v10676_v18 = vld [vmem:[%s10991_s24 + $0x1fac] ss:$16 sps:$4 sm:$0xff]  }
 0x414   : > { %7064 = vmatprep.subr.bf16.mxu0 %v10589_v19  ;;  %7752 = vmatprep.subr.bf16.mxu1 %v10592_v20  ;;  %v10671_v19 = vld [vmem:[%s10991_s24 + $0x1fa0] ss:$16 sps:$4 sm:$0xff]   ;;  %v10674_v20 = vld [vmem:[%s10991_s24 + $0x1fa8] ss:$16 sps:$4 sm:$0xff]  }
 0x417   : > { %7065 = vmatpush1.bf16.msra.mxu0 %v10587_v21  ;;  %7753 = vmatpush1.bf16.msra.mxu1 %v10590_v22  ;;  %v10679_v21 = vld [vmem:[%s10991_s24 + $0x1fc4] ss:$16 sps:$4 sm:$0xff]   ;;  %v10682_v22 = vld [vmem:[%s10991_s24 + $0x1fcc] ss:$16 sps:$4 sm:$0xff]  }
 0x418   : > { %7077 = vmatprep.subr.bf16.mxu0 %v10595_v25  ;;  %7765 = vmatprep.subr.bf16.mxu1 %v10598_v26  ;;  %v10685_v25 = vld [vmem:[%s10991_s24 + $0x1fe4] ss:$16 sps:$4 sm:$0xff]   ;;  %v10688_v26 = vld [vmem:[%s10991_s24 + $0x1fec] ss:$16 sps:$4 sm:$0xff]  }
 0x41a   : > { %7067 = vmatmul.mubr.bf16.vlgmr.msra.gmra.mrb[0].mxu0 %v284_v27  ;;  %7755 = vmatmul.mubr.bf16.vlgmr.msra.gmra.mrb[0].mxu1 %v284_v27  ;;  %v10683_v27 = vld [vmem:[%s10991_s24 + $0x1fe0] ss:$16 sps:$4 sm:$0xff]  }
 0x41b   : > { %7078 = vmatpush1.bf16.msra.mxu0 %v10593_v30  ;;  %7766 = vmatpush1.bf16.msra.mxu1 %v10596_v31  ;;  %v254_v30 = vld [vmem:[#allocation2 + $0x1f0] sm:$0xff] }
 0x41c   : > { %7079 = vmatprep.subr.bf16.mxu0 %v10601_v32  ;;  %7767 = vmatprep.subr.bf16.mxu1 %v10604_v33  ;;  %v286_v31 = vpack.c.bf16 %v254_v30, %v222_v29  ;;  %v184_v32 = vld [vmem:[%s183_s19] sm:$0xff]  ;;  %v186_v33 = vld [vmem:[%s183_s19 + $0x10] sm:$0xff] }
 0x41d   : > { %7109 = vmatprep.mubr.bf16.mxu0 %v287_v34  ;;  %7797 = vmatprep.mubr.bf16.mxu1 %v287_v34  ;;  %v185_v34 = vld [vmem:[%s183_s19 + $0x8] sm:$0xff] }
 0x41f   : > { %7080 = vmatpush1.bf16.msra.mxu0 %v10599_v35  ;;  %7768 = vmatpush1.bf16.msra.mxu1 %v10602_v36  ;;  %v187_v35 = vld [vmem:[%s183_s19 + $0x18] sm:$0xff] }
 0x420   : > { %7081 = vmatprep.subr.bf16.mxu0 %v10607_v37  ;;  %7769 = vmatprep.subr.bf16.mxu1 %v10610_v38  ;;  %v188_v38 = vld [vmem:[%s183_s19 + $0x100] sm:$0xff] }
 0x423   : > { %7082 = vmatpush1.bf16.msra.mxu0 %v10605_v39  ;;  %7770 = vmatpush1.bf16.msra.mxu1 %v10608_v40  ;;  %v190_v39 = vld [vmem:[%s183_s19 + $0x110] sm:$0xff] }
 0x424   : > { %7083 = vmatprep.subr.bf16.mxu0 %v10613_v41  ;;  %7771 = vmatprep.subr.bf16.mxu1 %v10616_v42 }
 0x427   : > { %7084 = vmatpush1.bf16.msra.mxu0 %v10611_v43  ;;  %7772 = vmatpush1.bf16.msra.mxu1 %v10614_v44  ;;  %v189_v44 = vld [vmem:[%s183_s19 + $0x108] sm:$0xff] }
 0x428   : > { %7085 = vmatprep.subr.bf16.mxu0 %v10619_v45  ;;  %7773 = vmatprep.subr.bf16.mxu1 %v10622_v46  ;;  %v191_v45 = vld [vmem:[%s183_s19 + $0x118] sm:$0xff] }
 0x42b   : > { %7086 = vmatpush1.bf16.msra.mxu0 %v10617_v47  ;;  %7774 = vmatpush1.bf16.msra.mxu1 %v10620_v48 }
 0x42c   : > { %7087 = vmatprep.subr.bf16.mxu0 %v10625_v49  ;;  %7775 = vmatprep.subr.bf16.mxu1 %v10628_v50 }
 0x42f   : > { %7088 = vmatpush1.bf16.msra.mxu0 %v10623_v51  ;;  %7776 = vmatpush1.bf16.msra.mxu1 %v10626_v52 }
 0x430   : > { %7089 = vmatprep.subr.bf16.mxu0 %v10631_v53  ;;  %7777 = vmatprep.subr.bf16.mxu1 %v10634_v54 }
 0x433   : > { %7090 = vmatpush1.bf16.msra.mxu0 %v10629_v55  ;;  %7778 = vmatpush1.bf16.msra.mxu1 %v10632_v56 }
 0x434   : > { %7091 = vmatprep.subr.bf16.mxu0 %v10637_v57  ;;  %7779 = vmatprep.subr.bf16.mxu1 %v10640_v58 }
 0x437   : > { %7092 = vmatpush1.bf16.msra.mxu0 %v10635_v59  ;;  %7780 = vmatpush1.bf16.msra.mxu1 %v10638_v60 }
 0x438   : > { %7093 = vmatprep.subr.bf16.mxu0 %v10643_v61  ;;  %7781 = vmatprep.subr.bf16.mxu1 %v10646_v62 }
 0x43b   : > { %7094 = vmatpush1.bf16.msra.mxu0 %v10641_v63  ;;  %7782 = vmatpush1.bf16.msra.mxu1 %v10644_v0 }
 0x43c   : > { %7095 = vmatprep.subr.bf16.mxu0 %v10649_v1  ;;  %7783 = vmatprep.subr.bf16.mxu1 %v10652_v2 }
 0x43f   : > { %7096 = vmatpush1.bf16.msra.mxu0 %v10647_v3  ;;  %7784 = vmatpush1.bf16.msra.mxu1 %v10650_v4 }
 0x440   : > { %7097 = vmatprep.subr.bf16.mxu0 %v10655_v5  ;;  %7785 = vmatprep.subr.bf16.mxu1 %v10658_v6 }
 0x443   : > { %7098 = vmatpush1.bf16.msra.mxu0 %v10653_v7  ;;  %7786 = vmatpush1.bf16.msra.mxu1 %v10656_v8 }
 0x444   : > { %7099 = vmatprep.subr.bf16.mxu0 %v10661_v9  ;;  %7787 = vmatprep.subr.bf16.mxu1 %v10664_v10 }
 0x447   : > { %7100 = vmatpush1.bf16.msra.mxu0 %v10659_v11  ;;  %7788 = vmatpush1.bf16.msra.mxu1 %v10662_v12 }
 0x448   : > { %7101 = vmatprep.subr.bf16.mxu0 %v10667_v13  ;;  %7789 = vmatprep.subr.bf16.mxu1 %v10670_v14 }
 0x44b   : > { %7102 = vmatpush1.bf16.msra.mxu0 %v10665_v15  ;;  %7790 = vmatpush1.bf16.msra.mxu1 %v10668_v16 }
 0x44c   : > { %7103 = vmatprep.subr.bf16.mxu0 %v10673_v17  ;;  %7791 = vmatprep.subr.bf16.mxu1 %v10676_v18 }
 0x44f   : > { %7104 = vmatpush1.bf16.msra.mxu0 %v10671_v19  ;;  %7792 = vmatpush1.bf16.msra.mxu1 %v10674_v20 }
 0x450   : > { %7105 = vmatprep.subr.bf16.mxu0 %v10679_v21  ;;  %7793 = vmatprep.subr.bf16.mxu1 %v10682_v22 }
 0x453   : > { %7106 = vmatpush1.bf16.msra.mxu0 %v10677_v23  ;;  %7794 = vmatpush1.bf16.msra.mxu1 %v10680_v24 }
 0x454   : > { %7107 = vmatprep.subr.bf16.mxu0 %v10685_v25  ;;  %7795 = vmatprep.subr.bf16.mxu1 %v10688_v26 }
 0x457   : > { %7108 = vmatpush1.bf16.msra.mxu0 %v10683_v27  ;;  %7796 = vmatpush1.bf16.msra.mxu1 %v10686_v28 }
 0x45a   : > { %7110 = vmatmul.mubr.bf16.vlgmr.msra.gmra.mrb[0].mxu0 %v286_v31  ;;  %7798 = vmatmul.mubr.bf16.vlgmr.msra.gmra.mrb[0].mxu1 %v286_v31 }
 0x52d   : > { %v7111_v36 = vpop.f32.mrb[0].mxu0  ;;  %v7799_v37 = vpop.f32.mrb[0].mxu1 }
 0x52e   : > { %v8961_v40 = vadd.f32 %v7111_v36, %v184_v32  ;;  %v8965_v41 = vadd.f32 %v7799_v37, %v186_v33  ;;  %v7113_v42 = vpop.f32.mrb[1].mxu0  ;;  %v7801_v43 = vpop.f32.mrb[1].mxu1 }
 0x52f   : > { %v8962_v46 = vadd.f32 %v7113_v42, %v185_v34  ;;  %v8966_v47 = vadd.f32 %v7801_v43, %v187_v35  ;;  %v7115_v48 = vpop.f32.mrb[2].mxu0  ;;  %v7803_v49 = vpop.f32.mrb[2].mxu1 }
 0x530   : > { %7808 = vst [vmem:[%s12023_s26] sm:$0xff] %v8961_v40  ;;  %7810 = vst [vmem:[%s12023_s26 + $0x10] sm:$0xff] %v8965_v41  ;;  %v8963_v50 = vadd.f32 %v7115_v48, %v188_v38  ;;  %v8967_v51 = vadd.f32 %v7803_v49, %v190_v39  ;;  %v7117_v52 = vpop.f32.mrb[3].mxu0  ;;  %v7805_v53 = vpop.f32.mrb[3].mxu1 }
 0x531   : > { %7809 = vst [vmem:[%s12023_s26 + $0x8] sm:$0xff] %v8962_v46  ;;  %7811 = vst [vmem:[%s12023_s26 + $0x18] sm:$0xff] %v8966_v47  ;;  %v8964_v54 = vadd.f32 %v7117_v52, %v189_v44  ;;  %v8968_v55 = vadd.f32 %v7805_v53, %v191_v45 }
 0x532   : > { %7812 = vst [vmem:[%s12023_s26 + $0x20] sm:$0xff] %v8963_v50  ;;  %7814 = vst [vmem:[%s12023_s26 + $0x30] sm:$0xff] %v8967_v51 }
 0x533   : > { %7813 = vst [vmem:[%s12023_s26 + $0x28] sm:$0xff] %v8964_v54  ;;  %7815 = vst [vmem:[%s12023_s26 + $0x38] sm:$0xff] %v8968_v55 }
 0x534   : > { %10760 = shalt.err (!%p10757_p11)
}
 0x535   : > { %s10761_s25 = scalar_lea.hbm %s12029_s17, 1024  ;;  %s10765_s24 = scalar_lea.hbm %s12084_s2, 8192 }
 0x536   : > { %p10762_p13 = scmp.ne.s32.totalorder %s12029_s17, %s10761_s25  ;;  %p10766_p12 = scmp.lt.u32.totalorder %s12029_s17, %s12084_s2 }
 0x537   : > { %p10767_p7 = scmp.lt.u32.totalorder %s10765_s24, %s10761_s25  ;;  %p10769_p8 = scmp.lt.u32.totalorder %s10761_s25, %s12029_s17 }
 0x538   : > { %p10763_p2 = pnand %p10762_p13, %p12102_p9 }
 0x539   : > { %p10768_p0 = por %p10767_p7, %p10766_p12 }
 0x53a   : > { %p10764_p6 = pneg %p10763_p2 }
 0x53b   : > { %p10770_p10 = por %p10769_p8, %p10768_p0 }
 0x53d   : > { %p10771_p1 = pnand %p10770_p10, %p10764_p6 }
 0x53f   : > { %10774 = shalt.err (!%p10771_p1)
}
 0x540   : > { %s10826_s14 = smov 512   ;;  %s10827_s4 = smov 4096  }
 0x541   : > { %s10828_s19 = smov 32  }
 0x542   : > { %9095 = dma.vmem_to_hbm [thread:$0]  (%p12102_p9), %s12031_s8, 1024, %s12029_s17, %s7817_s27, %s10826_s14, %s10827_s4, %s10828_s19  }
 0x543 PF: > { %p9112_p3 = scmp.ge.s32.totalorder %s10817_s12, 2  ;;  %s7845_s26 = sand.u32 1, %s10805_s9  }
 0x544   : > { %p12103_p4 = scmp.ne.s32.totalorder %s12092_s22, 0  ;;  %s7846_s13 = scalar_lea.sflag [#allocation4], %s7845_s26 }
 0x546   : > { %p9106_p5 = pnand %p9112_p3, %p12103_p4 }
 0x548   : > { %10800 = dma.done.wait (!%p9106_p5), %s7846_s13, 1024  }
 0x549   : > { %10802 = vsyncadd (!%p9106_p5), %s7846_s13, 4294966272  ;;  %p16_p11 = scmp.ge.s32.totalorder %s10869_s15, 10   ;;  %s12104_s9 = smov %s10809_s10 }
 0x54a   : > { %s12105_s10 = smov %s10813_s11  ;;  %s12106_s11 = smov %s10881_s18 }
 0x54b   : > { %s12107_s12 = smov %s10869_s15  ;;  %18 = sbr.rel (!%p16_p11) target bundleno = 6 (0x6), region = 79 }
 0x552   :  { %7851 = vsyncpa [#allocation3], 1 }
 0x553   :  { %7853 = vsyncpa [#allocation3 + $0x1], 1 }
 0x554   :  { %7854 = vsyncpa [#allocation6], 1 }
 0x555   :  { %7856 = vsyncpa [#allocation6 + $0x1], 1 }
 0x556   :  { %7857 = vsyncpa [#allocation4], 1 }
 0x557   :  { %7859 = vsyncpa [#allocation4 + $0x1], 1 }

</bundles_post_ra>
